<compile_context>
chip_gen: v7x
topology: tpu7x:2x2x1
jax: 0.10.0
libtpu: 0.0.40
codegen_flags: <defaults>
</compile_context>

<pallas_src>
import math
import functools

import jax
import jax.numpy as jnp
from jax import lax
from jax.experimental import pallas as pl
from jax.experimental.pallas import tpu as pltpu

_VMEM = pltpu.MemorySpace.VMEM
_SMEM = pltpu.MemorySpace.SMEM

LANE = 128          # lane-padded width for F / H / T
NUM_SLOTS = 9       # number of Linear layers packed into the weight slab
# slot order in the slab (lane offset = slot * 128):
#   0 out0  (F->T)   1 h1_w1 (F->H)   2 f1_w1 (F->H)      <- shared-LHS (x) group
#   3 h1_w2 (H->H)   4 f1_w2 (H->H)   5 out1  (H->T)
#   6 h2_w1 (H->H)   7 h2_w2 (H->H)   8 out2  (H->T)


# ----------------------------- fused Pallas kernel -----------------------------

def _amp_fused_kernel(n_classes,
                      qL_ref,                       # SMEM (3,) f32
                      x_ref, adj_ref, tgt_ref,      # VMEM per-graph blocks
                      w_ref, b_ref,                 # VMEM resident slabs
                      pred_ref, loss_ref):          # VMEM per-graph outputs
    x = x_ref[0]                       # [N, Fp] bf16 (zero-padded features)
    adj = adj_ref[0]                   # [N, N]  bf16 (dst, src) multiplicities
    tgt = tgt_ref[0]                   # [N, 1]  int32 class targets
    N = x.shape[0]

    q0 = qL_ref[0]
    q1 = qL_ref[1]
    q2 = qL_ref[2]

    def w_slot(k):
        return w_ref[:, LANE * k:LANE * (k + 1)]

    def b_slot(k):
        return b_ref[0:1, LANE * k:LANE * (k + 1)]

    def dot(a, b):
        # bf16 MXU inputs, f32 accumulation.
        return jnp.dot(a, b, preferred_element_type=jnp.float32)

    lane = lax.broadcasted_iota(jnp.int32, (N, LANE), 1)
    class_mask = lane < n_classes
    tgt_mask = lane == tgt             # exactly one lane per row matches

    def ce_sum(logits):
        # per-graph SUM of cross-entropy (mean over all nodes taken in wrapper)
        lg = jnp.where(class_mask, logits, -1e30)          # mask padded classes
        m = jnp.max(lg, axis=-1, keepdims=True)
        lse = m + jnp.log(jnp.sum(jnp.exp(lg - m), axis=-1, keepdims=True))
        picked = jnp.sum(jnp.where(tgt_mask, logits, 0.0), axis=-1, keepdims=True)
        return jnp.sum(lse - picked)                        # scalar

    # ----- fused shared-LHS matmul: x @ [out0_w | h1_w1 | f1_w1] -> [N, 384] -----
    xw = dot(x, w_ref[:, 0:3 * LANE]) + b_ref[0:1, 0:3 * LANE]
    logits0 = xw[:, 0:LANE]            # l=0 head applied to raw node features
    h_pre = xw[:, LANE:2 * LANE]
    t_pre = xw[:, 2 * LANE:3 * LANE]

    # l = 0 : accumulate prediction + CE immediately (flat vreg pressure)
    pred = q0 * logits0
    ce0 = ce_sum(logits0)

    # ----- l = 1 : first hidden layer is a plain MLP (no edges / filters) -----
    # TODO(synk): on v6e/v7x these elementwise ops could run in bf16; kept f32
    # so the same kernel is correct on v5e (no bf16 VPU/EUP).
    h = jnp.maximum(h_pre, 0.0)
    h = dot(h.astype(jnp.bfloat16), w_slot(3)) + b_slot(3)          # [N, Hp] f32
    logits1 = dot(h.astype(jnp.bfloat16), w_slot(5)) + b_slot(5)
    pred = pred + q1 * logits1
    ce1 = ce_sum(logits1)

    # ----- message filter (filter_type='input_features' -> runs on x, index 1) ---
    t = jnp.tanh(t_pre)
    filt = jax.nn.sigmoid(dot(t.astype(jnp.bfloat16), w_slot(4)) + b_slot(4))

    # ----- l = 2 : GIN-style conv with source-node message filters, eps = 0 ------
    # message from src j is filt_j * h_j; aggregation at dst i is adj[i, :] @ msg.
    # TODO(synk): for large N replace the dense [N,N] adj with scalar-prefetched
    # neighbor lists (v5e HBM bound) and tile the (dst,src) matmul against v7x's
    # 64 MiB VMEM; at N=128 the untiled bf16 adj tile is 32 KiB.
    msg = (filt * h).astype(jnp.bfloat16)
    agg = dot(adj, msg)                                              # [N, Hp] f32
    g = h + agg
    g = jnp.maximum(dot(g.astype(jnp.bfloat16), w_slot(6)) + b_slot(6), 0.0)
    g = dot(g.astype(jnp.bfloat16), w_slot(7)) + b_slot(7)
    logits2 = dot(g.astype(jnp.bfloat16), w_slot(8)) + b_slot(8)
    pred = pred + q2 * logits2
    ce2 = ce_sum(logits2)

    # ----- lane-dense stores: qL-weighted prediction + per-graph CE sums ---------
    pred_ref[0] = pred
    row = lax.broadcasted_iota(jnp.int32, loss_ref.shape[1:], 0)
    loss_ref[0] = jnp.where(row == 0, ce0,
                  jnp.where(row == 1, ce1,
                  jnp.where(row == 2, ce2, 0.0)))


# ----------------------------- wrappers -----------------------------

def amp_fused(qL_probs, x_bf, adj_bf, tgt_i32, w_slab, b_slab, n_classes):
    G, N, Fp = x_bf.shape
    Tp = LANE
    w_lanes = w_slab.shape[1]

    flops = int(G * (NUM_SLOTS * 2 * N * LANE * LANE + 2 * N * N * LANE))
    transcendentals = int(G * N * 5 * LANE)
    bytes_accessed = int(w_slab.size * 2 + b_slab.size * 4
                         + x_bf.size * 2 + adj_bf.size * 2 + tgt_i32.size * 4
                         + G * N * Tp * 4 + G * 8 * 128 * 4)

    kernel = functools.partial(_amp_fused_kernel, n_classes)
    grid_spec = pltpu.PrefetchScalarGridSpec(
        num_scalar_prefetch=0,
        grid=(G,),
        in_specs=[
            pl.BlockSpec(memory_space=_SMEM),                      # qL probs (3,)
            pl.BlockSpec((1, N, Fp), lambda g: (g, 0, 0)),         # x  per graph
            pl.BlockSpec((1, N, N), lambda g: (g, 0, 0)),          # adj per graph
            pl.BlockSpec((1, N, 1), lambda g: (g, 0, 0)),          # targets
            pl.BlockSpec((Fp, w_lanes), lambda g: (0, 0)),         # weight slab (resident)
            pl.BlockSpec((8, w_lanes), lambda g: (0, 0)),          # bias slab  (resident)
        ],
        out_specs=[
            pl.BlockSpec((1, N, Tp), lambda g: (g, 0, 0)),         # qL-weighted pred
            pl.BlockSpec((1, 8, 128), lambda g: (g, 0, 0)),        # per-graph CE sums
        ],
    )
    return pl.pallas_call(
        kernel,
        out_shape=(jax.ShapeDtypeStruct((G, N, Tp), jnp.float32),
                   jax.ShapeDtypeStruct((G, 8, 128), jnp.float32)),
        grid_spec=grid_spec,
        compiler_params=pltpu.CompilerParams(dimension_semantics=("parallel",)),
        cost_estimate=pl.CostEstimate(flops=flops,
                                      transcendentals=transcendentals,
                                      bytes_accessed=bytes_accessed),
    )(qL_probs, x_bf, adj_bf, tgt_i32, w_slab, b_slab)


def amp_forward(w_slab, b_slab, x_bf, adj_bf, tgt_i32, qL_probs, n_obs, n_classes):
    # TODO(synk): the variational posterior q(L) truncation update and dynamic
    # layer growth (update_depth) have no Pallas equivalent; q(L) is a runtime
    # probability vector of fixed length and depth is static (= 2).
    G, N, _ = x_bf.shape
    pred_pad, loss_slab = amp_fused(qL_probs, x_bf, adj_bf, tgt_i32,
                                    w_slab, b_slab, n_classes)
    pred = pred_pad[:, :, :n_classes].reshape(G * N, n_classes)
    ce = loss_slab[:, :3, 0].sum(axis=0) / (G * N)     # mean CE per layer over all nodes

    # classification ELBO; log_p_theta_* and log_p_L are zero here
    # (theta_prior=None, layers_prior=None)
    log_p_y = -ce * n_obs
    tail = qL_probs[1:]
    tail = tail / jnp.sum(tail)                        # Categorical normalizes probs
    entropy_qL = -jnp.sum(tail * jnp.log(tail))
    elbo = (jnp.sum(log_p_y * qL_probs) + entropy_qL) / n_obs
    return pred, -elbo


# ----------------------------- parameter setup -----------------------------

def _linear(key, fan_in, fan_out, pad_in=LANE, pad_out=LANE):
    # torch.nn.Linear-style uniform init at logical size, zero-padded to 128
    # (zero padding keeps the math exact for the padded lanes).
    kw, kb = jax.random.split(key)
    bound = 1.0 / math.sqrt(fan_in)
    w = jax.random.uniform(kw, (fan_in, fan_out), jnp.float32, -bound, bound)
    b = jax.random.uniform(kb, (fan_out,), jnp.float32, -bound, bound)
    w = jnp.pad(w, ((0, pad_in - fan_in), (0, pad_out - fan_out)))
    b = jnp.pad(b, ((0, pad_out - fan_out),))
    return w, b


def make_param_slabs(key, F, H, T):
    # Build the 9 Linear layers and pack them into one bf16 weight slab
    # [128, 9*128] and one f32 bias slab [8, 9*128] (row 0 holds the biases).
    dims = [(F, T), (F, H), (F, H),          # out0, h1_w1, f1_w1  (x-LHS group)
            (H, H), (H, H), (H, T),          # h1_w2, f1_w2, out1
            (H, H), (H, H), (H, T)]          # h2_w1, h2_w2, out2
    ks = jax.random.split(key, NUM_SLOTS)
    ws, bs = [], []
    for k, (fi, fo) in zip(ks, dims):
        w, b = _linear(k, fi, fo)
        ws.append(w)
        bs.append(b)
    w_slab = jnp.concatenate(ws, axis=1).astype(jnp.bfloat16)     # [128, 1152]
    b_row = jnp.concatenate(bs, axis=0)[None, :]                  # [1, 1152] f32
    b_slab = jnp.pad(b_row, ((0, 7), (0, 0)))                     # [8, 1152] f32
    return w_slab, b_slab


# ----------------------------- main -----------------------------

if __name__ == "__main__":
    G, N, F, H, T, E = 4, 128, 16, 32, 4, 256   # graphs, nodes, feat, hidden, classes, edges
    n_obs = 100.0                               # size_training_set

    key = jax.random.PRNGKey(0)
    k_x, k_e, k_y, k_p = jax.random.split(key, 4)

    x = jax.random.normal(k_x, (G, N, F), jnp.float32)
    edge_index = jax.random.randint(k_e, (G, 2, E), 0, N)         # per-graph (src, dst)
    targets = jax.random.randint(k_y, (G, N), 0, T)

    # zero-pad features to 128 lanes (exact: padded weight rows are zero)
    x_bf = jnp.pad(x, ((0, 0), (0, 0), (0, LANE - F))).astype(jnp.bfloat16)
    tgt_i32 = targets[..., None].astype(jnp.int32)                # [G, N, 1]

    # dense per-graph adjacency [dst, src] with edge multiplicities
    # (bf16 is exact for multiplicities <= 256; keep f32 if that can be exceeded)
    def build_adj(ei):
        return jnp.zeros((N, N), jnp.float32).at[ei[1], ei[0]].add(1.0)

    adj_bf = jax.vmap(build_adj)(edge_index).astype(jnp.bfloat16)

    # fixed deterministic q(L) probability vector of length current_depth + 1
    qL_probs = jax.nn.softmax(jnp.array([0.5, 1.0, 1.5], jnp.float32))

    w_slab, b_slab = make_param_slabs(k_p, F, H, T)

    pred, neg_elbo = amp_forward(w_slab, b_slab, x_bf, adj_bf, tgt_i32,
                                 qL_probs, n_obs, T)
    jax.block_until_ready((pred, neg_elbo))

    assert pred.shape == (G * N, T)
    assert neg_elbo.shape == ()
    print("KERNEL_OK")
</pallas_src>

<mosaic_0001>
module attributes {stable_mosaic.version = 11 : i64} {
  func.func @_amp_fused_kernel(%arg0: i32, %arg1: memref<3xf32, #tpu.memory_space<smem>>, %arg2: memref<1x128x128xbf16, #tpu.memory_space<vmem>>, %arg3: memref<1x128x128xbf16, #tpu.memory_space<vmem>>, %arg4: memref<1x128x1xi32, #tpu.memory_space<vmem>>, %arg5: memref<128x1152xbf16, #tpu.memory_space<vmem>>, %arg6: memref<8x1152xf32, #tpu.memory_space<vmem>>, %arg7: memref<1x128x128xf32, #tpu.memory_space<vmem>>, %arg8: memref<1x8x128xf32, #tpu.memory_space<vmem>>) attributes {dimension_semantics = [#tpu.dimension_semantics<parallel>], iteration_bounds = array<i64: 4>, scalar_prefetch = 0 : i64, scratch_operands = 0 : i64, tpu.core_type = #tpu.core_type<tc>, window_params = [{transform_indices = @transform_0, window_bounds = array<i64: 3>}, {transform_indices = @transform_1, window_bounds = array<i64: 1, 128, 128>}, {transform_indices = @transform_2, window_bounds = array<i64: 1, 128, 128>}, {transform_indices = @transform_3, window_bounds = array<i64: 1, 128, 1>}, {pipeline_mode = #tpu.pipeline_mode<synchronous>, transform_indices = @transform_4, window_bounds = array<i64: 128, 1152>}, {pipeline_mode = #tpu.pipeline_mode<synchronous>, transform_indices = @transform_5, window_bounds = array<i64: 8, 1152>}, {transform_indices = @transform_6, window_bounds = array<i64: 1, 128, 128>}, {transform_indices = @transform_7, window_bounds = array<i64: 1, 8, 128>}]} {
    %c0 = arith.constant 0 : index
    %c0_0 = arith.constant 0 : index
    %c0_1 = arith.constant 0 : index
    %0 = vector.load %arg2[%c0, %c0_0, %c0_1] : memref<1x128x128xbf16, #tpu.memory_space<vmem>>, vector<1x128x128xbf16>
    %1 = vector.shape_cast %0 : vector<1x128x128xbf16> to vector<128x128xbf16>
    %c0_2 = arith.constant 0 : index
    %c0_3 = arith.constant 0 : index
    %c0_4 = arith.constant 0 : index
    %2 = vector.load %arg3[%c0_2, %c0_3, %c0_4] : memref<1x128x128xbf16, #tpu.memory_space<vmem>>, vector<1x128x128xbf16>
    %3 = vector.shape_cast %2 : vector<1x128x128xbf16> to vector<128x128xbf16>
    %c0_5 = arith.constant 0 : index
    %c0_6 = arith.constant 0 : index
    %c0_7 = arith.constant 0 : index
    %4 = vector.load %arg4[%c0_5, %c0_6, %c0_7] : memref<1x128x1xi32, #tpu.memory_space<vmem>>, vector<1x128x1xi32>
    %5 = vector.shape_cast %4 : vector<1x128x1xi32> to vector<128x1xi32>
    %c0_8 = arith.constant 0 : index
    %6 = memref.load %arg1[%c0_8] : memref<3xf32, #tpu.memory_space<smem>>
    %c1 = arith.constant 1 : index
    %7 = memref.load %arg1[%c1] : memref<3xf32, #tpu.memory_space<smem>>
    %c2 = arith.constant 2 : index
    %8 = memref.load %arg1[%c2] : memref<3xf32, #tpu.memory_space<smem>>
    %9 = tpu.iota {dimensions = array<i32: 1>} : vector<128x128xi32>
    %c4_i32 = arith.constant 4 : i32
    %10 = vector.broadcast %c4_i32 : i32 to vector<128x128xi32>
    %11 = arith.cmpi slt, %9, %10 : vector<128x128xi32>
    %12 = vector.broadcast %5 : vector<128x1xi32> to vector<128x128xi32>
    %13 = arith.cmpi eq, %9, %12 : vector<128x128xi32>
    %c0_9 = arith.constant 0 : index
    %c0_10 = arith.constant 0 : index
    %14 = vector.load %arg5[%c0_9, %c0_10] : memref<128x1152xbf16, #tpu.memory_space<vmem>>, vector<128x384xbf16>
    %cst = arith.constant dense<0.000000e+00> : vector<128x384xf32>
    %15 = tpu.matmul %1, %14, %cst {dimension_numbers = #tpu.dot_dimension_numbers<[1], [0], [0], [1], [0, 0, 1, 1], [], []>} : vector<128x128xbf16>, vector<128x384xbf16>, vector<128x384xf32> -> vector<128x384xf32>
    %c0_11 = arith.constant 0 : index
    %c0_12 = arith.constant 0 : index
    %16 = vector.load %arg6[%c0_11, %c0_12] : memref<8x1152xf32, #tpu.memory_space<vmem>>, vector<1x384xf32>
    %17 = vector.broadcast %16 : vector<1x384xf32> to vector<128x384xf32>
    %18 = arith.addf %15, %17 : vector<128x384xf32>
    %19 = vector.extract_strided_slice %18 {offsets = [0, 0], sizes = [128, 128], strides = [1, 1]} : vector<128x384xf32> to vector<128x128xf32>
    %20 = vector.extract_strided_slice %18 {offsets = [0, 128], sizes = [128, 128], strides = [1, 1]} : vector<128x384xf32> to vector<128x128xf32>
    %21 = vector.extract_strided_slice %18 {offsets = [0, 256], sizes = [128, 128], strides = [1, 1]} : vector<128x384xf32> to vector<128x128xf32>
    %22 = vector.broadcast %6 : f32 to vector<128x128xf32>
    %23 = arith.mulf %22, %19 : vector<128x128xf32>
    %cst_13 = arith.constant -1.000000e+30 : f32
    %24 = vector.broadcast %cst_13 : f32 to vector<128x128xf32>
    %25 = arith.select %11, %19, %24 : vector<128x128xi1>, vector<128x128xf32>
    %cst_14 = arith.constant dense<0xFF800000> : vector<128xf32>
    %26 = vector.multi_reduction <maximumf>, %25, %cst_14 [1] : vector<128x128xf32> to vector<128xf32>
    %27 = vector.shape_cast %26 : vector<128xf32> to vector<128x1xf32>
    %28 = vector.broadcast %27 : vector<128x1xf32> to vector<128x128xf32>
    %29 = arith.subf %25, %28 : vector<128x128xf32>
    %30 = math.exp %29 : vector<128x128xf32>
    %cst_15 = arith.constant dense<0.000000e+00> : vector<128xf32>
    %31 = vector.multi_reduction <add>, %30, %cst_15 [1] : vector<128x128xf32> to vector<128xf32>
    %32 = vector.shape_cast %31 : vector<128xf32> to vector<128x1xf32>
    %33 = math.log %32 : vector<128x1xf32>
    %34 = arith.addf %27, %33 : vector<128x1xf32>
    %cst_16 = arith.constant 0.000000e+00 : f32
    %35 = vector.broadcast %cst_16 : f32 to vector<128x128xf32>
    %36 = arith.select %13, %19, %35 : vector<128x128xi1>, vector<128x128xf32>
    %cst_17 = arith.constant dense<0.000000e+00> : vector<128xf32>
    %37 = vector.multi_reduction <add>, %36, %cst_17 [1] : vector<128x128xf32> to vector<128xf32>
    %38 = vector.shape_cast %37 : vector<128xf32> to vector<128x1xf32>
    %39 = arith.subf %34, %38 : vector<128x1xf32>
    %40 = vector.shape_cast %39 : vector<128x1xf32> to vector<1x128x1xf32>
    %cst_18 = arith.constant dense<0.000000e+00> : vector<1xf32>
    %41 = vector.multi_reduction <add>, %40, %cst_18 [1, 2] : vector<1x128x1xf32> to vector<1xf32>
    %42 = vector.shape_cast %41 : vector<1xf32> to vector<1x1x1xf32>
    %43 = vector.extract %42[0, 0, 0] : f32 from vector<1x1x1xf32>
    %cst_19 = arith.constant 0.000000e+00 : f32
    %44 = vector.broadcast %cst_19 : f32 to vector<128x128xf32>
    %45 = arith.maximumf %20, %44 : vector<128x128xf32>
    %46 = arith.truncf %45 : vector<128x128xf32> to vector<128x128xbf16>
    %c0_20 = arith.constant 0 : index
    %c384 = arith.constant 384 : index
    %47 = vector.load %arg5[%c0_20, %c384] : memref<128x1152xbf16, #tpu.memory_space<vmem>>, vector<128x128xbf16>
    %cst_21 = arith.constant dense<0.000000e+00> : vector<128x128xf32>
    %48 = tpu.matmul %46, %47, %cst_21 {dimension_numbers = #tpu.dot_dimension_numbers<[1], [0], [0], [1], [0, 0, 1, 1], [], []>} : vector<128x128xbf16>, vector<128x128xbf16>, vector<128x128xf32> -> vector<128x128xf32>
    %c0_22 = arith.constant 0 : index
    %c384_23 = arith.constant 384 : index
    %49 = vector.load %arg6[%c0_22, %c384_23] : memref<8x1152xf32, #tpu.memory_space<vmem>>, vector<1x128xf32>
    %50 = vector.broadcast %49 : vector<1x128xf32> to vector<128x128xf32>
    %51 = arith.addf %48, %50 : vector<128x128xf32>
    %52 = arith.truncf %51 : vector<128x128xf32> to vector<128x128xbf16>
    %c0_24 = arith.constant 0 : index
    %c640 = arith.constant 640 : index
    %53 = vector.load %arg5[%c0_24, %c640] : memref<128x1152xbf16, #tpu.memory_space<vmem>>, vector<128x128xbf16>
    %cst_25 = arith.constant dense<0.000000e+00> : vector<128x128xf32>
    %54 = tpu.matmul %52, %53, %cst_25 {dimension_numbers = #tpu.dot_dimension_numbers<[1], [0], [0], [1], [0, 0, 1, 1], [], []>} : vector<128x128xbf16>, vector<128x128xbf16>, vector<128x128xf32> -> vector<128x128xf32>
    %c0_26 = arith.constant 0 : index
    %c640_27 = arith.constant 640 : index
    %55 = vector.load %arg6[%c0_26, %c640_27] : memref<8x1152xf32, #tpu.memory_space<vmem>>, vector<1x128xf32>
    %56 = vector.broadcast %55 : vector<1x128xf32> to vector<128x128xf32>
    %57 = arith.addf %54, %56 : vector<128x128xf32>
    %58 = vector.broadcast %7 : f32 to vector<128x128xf32>
    %59 = arith.mulf %58, %57 : vector<128x128xf32>
    %60 = arith.addf %23, %59 : vector<128x128xf32>
    %cst_28 = arith.constant -1.000000e+30 : f32
    %61 = vector.broadcast %cst_28 : f32 to vector<128x128xf32>
    %62 = arith.select %11, %57, %61 : vector<128x128xi1>, vector<128x128xf32>
    %cst_29 = arith.constant dense<0xFF800000> : vector<128xf32>
    %63 = vector.multi_reduction <maximumf>, %62, %cst_29 [1] : vector<128x128xf32> to vector<128xf32>
    %64 = vector.shape_cast %63 : vector<128xf32> to vector<128x1xf32>
    %65 = vector.broadcast %64 : vector<128x1xf32> to vector<128x128xf32>
    %66 = arith.subf %62, %65 : vector<128x128xf32>
    %67 = math.exp %66 : vector<128x128xf32>
    %cst_30 = arith.constant dense<0.000000e+00> : vector<128xf32>
    %68 = vector.multi_reduction <add>, %67, %cst_30 [1] : vector<128x128xf32> to vector<128xf32>
    %69 = vector.shape_cast %68 : vector<128xf32> to vector<128x1xf32>
    %70 = math.log %69 : vector<128x1xf32>
    %71 = arith.addf %64, %70 : vector<128x1xf32>
    %cst_31 = arith.constant 0.000000e+00 : f32
    %72 = vector.broadcast %cst_31 : f32 to vector<128x128xf32>
    %73 = arith.select %13, %57, %72 : vector<128x128xi1>, vector<128x128xf32>
    %cst_32 = arith.constant dense<0.000000e+00> : vector<128xf32>
    %74 = vector.multi_reduction <add>, %73, %cst_32 [1] : vector<128x128xf32> to vector<128xf32>
    %75 = vector.shape_cast %74 : vector<128xf32> to vector<128x1xf32>
    %76 = arith.subf %71, %75 : vector<128x1xf32>
    %77 = vector.shape_cast %76 : vector<128x1xf32> to vector<1x128x1xf32>
    %cst_33 = arith.constant dense<0.000000e+00> : vector<1xf32>
    %78 = vector.multi_reduction <add>, %77, %cst_33 [1, 2] : vector<1x128x1xf32> to vector<1xf32>
    %79 = vector.shape_cast %78 : vector<1xf32> to vector<1x1x1xf32>
    %80 = vector.extract %79[0, 0, 0] : f32 from vector<1x1x1xf32>
    %81 = math.tanh %21 : vector<128x128xf32>
    %82 = arith.truncf %81 : vector<128x128xf32> to vector<128x128xbf16>
    %c0_34 = arith.constant 0 : index
    %c512 = arith.constant 512 : index
    %83 = vector.load %arg5[%c0_34, %c512] : memref<128x1152xbf16, #tpu.memory_space<vmem>>, vector<128x128xbf16>
    %cst_35 = arith.constant dense<0.000000e+00> : vector<128x128xf32>
    %84 = tpu.matmul %82, %83, %cst_35 {dimension_numbers = #tpu.dot_dimension_numbers<[1], [0], [0], [1], [0, 0, 1, 1], [], []>} : vector<128x128xbf16>, vector<128x128xbf16>, vector<128x128xf32> -> vector<128x128xf32>
    %c0_36 = arith.constant 0 : index
    %c512_37 = arith.constant 512 : index
    %85 = vector.load %arg6[%c0_36, %c512_37] : memref<8x1152xf32, #tpu.memory_space<vmem>>, vector<1x128xf32>
    %86 = vector.broadcast %85 : vector<1x128xf32> to vector<128x128xf32>
    %87 = arith.addf %84, %86 : vector<128x128xf32>
    %88 = arith.negf %87 : vector<128x128xf32>
    %89 = math.exp %88 : vector<128x128xf32>
    %cst_38 = arith.constant 1.000000e+00 : f32
    %90 = vector.broadcast %cst_38 : f32 to vector<128x128xf32>
    %91 = arith.addf %90, %89 : vector<128x128xf32>
    %92 = arith.divf %90, %91 : vector<128x128xf32>
    %93 = arith.mulf %92, %51 : vector<128x128xf32>
    %94 = arith.truncf %93 : vector<128x128xf32> to vector<128x128xbf16>
    %cst_39 = arith.constant dense<0.000000e+00> : vector<128x128xf32>
    %95 = tpu.matmul %3, %94, %cst_39 {dimension_numbers = #tpu.dot_dimension_numbers<[1], [0], [0], [1], [0, 0, 1, 1], [], []>} : vector<128x128xbf16>, vector<128x128xbf16>, vector<128x128xf32> -> vector<128x128xf32>
    %96 = arith.addf %51, %95 : vector<128x128xf32>
    %97 = arith.truncf %96 : vector<128x128xf32> to vector<128x128xbf16>
    %c0_40 = arith.constant 0 : index
    %c768 = arith.constant 768 : index
    %98 = vector.load %arg5[%c0_40, %c768] : memref<128x1152xbf16, #tpu.memory_space<vmem>>, vector<128x128xbf16>
    %cst_41 = arith.constant dense<0.000000e+00> : vector<128x128xf32>
    %99 = tpu.matmul %97, %98, %cst_41 {dimension_numbers = #tpu.dot_dimension_numbers<[1], [0], [0], [1], [0, 0, 1, 1], [], []>} : vector<128x128xbf16>, vector<128x128xbf16>, vector<128x128xf32> -> vector<128x128xf32>
    %c0_42 = arith.constant 0 : index
    %c768_43 = arith.constant 768 : index
    %100 = vector.load %arg6[%c0_42, %c768_43] : memref<8x1152xf32, #tpu.memory_space<vmem>>, vector<1x128xf32>
    %101 = vector.broadcast %100 : vector<1x128xf32> to vector<128x128xf32>
    %102 = arith.addf %99, %101 : vector<128x128xf32>
    %cst_44 = arith.constant 0.000000e+00 : f32
    %103 = vector.broadcast %cst_44 : f32 to vector<128x128xf32>
    %104 = arith.maximumf %102, %103 : vector<128x128xf32>
    %105 = arith.truncf %104 : vector<128x128xf32> to vector<128x128xbf16>
    %c0_45 = arith.constant 0 : index
    %c896 = arith.constant 896 : index
    %106 = vector.load %arg5[%c0_45, %c896] : memref<128x1152xbf16, #tpu.memory_space<vmem>>, vector<128x128xbf16>
    %cst_46 = arith.constant dense<0.000000e+00> : vector<128x128xf32>
    %107 = tpu.matmul %105, %106, %cst_46 {dimension_numbers = #tpu.dot_dimension_numbers<[1], [0], [0], [1], [0, 0, 1, 1], [], []>} : vector<128x128xbf16>, vector<128x128xbf16>, vector<128x128xf32> -> vector<128x128xf32>
    %c0_47 = arith.constant 0 : index
    %c896_48 = arith.constant 896 : index
    %108 = vector.load %arg6[%c0_47, %c896_48] : memref<8x1152xf32, #tpu.memory_space<vmem>>, vector<1x128xf32>
    %109 = vector.broadcast %108 : vector<1x128xf32> to vector<128x128xf32>
    %110 = arith.addf %107, %109 : vector<128x128xf32>
    %111 = arith.truncf %110 : vector<128x128xf32> to vector<128x128xbf16>
    %c0_49 = arith.constant 0 : index
    %c1024 = arith.constant 1024 : index
    %112 = vector.load %arg5[%c0_49, %c1024] : memref<128x1152xbf16, #tpu.memory_space<vmem>>, vector<128x128xbf16>
    %cst_50 = arith.constant dense<0.000000e+00> : vector<128x128xf32>
    %113 = tpu.matmul %111, %112, %cst_50 {dimension_numbers = #tpu.dot_dimension_numbers<[1], [0], [0], [1], [0, 0, 1, 1], [], []>} : vector<128x128xbf16>, vector<128x128xbf16>, vector<128x128xf32> -> vector<128x128xf32>
    %c0_51 = arith.constant 0 : index
    %c1024_52 = arith.constant 1024 : index
    %114 = vector.load %arg6[%c0_51, %c1024_52] : memref<8x1152xf32, #tpu.memory_space<vmem>>, vector<1x128xf32>
    %115 = vector.broadcast %114 : vector<1x128xf32> to vector<128x128xf32>
    %116 = arith.addf %113, %115 : vector<128x128xf32>
    %117 = vector.broadcast %8 : f32 to vector<128x128xf32>
    %118 = arith.mulf %117, %116 : vector<128x128xf32>
    %119 = arith.addf %60, %118 : vector<128x128xf32>
    %cst_53 = arith.constant -1.000000e+30 : f32
    %120 = vector.broadcast %cst_53 : f32 to vector<128x128xf32>
    %121 = arith.select %11, %116, %120 : vector<128x128xi1>, vector<128x128xf32>
    %cst_54 = arith.constant dense<0xFF800000> : vector<128xf32>
    %122 = vector.multi_reduction <maximumf>, %121, %cst_54 [1] : vector<128x128xf32> to vector<128xf32>
    %123 = vector.shape_cast %122 : vector<128xf32> to vector<128x1xf32>
    %124 = vector.broadcast %123 : vector<128x1xf32> to vector<128x128xf32>
    %125 = arith.subf %121, %124 : vector<128x128xf32>
    %126 = math.exp %125 : vector<128x128xf32>
    %cst_55 = arith.constant dense<0.000000e+00> : vector<128xf32>
    %127 = vector.multi_reduction <add>, %126, %cst_55 [1] : vector<128x128xf32> to vector<128xf32>
    %128 = vector.shape_cast %127 : vector<128xf32> to vector<128x1xf32>
    %129 = math.log %128 : vector<128x1xf32>
    %130 = arith.addf %123, %129 : vector<128x1xf32>
    %cst_56 = arith.constant 0.000000e+00 : f32
    %131 = vector.broadcast %cst_56 : f32 to vector<128x128xf32>
    %132 = arith.select %13, %116, %131 : vector<128x128xi1>, vector<128x128xf32>
    %cst_57 = arith.constant dense<0.000000e+00> : vector<128xf32>
    %133 = vector.multi_reduction <add>, %132, %cst_57 [1] : vector<128x128xf32> to vector<128xf32>
    %134 = vector.shape_cast %133 : vector<128xf32> to vector<128x1xf32>
    %135 = arith.subf %130, %134 : vector<128x1xf32>
    %136 = vector.shape_cast %135 : vector<128x1xf32> to vector<1x128x1xf32>
    %cst_58 = arith.constant dense<0.000000e+00> : vector<1xf32>
    %137 = vector.multi_reduction <add>, %136, %cst_58 [1, 2] : vector<1x128x1xf32> to vector<1xf32>
    %138 = vector.shape_cast %137 : vector<1xf32> to vector<1x1x1xf32>
    %139 = vector.extract %138[0, 0, 0] : f32 from vector<1x1x1xf32>
    %c0_59 = arith.constant 0 : index
    %c0_60 = arith.constant 0 : index
    %c0_61 = arith.constant 0 : index
    %140 = vector.load %arg7[%c0_59, %c0_60, %c0_61] : memref<1x128x128xf32, #tpu.memory_space<vmem>>, vector<1x128x128xf32>
    %141 = vector.shape_cast %140 : vector<1x128x128xf32> to vector<128x128xf32>
    %142 = vector.shape_cast %119 : vector<128x128xf32> to vector<1x128x128xf32>
    tpu.vector_store %arg7[%c0_59, %c0_60, %c0_61], %142 {strides = array<i32>} : memref<1x128x128xf32, #tpu.memory_space<vmem>>, vector<1x128x128xf32>,
    %143 = tpu.iota {dimensions = array<i32: 0>} : vector<8x128xi32>
    %c0_i32 = arith.constant 0 : i32
    %144 = vector.broadcast %c0_i32 : i32 to vector<8x128xi32>
    %145 = arith.cmpi eq, %143, %144 : vector<8x128xi32>
    %c1_i32 = arith.constant 1 : i32
    %146 = vector.broadcast %c1_i32 : i32 to vector<8x128xi32>
    %147 = arith.cmpi eq, %143, %146 : vector<8x128xi32>
    %c2_i32 = arith.constant 2 : i32
    %148 = vector.broadcast %c2_i32 : i32 to vector<8x128xi32>
    %149 = arith.cmpi eq, %143, %148 : vector<8x128xi32>
    %cst_62 = arith.constant 0.000000e+00 : f32
    %150 = vector.broadcast %139 : f32 to vector<8x128xf32>
    %151 = vector.broadcast %cst_62 : f32 to vector<8x128xf32>
    %152 = arith.select %149, %150, %151 : vector<8x128xi1>, vector<8x128xf32>
    %153 = vector.broadcast %80 : f32 to vector<8x128xf32>
    %154 = arith.select %147, %153, %152 : vector<8x128xi1>, vector<8x128xf32>
    %155 = vector.broadcast %43 : f32 to vector<8x128xf32>
    %156 = arith.select %145, %155, %154 : vector<8x128xi1>, vector<8x128xf32>
    %c0_63 = arith.constant 0 : index
    %c0_64 = arith.constant 0 : index
    %c0_65 = arith.constant 0 : index
    %157 = vector.load %arg8[%c0_63, %c0_64, %c0_65] : memref<1x8x128xf32, #tpu.memory_space<vmem>>, vector<1x8x128xf32>
    %158 = vector.shape_cast %157 : vector<1x8x128xf32> to vector<8x128xf32>
    %159 = vector.shape_cast %156 : vector<8x128xf32> to vector<1x8x128xf32>
    tpu.vector_store %arg8[%c0_63, %c0_64, %c0_65], %159 {strides = array<i32>} : memref<1x8x128xf32, #tpu.memory_space<vmem>>, vector<1x8x128xf32>,
    return
  }
  func.func @transform_0(%arg0: i32) -> i32 {
    %c0_i32 = arith.constant 0 : i32
    %c0_i32_0 = arith.constant 0 : i32
    return %c0_i32 : i32
  }
  func.func @transform_1(%arg0: i32) -> (i32, i32, i32) {
    %c0_i32 = arith.constant 0 : i32
    %c0_i32_0 = arith.constant 0 : i32
    %c0_i32_1 = arith.constant 0 : i32
    return %arg0, %c0_i32, %c0_i32_0 : i32, i32, i32
  }
  func.func @transform_2(%arg0: i32) -> (i32, i32, i32) {
    %c0_i32 = arith.constant 0 : i32
    %c0_i32_0 = arith.constant 0 : i32
    %c0_i32_1 = arith.constant 0 : i32
    return %arg0, %c0_i32, %c0_i32_0 : i32, i32, i32
  }
  func.func @transform_3(%arg0: i32) -> (i32, i32, i32) {
    %c0_i32 = arith.constant 0 : i32
    %c0_i32_0 = arith.constant 0 : i32
    %c0_i32_1 = arith.constant 0 : i32
    return %arg0, %c0_i32, %c0_i32_0 : i32, i32, i32
  }
  func.func @transform_4(%arg0: i32) -> (i32, i32) {
    %c0_i32 = arith.constant 0 : i32
    %c0_i32_0 = arith.constant 0 : i32
    %c0_i32_1 = arith.constant 0 : i32
    return %c0_i32, %c0_i32_0 : i32, i32
  }
  func.func @transform_5(%arg0: i32) -> (i32, i32) {
    %c0_i32 = arith.constant 0 : i32
    %c0_i32_0 = arith.constant 0 : i32
    %c0_i32_1 = arith.constant 0 : i32
    return %c0_i32, %c0_i32_0 : i32, i32
  }
  func.func @transform_6(%arg0: i32) -> (i32, i32, i32) {
    %c0_i32 = arith.constant 0 : i32
    %c0_i32_0 = arith.constant 0 : i32
    %c0_i32_1 = arith.constant 0 : i32
    return %arg0, %c0_i32, %c0_i32_0 : i32, i32, i32
  }
  func.func @transform_7(%arg0: i32) -> (i32, i32, i32) {
    %c0_i32 = arith.constant 0 : i32
    %c0_i32_0 = arith.constant 0 : i32
    %c0_i32_1 = arith.constant 0 : i32
    return %arg0, %c0_i32, %c0_i32_0 : i32, i32, i32
  }
}

</mosaic_0001>

<bundles_post_ra>
// kernel: tpu_custom_call.1
= control target key start
LH: loop header
LB: loop body
LE: loop exit
PB: predicated region body
PF: predicated region fallthrough
CT: control target
= control target key end

     0   :  { %s6377_s0 = inlined_call_operand.vmem [shape: f32[3], index: 0, kind: input, shape index: {}]   ;;  %s6378_s1 = inlined_call_operand.vmem [shape: bf16[4,128,128], index: 1, kind: input, shape index: {}]   ;;  %s6379_s2 = inlined_call_operand.vmem [shape: bf16[4,128,128], index: 2, kind: input, shape index: {}]   ;;  %s6380_s3 = inlined_call_operand.vmem [shape: s32[4,128,1], index: 3, kind: input, shape index: {}]   ;;  %s6381_s4 = inlined_call_operand.hbm [shape: bf16[128,1152], index: 4, kind: input, shape index: {}]   ;;  %s6382_s5 = inlined_call_operand.hbm [shape: f32[8,1152], index: 5, kind: input, shape index: {}]   ;;  %s6383_s6 = inlined_call_operand.hbm [shape: f32[4,128,128], index: 6, kind: output, shape index: {0}]   ;;  %s6384_s7 = inlined_call_operand.hbm [shape: f32[4,8,128], index: 7, kind: output, shape index: {1}]  }
   0x1   :  { %6456 = sst [smem:[#allocation91_spill]] %s6377_s0 }
   0x2   :  { %13 = vsyncpa [#allocation5], 0 }
   0x3   :  { %14 = vsyncpa [#allocation3], 0 }
   0x4   :  { %15 = vsyncpa [#allocation8], 0 }
   0x5   :  { %16 = vsyncpa [#allocation4], 0 }
   0x6   :  { %18 = vsyncpa [#allocation4 + $0x1], 0 }
   0x7   :  { %19 = vsyncpa [#allocation11], 0 }
   0x8   :  { %21 = vsyncpa [#allocation11 + $0x1], 0  ;;  %s4629_s24 = smov 0   ;;  %s4631_s25 = smov 0  }
   0x9   :  { %s4633_s26 = smov 0   ;;  %s4635_s27 = smov 0  }
   0xa LB: > { %s4650_s28 = sadd.s32 4294967295, %s4577_s27   ;;  %s3409_s29 = sadd.s32 4294967294, %s4577_s27   ;;  %s4577_s27 = sphi %s4635_s27, %s6653_s27   ;;  %s4573_s26 = sphi %s4633_s26, %s6652_s26   ;;  %s4569_s25 = sphi %s4631_s25, %s6651_s25   ;;  %s4565_s24 = sphi %s4629_s24, %s6650_s24  }
   0xb   : > { %s4654_s30 = sadd.s32 1, %s4577_s27   ;;  %s175_s8 = sadd.s32 1, %s4573_s26 }
   0xc   : > { %s172_s9 = ssub.s32 %s4577_s27, %s4654_s30  ;;  %p185_p0 = scmp.ne.s32.totalorder %s4573_s26, %s4569_s25 }
   0xd   : > { %p173_p1 = scmp.eq.s32.totalorder %s172_s9, 0  ;;  %p186_p2 = scmp.eq.s32.totalorder %s4650_s28, 3 }
   0xe   : > { %p191_p3 = scmp.ne.s32.totalorder %s4569_s25, %s4565_s24  ;;  %p192_p4 = scmp.eq.s32.totalorder %s3409_s29, 3 }
   0xf   : > { %s4665_s10 = scalar_select %p173_p1, %s4573_s26, %s175_s8  }
  0x10   : > { %p4667_p5 = por %p186_p2, %p185_p0  ;;  %p4671_p6 = por %p192_p4, %p191_p3 }
  0x11   : > { %6457 = sst [smem:[#allocation17_spill]] %s4665_s10  ;;  %p3410_p7 = scmp.ge.s32.totalorder %s4577_s27, 1 }
  0x12   : > { %s6458_s11 = scalar_select %p4667_p5, 1, 0 }
  0x13   : > { %s6459_s12 = scalar_select %p4671_p6, 1, 0 }
  0x14   : > { %p225_p8 = scmp.lt.s32.totalorder %s4577_s27, 5  ;;  %p6385_p9 = scmp.eq.s32.totalorder %s4650_s28, 0 }
  0x15   : > { %s6461_s0 = sld [smem:[#allocation91_spill]]  ;;  %s4579_s17 = smov [#allocation6]  }
  0x16   : > { %p4678_p10 = pnand %p3410_p7, %p225_p8  ;;  %s248_s18 = sshll.u32 %s4579_s17, 4  ;;  %s4693_s18 = int_to_ptr.vmem [resolvable:$true] %s248_s18 }
  0x17   : > { %s4580_s20 = smov [#allocation7]  }
  0x18   : > { %s6460_s13 = scalar_select %p4678_p10, 1, 0 }
  0x19   : > { %p3950_p11 = pneg %p4678_p10  ;;  %s4695_s21 = sshll.u32 %s4580_s20, 4  ;;  %s263_s21 = int_to_ptr.vmem [resolvable:$true] %s4695_s21 }
  0x1b   : > { %s238_s16 = sshll.u32 %s6461_s0, 4  ;;  %p4689_p12 = pnand %p6385_p9, %p3950_p11  ;;  %s239_s16 = int_to_ptr.vmem [resolvable:$true] %s238_s16 }
  0x1c   : > { %s4400_s22 = scalar_lea.vmem %s239_s16, 16  ;;  %p4408_p3 = scmp.lt.s32.totalorder %s239_s16, %s239_s16 }
  0x1d   : > { %p4401_p13 = scmp.ne.s32.totalorder %s239_s16, %s4400_s22  ;;  %p4699_p0 = pneg %p4689_p12 }
  0x1e   : > { %p4409_p4 = scmp.lt.s32.totalorder %s4400_s22, %s4400_s22 }
  0x1f   : > { %p4403_p1 = pnand %p4699_p0, %p4401_p13 }
  0x20   : > { %p4410_p7 = por %p4409_p4, %p4408_p3 }
  0x21   : > { %p4404_p2 = pneg %p4403_p1 }
  0x23   : > { %p4411_p8 = pnand %p4410_p7, %p4404_p2 }
  0x25   : > { %4414 = shalt.err (!%p4411_p8)
}
  0x26   : > { %s4581_s29 = smov [#allocation2]   ;;  %s4415_s14 = scalar_lea.hbm %s6381_s4, 9216 }
  0x27   : > { %3953 = dma.vmem_to_smem (!%p4689_p12), %s239_s16, 16, %s4581_s29, [#allocation5]  }
  0x28   : > { %p4416_p11 = scmp.ne.s32.totalorder %s6381_s4, %s4415_s14  ;;  %p4422_p2 = scmp.lt.u32.totalorder %s4415_s14, %s6381_s4 }
  0x2a   : > { %p4418_p13 = pnand %p4416_p11, %p4699_p0 }
  0x2c   : > { %p4419_p1 = pneg %p4418_p13 }
  0x2e   : > { %p4424_p3 = pnand %p4422_p2, %p4419_p1 }
  0x30   : > { %4427 = shalt.err (!%p4424_p3)
}
  0x31   : > { %s4428_s16 = scalar_lea.vmem %s4693_s18, 9216  ;;  %p4436_p9 = scmp.lt.s32.totalorder %s4693_s18, %s4693_s18 }
  0x32   : > { %p4429_p4 = scmp.ne.s32.totalorder %s4693_s18, %s4428_s16  ;;  %p4437_p6 = scmp.lt.s32.totalorder %s4428_s16, %s4428_s16 }
  0x34   : > { %p4431_p7 = pnand %p4429_p4, %p4699_p0  ;;  %p4438_p11 = por %p4437_p6, %p4436_p9 }
  0x36   : > { %p4432_p8 = pneg %p4431_p7 }
  0x38   : > { %p4439_p13 = pnand %p4438_p11, %p4432_p8 }
  0x3a   : > { %4442 = shalt.err (!%p4439_p13)
}
  0x3b   : > { %s4582_s29 = smov 576   ;;  %s4583_s8 = smov 36  }
  0x3c   : > { %3956 = dma.hbm_to_vmem [thread:$0]  (!%p4689_p12), %s6381_s4, 9216, %s4693_s18, [#allocation3], %s4582_s29, %s4582_s29, %s4583_s8  }
  0x3d   : > { %s4443_s20 = scalar_lea.hbm %s6382_s5, 1152 }
  0x3e   : > { %p4444_p6 = scmp.ne.s32.totalorder %s6382_s5, %s4443_s20  ;;  %p4450_p2 = scmp.lt.u32.totalorder %s4443_s20, %s6382_s5 }
  0x40   : > { %p4446_p9 = pnand %p4444_p6, %p4699_p0 }
  0x42   : > { %p4447_p1 = pneg %p4446_p9 }
  0x44   : > { %p4452_p3 = pnand %p4450_p2, %p4447_p1 }
  0x46   : > { %4455 = shalt.err (!%p4452_p3)
}
  0x47   : > { %s4456_s9 = scalar_lea.vmem %s263_s21, 1152  ;;  %p4464_p11 = scmp.lt.s32.totalorder %s263_s21, %s263_s21 }
  0x48   : > { %p4457_p4 = scmp.ne.s32.totalorder %s263_s21, %s4456_s9  ;;  %p4465_p13 = scmp.lt.s32.totalorder %s4456_s9, %s4456_s9 }
  0x4a   : > { %p4459_p7 = pnand %p4457_p4, %p4699_p0  ;;  %p4466_p5 = por %p4465_p13, %p4464_p11 }
  0x4c   : > { %p4460_p8 = pneg %p4459_p7 }
  0x4e   : > { %p4467_p10 = pnand %p4466_p5, %p4460_p8 }
  0x50   : > { %4470 = shalt.err (!%p4467_p10)
}
  0x51   : > { %3959 = dma.hbm_to_vmem [thread:$0]  (!%p4689_p12), %s6382_s5, 1152, %s263_s21, [#allocation8]  }
  0x52   : > { %p6464_p6 = scmp.ne.s32.totalorder %s6460_s13, 0 }
  0x54   : > { %299 = sbr.rel (%p6464_p6) target bundleno = 2199 (0x897), region = 44 }
  0x5b   : > { %p6465_p9 = scmp.eq.s32.totalorder %s4650_s28, 0 }
  0x5d   : > { %4544 = dma.done.wait (%p6465_p9), [#allocation5], 16   ;;  %p6466_p0 = pmov %p6465_p9 }
  0x5f   : > { %4546 = vsyncadd (%p6466_p0), [#allocation5], 4294967280  ;;  %p6467_p1 = pmov %p6466_p0 }
  0x60   : > { %p6468_p5 = pmov %p6466_p0 }
  0x61   : > { %4548 = dma.done.wait (%p6467_p1), [#allocation3], 9216  }
  0x62   : > { %4550 = vsyncadd (%p6468_p5), [#allocation3], 4294958080  ;;  %p6469_p10 = pmov %p6466_p0 }
  0x63   : > { %p6470_p12 = pmov %p6466_p0 }
  0x64   : > { %4552 = dma.done.wait (%p6469_p10), [#allocation8], 1152  }
  0x65   : > { %4554 = vsyncadd (%p6470_p12), [#allocation8], 4294966144 }
  0x66   : > { %313 = sfence }
  0x67   : > { %v4016_v0 = vld [vmem:[#allocation6 + $0x4] ss:$36 sps:$4 sm:$0xff]   ;;  %p355_p2 = scmp.lt.s32.totalorder %s4650_s28, 3  ;;  %v4584_v2 = vmov 0   ;;  %v4019_v3 = vld [vmem:[#allocation6 + $0x4c] ss:$36 sps:$4 sm:$0xff]   ;;  %v422_v58 = vlaneseq }
  0x68   : > { %v4018_v1 = vld [vmem:[#allocation6] ss:$36 sps:$4 sm:$0xff]   ;;  %746 = vmatprep.mubr.bf16.mxu0 %v4584_v2  ;;  %4014 = vset.pattern.permute.xlu0 %v4584_v2  ;;  %v4021_v4 = vld [vmem:[#allocation6 + $0x48] ss:$36 sps:$4 sm:$0xff]   ;;  %v4022_v5 = vld [vmem:[#allocation6 + $0x94] ss:$36 sps:$4 sm:$0xff]  }
  0x69   : > { %714 = vmatprep.subr.bf16.mxu0 %v4016_v0  ;;  %s4767_s0 = scalar_select %p355_p2, %s4650_s28, 3  ;;  %4015 = vset.pattern.permute.xlu1 %v4584_v2  ;;  %v4024_v6 = vld [vmem:[#allocation6 + $0x90] ss:$36 sps:$4 sm:$0xff]   ;;  %v4025_v7 = vld [vmem:[#allocation6 + $0xdc] ss:$36 sps:$4 sm:$0xff]   ;;  %v4818_v59 = vshrl.u32 %v422_v58, 7 }
  0x6a   : > { %715 = vmatpush1.bf16.msra.mxu0 %v4018_v1  ;;  %v4027_v8 = vld [vmem:[#allocation6 + $0xd8] ss:$36 sps:$4 sm:$0xff]   ;;  %v4028_v10 = vld [vmem:[#allocation6 + $0x124] ss:$36 sps:$4 sm:$0xff]   ;;  %v4044_v13 = vld [vmem:[#allocation6 + $0x50] ss:$36 sps:$4 sm:$0xff]  }
  0x6b   : > { %716 = vmatprep.subr.bf16.mxu0 %v4019_v3  ;;  %s3540_s10 = sshll.u32 %s4767_s0, 6  ;;  %v4030_v11 = vld [vmem:[#allocation6 + $0x120] ss:$36 sps:$4 sm:$0xff]   ;;  %v4043_v12 = vld [vmem:[#allocation6 + $0x8] ss:$36 sps:$4 sm:$0xff]   ;;  %s3542_s23 = sshll.u32 %s4767_s0, 7 }
  0x6c   : > { %s4776_s21 = scalar_lea.vmem %s6378_s1, %s3540_s10  ;;  %v4031_v14 = vld [vmem:[#allocation6 + $0x16c] ss:$36 sps:$4 sm:$0xff]   ;;  %3672 = vmatprep.subr.bf16.mxu1 %v4043_v12  ;;  %v4046_v15 = vld [vmem:[#allocation6 + $0x98] ss:$36 sps:$4 sm:$0xff]   ;;  %v4047_v18 = vld [vmem:[#allocation6 + $0xe0] ss:$36 sps:$4 sm:$0xff]   ;;  %s4783_s15 = scalar_lea.vmem %s6380_s3, %s3542_s23 }
  0x6d   : > { %v4040_v9 = vld [vmem:[%s4776_s21] sm:$0xff]   ;;  %3673 = vmatpush3.bf16.msra.mxu1 %v4043_v12  ;;  %v4033_v16 = vld [vmem:[#allocation6 + $0x168] ss:$36 sps:$4 sm:$0xff]   ;;  %v4034_v17 = vld [vmem:[#allocation6 + $0x1b4] ss:$36 sps:$4 sm:$0xff]   ;;  %6471 = vst [vmem:[#allocation18_spill] sm:$0xff] %v4818_v59  ;;  %s5183_s22 = scalar_lea.vmem %s6379_s2, %s3540_s10 }
  0x6e   : > { %717 = vmatpush1.bf16.msra.mxu0 %v4021_v4  ;;  %3688 = vmatprep.mubr.bf16.mxu1 %v4040_v9  ;;  %v4036_v19 = vld [vmem:[#allocation6 + $0x1b0] ss:$36 sps:$4 sm:$0xff]   ;;  %v4037_v20 = vld [vmem:[#allocation6 + $0x1fc] ss:$36 sps:$4 sm:$0xff]   ;;  %v4049_v21 = vld [vmem:[#allocation6 + $0x128] ss:$36 sps:$4 sm:$0xff]  }
  0x6f   : > { %718 = vmatprep.subr.bf16.mxu0 %v4022_v5  ;;  %3674 = vmatprep.subr.bf16.mxu1 %v4044_v13  ;;  %v403_v22 = vld [vmem:[%s4783_s15] sm:$0xff]  ;;  %v4039_v23 = vld [vmem:[#allocation6 + $0x1f8] ss:$36 sps:$4 sm:$0xff]   ;;  %v405_v24 = vld [vmem:[%s4783_s15 + $0x10] sm:$0xff]  ;;  %v525_v60 = vsub.s32 0, %v4818_v59  ;;  %v529_v62 = vsub.s32 1, %v4818_v59 }
  0x70   : > { %426 = vperm.xlu0 %4014, %v403_v22   ;;  %v404_v25 = vld [vmem:[%s4783_s15 + $0x8] sm:$0xff]  ;;  %432 = vperm.xlu1 %4015, %v405_v24   ;;  %v406_v26 = vld [vmem:[%s4783_s15 + $0x18] sm:$0xff]  ;;  %v4050_v27 = vld [vmem:[#allocation6 + $0x170] ss:$36 sps:$4 sm:$0xff]   ;;  %v4824_v0 = vand.u32 127, %v422_v58  ;;  %s3427_s16 = sld [smem:[#allocation2 + $0x1]] }
  0x71   : > { %3675 = vmatpush3.bf16.msra.mxu1 %v4044_v13  ;;  %v407_v28 = vld [vmem:[%s4783_s15 + $0x20] sm:$0xff]  ;;  %v408_v29 = vld [vmem:[%s4783_s15 + $0x28] sm:$0xff]  ;;  %v4052_v30 = vld [vmem:[#allocation6 + $0x1b8] ss:$36 sps:$4 sm:$0xff]   ;;  %s419_s9 = sld [smem:[#allocation2]]  ;;  %vm1181_vm6 = vcmask 7168  }
  0x72   : > { %719 = vmatpush1.bf16.msra.mxu0 %v4024_v6  ;;  %3676 = vmatprep.subr.bf16.mxu1 %v4046_v15  ;;  %v4041_v31 = vld [vmem:[%s4776_s21 + $0x8] sm:$0xff]   ;;  %v4053_v32 = vld [vmem:[#allocation6 + $0x200] ss:$36 sps:$4 sm:$0xff]   ;;  %v409_v33 = vld [vmem:[%s4783_s15 + $0x30] sm:$0xff]  ;;  %vm424_vm1 = vcmp.lt.s32.totalorder %v4824_v0, 4  ;;  %s3428_s18 = sld [smem:[#allocation2 + $0x2]] }
  0x73   : > { %720 = vmatprep.subr.bf16.mxu0 %v4025_v7  ;;  %v411_v34 = vld [vmem:[%s4783_s15 + $0x40] sm:$0xff]  ;;  %v410_v35 = vld [vmem:[%s4783_s15 + $0x38] sm:$0xff]  ;;  %v412_v36 = vld [vmem:[%s4783_s15 + $0x48] sm:$0xff]  ;;  %s5650_s29 = sand.u32 1, %s4569_s25   ;;  %s3543_s13 = sshll.u32 %s4650_s28, 11 }
  0x74   : > { %429 = vperm.xlu0 %4014, %v404_v25   ;;  %435 = vperm.xlu1 %4015, %v406_v26   ;;  %v4056_v37 = vld [vmem:[#allocation6 + $0xc] ss:$36 sps:$4 sm:$0xff]   ;;  %v414_v39 = vld [vmem:[%s4783_s15 + $0x58] sm:$0xff]  ;;  %v415_v42 = vld [vmem:[%s4783_s15 + $0x60] sm:$0xff]  ;;  %s3419_s0 = sshll.u32 %s5650_s29, 7  ;;  %s6298_s8 = scalar_lea.hbm %s6383_s6, %s3543_s13 }
  0x75   : > { %3677 = vmatpush3.bf16.msra.mxu1 %v4046_v15  ;;  %v413_v38 = vld [vmem:[%s4783_s15 + $0x50] sm:$0xff]  ;;  %v416_v43 = vld [vmem:[%s4783_s15 + $0x68] sm:$0xff]  ;;  %v4058_v44 = vld [vmem:[#allocation6 + $0x9c] ss:$36 sps:$4 sm:$0xff]   ;;  %s5675_s10 = scalar_lea.vmem [#allocation9], %s3419_s0  ;;  %s3226_s14 = scalar_lea.sflag [#allocation4], %s5650_s29 }
  0x76   : > { %721 = vmatpush1.bf16.msra.mxu0 %v4027_v8  ;;  %3678 = vmatprep.subr.bf16.mxu1 %v4047_v18  ;;  %v4042_v40 = vld [vmem:[%s4776_s21 + $0x10] sm:$0xff]   ;;  %v418_v46 = vld [vmem:[%s4783_s15 + $0x78] sm:$0xff]  ;;  %v4059_v48 = vld [vmem:[#allocation6 + $0xe4] ss:$36 sps:$4 sm:$0xff]   ;;  %s3244_s19 = sshll.u32 %s5675_s10, 4  ;;  %p6646_p4 = scmp.ne.s32.totalorder %s6458_s11, 0  ;;  %s6300_s19 = int_to_ptr.vmem [resolvable:$true] %s3244_s19 }
  0x77   : > { %722 = vmatprep.subr.bf16.mxu0 %v4028_v10  ;;  %v4057_v41 = vld [vmem:[#allocation6 + $0x54] ss:$36 sps:$4 sm:$0xff]   ;;  %v4048_v49 = vld [vmem:[%s4776_s21 + $0x20] sm:$0xff]   ;;  %v4051_v50 = vld [vmem:[%s4776_s21 + $0x28] sm:$0xff]   ;;  %s4585_s17 = smov [#allocation9]  }
  0x78   : > { %438 = vperm.xlu0 %4014, %v407_v28   ;;  %441 = vperm.xlu1 %4015, %v408_v29   ;;  %v417_v45 = vld [vmem:[%s4783_s15 + $0x70] sm:$0xff]  ;;  %v4045_v47 = vld [vmem:[%s4776_s21 + $0x18] sm:$0xff]   ;;  %v4063_v56 = vld [vmem:[#allocation6 + $0x204] ss:$36 sps:$4 sm:$0xff]   ;;  %s4471_s15 = scalar_lea.vmem %s6300_s19, 2048  ;;  %s4475_s20 = sshll.u32 %s4585_s17, 4  ;;  %s4476_s20 = int_to_ptr.vmem [resolvable:$false] %s4475_s20 }
  0x79   : > { %3679 = vmatpush3.bf16.msra.mxu1 %v4047_v18  ;;  %v4054_v51 = vld [vmem:[%s4776_s21 + $0x30] sm:$0xff]   ;;  %v4055_v52 = vld [vmem:[%s4776_s21 + $0x38] sm:$0xff]   ;;  %p4472_p3 = scmp.ne.s32.totalorder %s6300_s19, %s4471_s15  ;;  %p4478_p11 = scmp.lt.s32.totalorder %s6300_s19, %s4476_s20 }
  0x7a   : > { %723 = vmatpush1.bf16.msra.mxu0 %v4030_v11  ;;  %3680 = vmatprep.subr.bf16.mxu1 %v4049_v21  ;;  %v4060_v53 = vld [vmem:[#allocation6 + $0x12c] ss:$36 sps:$4 sm:$0xff]   ;;  %v4061_v54 = vld [vmem:[#allocation6 + $0x174] ss:$36 sps:$4 sm:$0xff]   ;;  %v4062_v55 = vld [vmem:[#allocation6 + $0x1bc] ss:$36 sps:$4 sm:$0xff]  }
  0x7b   : > { %724 = vmatprep.subr.bf16.mxu0 %v4031_v14  ;;  %v4815_v57 = vld [vmem:[#allocation6 + $0x10] ss:$36 sps:$4 sm:$0xff]   ;;  %p4473_p7 = pnand %p4472_p3, %p6646_p4 }
  0x7c   : > { %444 = vperm.xlu0 %4014, %v409_v33   ;;  %450 = vperm.xlu1 %4015, %v411_v34   ;;  %v521_v61 = vld [vmem:[#allocation7] ss:$8 sm:$0x7] }
  0x7d   : > { %3681 = vmatpush3.bf16.msra.mxu1 %v4049_v21  ;;  %v4826_v1 = vrot.slane %v521_v61, %v525_v60  ;;  %p4474_p8 = pneg %p4473_p7 }
  0x7e   : > { %725 = vmatpush1.bf16.msra.mxu0 %v4033_v16  ;;  %3682 = vmatprep.subr.bf16.mxu1 %v4050_v27 }
  0x7f   : > { %726 = vmatprep.subr.bf16.mxu0 %v4034_v17 }
  0x80   : > { %447 = vperm.xlu0 %4014, %v410_v35   ;;  %453 = vperm.xlu1 %4015, %v412_v36  }
  0x81   : > { %3683 = vmatpush3.bf16.msra.mxu1 %v4050_v27 }
  0x82   : > { %727 = vmatpush1.bf16.msra.mxu0 %v4036_v19  ;;  %3684 = vmatprep.subr.bf16.mxu1 %v4052_v30  ;;  %v533_v19 = vsub.s32 2, %v4818_v59 }
  0x83   : > { %728 = vmatprep.subr.bf16.mxu0 %v4037_v20 }
  0x84   : > { %456 = vperm.xlu0 %4014, %v413_v38   ;;  %459 = vperm.xlu1 %4015, %v414_v39  }
  0x85   : > { %3685 = vmatpush3.bf16.msra.mxu1 %v4052_v30  ;;  %v4886_v30 = vrot.slane %v521_v61, %v533_v19 }
  0x86   : > { %729 = vmatpush1.bf16.msra.mxu0 %v4039_v23  ;;  %3686 = vmatprep.subr.bf16.mxu1 %v4053_v32 }
  0x88   : > { %462 = vperm.xlu0 %4014, %v415_v42   ;;  %465 = vperm.xlu1 %4015, %v416_v43  }
  0x89   : > { %747 = vmatmul.mubr.bf16.vlgmr.msra.gmra.mrb[0].mxu0 %v4040_v9  ;;  %3687 = vmatpush3.bf16.msra.mxu1 %v4053_v32 }
  0x8a   : > { %756 = vmatprep.mubr.bf16.mxu0 %v4584_v2  ;;  %3704 = vmatprep.subr.bf16.mxu1 %v4056_v37 }
  0x8c   : > { %3689 = vmatmul.mubr.bf16.vlgmr.msra.gmra.mrb[0].mxu1 %v4041_v31  ;;  %468 = vperm.xlu0 %4014, %v417_v45  }
  0x8d   : > { %3692 = vmatprep.mubr.bf16.mxu1 %v4042_v40  ;;  %3705 = vmatpush3.bf16.msra.mxu1 %v4056_v37 }
  0x8e   : > { %3706 = vmatprep.subr.bf16.mxu1 %v4057_v41  ;;  %471 = vperm.xlu1 %4015, %v418_v46   ;;  %v4065_v46 = vld [vmem:[#allocation6 + $0x58] ss:$36 sps:$4 sm:$0xff]  }
  0x91   : > { %757 = vmatmul.mubr.bf16.gmra.mrb[4].mxu0 %v4041_v31  ;;  %3707 = vmatpush3.bf16.msra.mxu1 %v4057_v41 }
  0x92   : > { %766 = vmatprep.mubr.bf16.mxu0 %v4584_v2  ;;  %3708 = vmatprep.subr.bf16.mxu1 %v4058_v44 }
  0x94   : > { %3693 = vmatmul.mubr.bf16.gmra.mrb[4].mxu1 %v4045_v47 }
  0x95   : > { %3696 = vmatprep.mubr.bf16.mxu1 %v4048_v49  ;;  %3709 = vmatpush3.bf16.msra.mxu1 %v4058_v44 }
  0x96   : > { %3710 = vmatprep.subr.bf16.mxu1 %v4059_v48 }
  0x99   : > { %767 = vmatmul.mubr.bf16.gmra.mrb[8].mxu0 %v4042_v40  ;;  %3711 = vmatpush3.bf16.msra.mxu1 %v4059_v48 }
  0x9a   : > { %776 = vmatprep.mubr.bf16.mxu0 %v4584_v2  ;;  %3712 = vmatprep.subr.bf16.mxu1 %v4060_v53 }
  0x9c   : > { %3697 = vmatmul.mubr.bf16.gmra.mrb[8].mxu1 %v4051_v50 }
  0x9d   : > { %3700 = vmatprep.mubr.bf16.mxu1 %v4054_v51  ;;  %3713 = vmatpush3.bf16.msra.mxu1 %v4060_v53 }
  0x9e   : > { %3714 = vmatprep.subr.bf16.mxu1 %v4061_v54 }
  0xa1   : > { %777 = vmatmul.mubr.bf16.gmra.mrb[12].mxu0 %v4045_v47  ;;  %3715 = vmatpush3.bf16.msra.mxu1 %v4061_v54 }
  0xa2   : > { %786 = vmatprep.mubr.bf16.mxu0 %v4584_v2  ;;  %3716 = vmatprep.subr.bf16.mxu1 %v4062_v55 }
  0xa4   : > { %3701 = vmatmul.mubr.bf16.gmra.mrb[12].mxu1 %v4055_v52 }
  0xa5   : > { %3717 = vmatpush3.bf16.msra.mxu1 %v4062_v55 }
  0xa6   : > { %3718 = vmatprep.subr.bf16.mxu1 %v4063_v56 }
  0xa9   : > { %787 = vmatmul.mubr.bf16.gmra.mrb[16].mxu0 %v4048_v49  ;;  %3719 = vmatpush3.bf16.msra.mxu1 %v4063_v56  ;;  %v4066_v56 = vld [vmem:[#allocation6 + $0xa0] ss:$36 sps:$4 sm:$0xff]  }
  0xaa   : > { %796 = vmatprep.mubr.bf16.mxu0 %v4584_v2  ;;  %3768 = vmatprep.subr.bf16.mxu1 %v4815_v57 }
  0xb1   : > { %797 = vmatmul.mubr.bf16.gmra.mrb[20].mxu0 %v4051_v50 }
  0xb2   : > { %806 = vmatprep.mubr.bf16.mxu0 %v4584_v2 }
  0xb9   : > { %807 = vmatmul.mubr.bf16.gmra.mrb[24].mxu0 %v4054_v51 }
  0xba   : > { %816 = vmatprep.mubr.bf16.mxu0 %v4584_v2  ;;  %v4828_v2 = vrot.slane %v521_v61, %v529_v62 }
  0xc1   : > { %817 = vmatmul.mubr.bf16.gmra.mrb[28].mxu0 %v4055_v52 }
  0xef   : > { %v4822_v63 = vpop.permute.xlu0 %426  ;;  %v4855_v16 = vpop.permute.xlu1 %432 }
  0xf0   : > { %vm473_vm0 = vcmp.eq.s32.totalorder %v4824_v0, %v4822_v63  ;;  %vm475_vm3 = vcmp.eq.s32.totalorder %v4824_v0, %v4855_v16 }
  0xf3   : > { %v4836_v6 = vpop.permute.xlu0 %429  ;;  %v4890_v32 = vpop.permute.xlu1 %435 }
  0xf4   : > { %vm474_vm2 = vcmp.eq.s32.totalorder %v4824_v0, %v4836_v6  ;;  %vm476_vm4 = vcmp.eq.s32.totalorder %v4824_v0, %v4890_v32 }
  0xf7   : > { %v4897_v37 = vpop.permute.xlu0 %438 }
  0xf8   : > { %vm477_vm5 = vcmp.eq.s32.totalorder %v4824_v0, %v4897_v37 }
 0x15c   : > { %v748_v3 = vpop.f32.mrb[0].mxu0 }
 0x15d   : > { %v4834_v4 = vadd.f32 %v748_v3, %v4826_v1  ;;  %v750_v5 = vpop.f32.mrb[1].mxu0 }
 0x15e   : > { %v751_v7 = vadd.f32 %v750_v5, %v4828_v2  ;;  %v752_v8 = vpop.f32.mrb[2].mxu0 }
 0x15f   : > { %v4840_v9 = vadd.f32 %v752_v8, %v4826_v1  ;;  %v754_v10 = vpop.f32.mrb[3].mxu0  ;;  %v1117_v11 = vsel %vm473_vm0, %v4834_v4, 0.0  ;;  %v4849_v12 = vsel %vm424_vm1, %v4834_v4, -1e+30  ;;  %v3690_v35 = vpop.f32.mrb[0].mxu1 }
 0x160   : > { %v755_v13 = vadd.f32 %v754_v10, %v4828_v2  ;;  %1133 = vadd.xlane.f32.xlu0 %v1117_v11  ;;  %957 = vmax.xlane.f32.xlu1 %v4849_v12  ;;  %v1222_v14 = vmax.f32 %v751_v7, 0.0  ;;  %v870_v38 = vadd.f32 %v3690_v35, %v4886_v30  ;;  %v861_v39 = vpop.f32.mrb[1].mxu1 }
 0x161   : > { %v4860_v17 = vsel %vm424_vm1, %v4840_v9, -1e+30  ;;  %v1118_v18 = vsel %vm474_vm2, %v4840_v9, 0.0  ;;  %v862_v42 = vadd.f32 %v861_v39, %v4886_v30  ;;  %v3691_v43 = vpop.f32.mrb[2].mxu1 }
 0x162   : > { %v1223_v15 = vmax.f32 %v755_v13, 0.0  ;;  %v873_v47 = vadd.f32 %v3691_v43, %v4886_v30  ;;  %v864_v48 = vpop.f32.mrb[3].mxu1  ;;  %4112 = vtanh.f32 %v870_v38 }
 0x163   : > { %v865_v51 = vadd.f32 %v864_v48, %v4886_v30  ;;  %4114 = vtanh.f32 %v862_v42 }
 0x164   : > { %v1238_v20 = vpack.c.bf16 %v1223_v15, %v1222_v14  ;;  %v758_v21 = vpop.f32.mrb[4].mxu0  ;;  %959 = vmax.xlane.f32.xlu0 %v4860_v17  ;;  %1135 = vadd.xlane.f32.xlu1 %v1118_v18  ;;  %4116 = vtanh.f32 %v873_v47  ;;  %v4067_v15 = vld [vmem:[#allocation6 + $0xe8] ss:$36 sps:$4 sm:$0xff]  }
 0x165   : > { %v4871_v22 = vadd.f32 %v758_v21, %v4826_v1  ;;  %v760_v23 = vpop.f32.mrb[5].mxu0  ;;  %4118 = vtanh.f32 %v865_v51 }
 0x166   : > { %v761_v24 = vadd.f32 %v760_v23, %v4828_v2  ;;  %v762_v25 = vpop.f32.mrb[6].mxu0  ;;  %3720 = vmatprep.mubr.bf16.mxu1 %v1238_v20 }
 0x167   : > { %v4875_v26 = vadd.f32 %v762_v25, %v4826_v1  ;;  %v764_v27 = vpop.f32.mrb[7].mxu0  ;;  %v4880_v28 = vsel %vm424_vm1, %v4871_v22, -1e+30  ;;  %v1119_v29 = vsel %vm475_vm3, %v4871_v22, 0.0  ;;  %v3694_v61 = vpop.f32.mrb[4].mxu1 }
 0x168   : > { %v765_v31 = vadd.f32 %v764_v27, %v4828_v2  ;;  %961 = vmax.xlane.f32.xlu0 %v4880_v28  ;;  %1137 = vadd.xlane.f32.xlu1 %v1119_v29  ;;  %v1224_v33 = vmax.f32 %v761_v24, 0.0  ;;  %v886_v3 = vadd.f32 %v3694_v61, %v4886_v30  ;;  %v877_v5 = vpop.f32.mrb[5].mxu1 }
 0x169   : > { %v4895_v36 = vsel %vm424_vm1, %v4875_v26, -1e+30  ;;  %v1120_v54 = vsel %vm476_vm4, %v4875_v26, 0.0  ;;  %v878_v10 = vadd.f32 %v877_v5, %v4886_v30  ;;  %v3695_v11 = vpop.f32.mrb[6].mxu1 }
 0x16a   : > { %v1225_v34 = vmax.f32 %v765_v31, 0.0  ;;  %4120 = vtanh.f32 %v886_v3  ;;  %v889_v18 = vadd.f32 %v3695_v11, %v4886_v30  ;;  %v880_v19 = vpop.f32.mrb[7].mxu1 }
 0x16b   : > { %4122 = vtanh.f32 %v878_v10  ;;  %v881_v23 = vadd.f32 %v880_v19, %v4886_v30 }
 0x16c   : > { %v1239_v40 = vpack.c.bf16 %v1225_v34, %v1224_v33  ;;  %v768_v41 = vpop.f32.mrb[8].mxu0  ;;  %963 = vmax.xlane.f32.xlu1 %v4895_v36  ;;  %4124 = vtanh.f32 %v889_v18  ;;  %v4952_v31 = vpop.eup %4112  ;;  %v4068_v34 = vld [vmem:[#allocation6 + $0x130] ss:$36 sps:$4 sm:$0xff]  }
 0x16d   : > { %v4905_v44 = vadd.f32 %v768_v41, %v4826_v1  ;;  %v770_v45 = vpop.f32.mrb[9].mxu0  ;;  %4126 = vtanh.f32 %v881_v23  ;;  %v4957_v35 = vpop.eup %4114 }
 0x16e   : > { %v771_v49 = vadd.f32 %v770_v45, %v4828_v2  ;;  %v772_v50 = vpop.f32.mrb[10].mxu0  ;;  %3721 = vmatmul.mubr.bf16.vlgmr.msra.gmra.mrb[16].mxu1 %v1239_v40  ;;  %v4959_v38 = vpop.eup %4116 }
 0x16f   : > { %v774_v52 = vpop.f32.mrb[11].mxu0  ;;  %v4913_v53 = vsel %vm424_vm1, %v4905_v44, -1e+30  ;;  %3769 = vmatpush3.bf16.msra.mxu1 %v4815_v57  ;;  %v4925_v62 = vadd.f32 %v772_v50, %v4826_v1  ;;  %v1121_v57 = vsel %vm477_vm5, %v4905_v44, 0.0  ;;  %v3698_v41 = vpop.f32.mrb[8].mxu1 }
 0x170   : > { %v775_v55 = vadd.f32 %v774_v52, %v4828_v2  ;;  %965 = vmax.xlane.f32.xlu0 %v4913_v53  ;;  %1139 = vadd.xlane.f32.xlu1 %v1120_v54  ;;  %v1226_v58 = vmax.f32 %v771_v49, 0.0  ;;  %v4961_v42 = vpop.eup %4118  ;;  %v902_v45 = vadd.f32 %v3698_v41, %v4886_v30  ;;  %v4069_v50 = vld [vmem:[#allocation6 + $0x178] ss:$36 sps:$4 sm:$0xff]  }
 0x171   : > { %3770 = vmatprep.subr.bf16.mxu1 %v4065_v46  ;;  %6472 = vst [vmem:[#allocation19_spill] sm:$0xff] %v4925_v62  ;;  %v4950_v29 = vsel %vm424_vm1, %v4925_v62, -1e+30 }
 0x172   : > { %v1227_v60 = vmax.f32 %v775_v55, 0.0  ;;  %4128 = vtanh.f32 %v902_v45 }
 0x173   : > { %3771 = vmatpush3.bf16.msra.mxu1 %v4065_v46  ;;  %v893_v46 = vpop.f32.mrb[9].mxu1 }
 0x174   : > { %v1240_v7 = vpack.c.bf16 %v1227_v60, %v1226_v58  ;;  %v778_v8 = vpop.f32.mrb[12].mxu0  ;;  %1141 = vadd.xlane.f32.xlu1 %v1121_v57  ;;  %3772 = vmatprep.subr.bf16.mxu1 %v4066_v56  ;;  %v894_v51 = vadd.f32 %v893_v46, %v4886_v30  ;;  %v3699_v52 = vpop.f32.mrb[10].mxu1  ;;  %v4071_v46 = vld [vmem:[#allocation6 + $0x208] ss:$36 sps:$4 sm:$0xff]  }
 0x175   : > { %v4934_v13 = vadd.f32 %v778_v8, %v4826_v1  ;;  %v780_v14 = vpop.f32.mrb[13].mxu0  ;;  %v905_v58 = vadd.f32 %v3699_v52, %v4886_v30  ;;  %v896_v60 = vpop.f32.mrb[11].mxu1 }
 0x176   : > { %v781_v20 = vadd.f32 %v780_v14, %v4828_v2  ;;  %v782_v21 = vpop.f32.mrb[14].mxu0  ;;  %3724 = vmatprep.mubr.bf16.mxu1 %v1240_v7  ;;  %4130 = vtanh.f32 %v894_v51  ;;  %v897_v3 = vadd.f32 %v896_v60, %v4886_v30  ;;  %v4981_v5 = vpop.eup %4120 }
 0x177   : > { %6473 = vst [vmem:[#allocation20_spill] sm:$0xff] %v4934_v13  ;;  %v4940_v24 = vadd.f32 %v782_v21, %v4826_v1  ;;  %v784_v25 = vpop.f32.mrb[15].mxu0  ;;  %v4945_v27 = vsel %vm424_vm1, %v4934_v13, -1e+30  ;;  %3773 = vmatpush3.bf16.msra.mxu1 %v4066_v56  ;;  %4132 = vtanh.f32 %v905_v58  ;;  %v4991_v11 = vpop.eup %4122 }
 0x178   : > { %v785_v33 = vadd.f32 %v784_v25, %v4828_v2  ;;  %969 = vmax.xlane.f32.xlu0 %v4945_v27  ;;  %967 = vmax.xlane.f32.xlu1 %v4950_v29  ;;  %v1228_v39 = vmax.f32 %v781_v20, 0.0  ;;  %4134 = vtanh.f32 %v897_v3  ;;  %v4995_v18 = vpop.eup %4124  ;;  %v3702_v25 = vpop.f32.mrb[12].mxu1 }
 0x179   : > { %6474 = vst [vmem:[#allocation21_spill] sm:$0xff] %v4940_v24  ;;  %3774 = vmatprep.subr.bf16.mxu1 %v4067_v15  ;;  %v4966_v43 = vsel %vm424_vm1, %v4940_v24, -1e+30  ;;  %v5002_v20 = vpop.eup %4126 }
 0x17a   : > { %v1229_v40 = vmax.f32 %v785_v33, 0.0 }
 0x17b   : > { %3775 = vmatpush3.bf16.msra.mxu1 %v4067_v15  ;;  %v4070_v15 = vld [vmem:[#allocation6 + $0x1c0] ss:$36 sps:$4 sm:$0xff]  }
 0x17c   : > { %v1241_v48 = vpack.c.bf16 %v1229_v40, %v1228_v39  ;;  %v788_v49 = vpop.f32.mrb[16].mxu0  ;;  %971 = vmax.xlane.f32.xlu1 %v4966_v43  ;;  %3776 = vmatprep.subr.bf16.mxu1 %v4068_v34  ;;  %v909_v39 = vpop.f32.mrb[13].mxu1 }
 0x17d   : > { %v4976_v55 = vadd.f32 %v788_v49, %v4826_v1  ;;  %v790_v56 = vpop.f32.mrb[17].mxu0  ;;  %v3703_v49 = vpop.f32.mrb[14].mxu1 }
 0x17e   : > { %v791_v61 = vadd.f32 %v790_v56, %v4828_v2  ;;  %v792_v57 = vpop.f32.mrb[18].mxu0  ;;  %3725 = vmatmul.mubr.bf16.gmra.mrb[20].mxu1 %v1241_v48  ;;  %v910_v48 = vadd.f32 %v909_v39, %v4886_v30  ;;  %v912_v56 = vpop.f32.mrb[15].mxu1 }
 0x17f   : > { %6475 = vst [vmem:[#allocation22_spill] sm:$0xff] %v4976_v55  ;;  %v4984_v7 = vadd.f32 %v792_v57, %v4826_v1  ;;  %v794_v8 = vpop.f32.mrb[19].mxu0  ;;  %v4989_v10 = vsel %vm424_vm1, %v4976_v55, -1e+30  ;;  %3777 = vmatpush3.bf16.msra.mxu1 %v4068_v34  ;;  %v918_v34 = vadd.f32 %v3702_v25, %v4886_v30  ;;  %v5017_v57 = vpop.eup %4128 }
 0x180   : > { %v795_v14 = vadd.f32 %v794_v8, %v4828_v2  ;;  %973 = vmax.xlane.f32.xlu0 %v4989_v10  ;;  %3778 = vmatprep.subr.bf16.mxu1 %v4069_v50  ;;  %v1230_v21 = vmax.f32 %v791_v61, 0.0  ;;  %v913_v61 = vadd.f32 %v912_v56, %v4886_v30 }
 0x181   : > { %6476 = vst [vmem:[#allocation23_spill] sm:$0xff] %v4984_v7  ;;  %v5000_v19 = vsel %vm424_vm1, %v4984_v7, -1e+30  ;;  %4136 = vtanh.f32 %v918_v34 }
 0x182   : > { %v1231_v23 = vmax.f32 %v795_v14, 0.0  ;;  %975 = vmax.xlane.f32.xlu1 %v5000_v19  ;;  %4138 = vtanh.f32 %v910_v48 }
 0x183   : > { %3779 = vmatpush3.bf16.msra.mxu1 %v4069_v50  ;;  %v921_v50 = vadd.f32 %v3703_v49, %v4886_v30 }
 0x184   : > { %v1242_v41 = vpack.c.bf16 %v1231_v23, %v1230_v21  ;;  %v798_v45 = vpop.f32.mrb[20].mxu0  ;;  %3780 = vmatprep.subr.bf16.mxu1 %v4070_v15  ;;  %v5027_v21 = vpop.eup %4130 }
 0x185   : > { %v5012_v51 = vadd.f32 %v798_v45, %v4826_v1  ;;  %v800_v52 = vpop.f32.mrb[21].mxu0  ;;  %4140 = vtanh.f32 %v921_v50  ;;  %v5031_v30 = vpop.eup %4132 }
 0x186   : > { %v801_v58 = vadd.f32 %v800_v52, %v4828_v2  ;;  %v802_v60 = vpop.f32.mrb[22].mxu0  ;;  %3728 = vmatprep.mubr.bf16.mxu1 %v1242_v41  ;;  %4142 = vtanh.f32 %v913_v61  ;;  %v4135_v34 = vpop.eup %4134 }
 0x187   : > { %6477 = vst [vmem:[#allocation24_spill] sm:$0xff] %v5012_v51  ;;  %v5020_v3 = vadd.f32 %v802_v60, %v4826_v1  ;;  %v804_v8 = vpop.f32.mrb[23].mxu0  ;;  %v5025_v14 = vsel %vm424_vm1, %v5012_v51, -1e+30  ;;  %3781 = vmatpush3.bf16.msra.mxu1 %v4070_v15  ;;  %v1912_v15 = vpack.c.bf16 %v5031_v30, %v5017_v57  ;;  %v1911_v45 = vpack.c.bf16 %v4135_v34, %v5027_v21 }
 0x188   : > { %v805_v23 = vadd.f32 %v804_v8, %v4828_v2  ;;  %977 = vmax.xlane.f32.xlu0 %v5025_v14  ;;  %3782 = vmatprep.subr.bf16.mxu1 %v4071_v46  ;;  %v1232_v39 = vmax.f32 %v801_v58, 0.0 }
 0x189   : > { %6478 = vst [vmem:[#allocation25_spill] sm:$0xff] %v5020_v3  ;;  %v5036_v25 = vsel %vm424_vm1, %v5020_v3, -1e+30 }
 0x18a   : > { %v1233_v41 = vmax.f32 %v805_v23, 0.0  ;;  %979 = vmax.xlane.f32.xlu1 %v5036_v25 }
 0x18b   : > { %3783 = vmatpush3.bf16.msra.mxu1 %v4071_v46  ;;  %v4137_v58 = vpop.eup %4136 }
 0x18c   : > { %v1243_v48 = vpack.c.bf16 %v1233_v41, %v1232_v39  ;;  %v808_v49 = vpop.f32.mrb[24].mxu0  ;;  %v4139_v57 = vpop.eup %4138 }
 0x18d   : > { %v5043_v52 = vadd.f32 %v808_v49, %v4826_v1  ;;  %v810_v50 = vpop.f32.mrb[25].mxu0 }
 0x18e   : > { %v811_v56 = vadd.f32 %v810_v50, %v4828_v2  ;;  %v812_v60 = vpop.f32.mrb[26].mxu0  ;;  %3729 = vmatmul.mubr.bf16.gmra.mrb[24].mxu1 %v1243_v48 }
 0x18f   : > { %6479 = vst [vmem:[#allocation26_spill] sm:$0xff] %v5043_v52  ;;  %v5047_v61 = vadd.f32 %v812_v60, %v4826_v1  ;;  %v814_v8 = vpop.f32.mrb[27].mxu0  ;;  %v5052_v46 = vsel %vm424_vm1, %v5043_v52, -1e+30  ;;  %v4141_v23 = vpop.eup %4140 }
 0x190   : > { %v815_v21 = vadd.f32 %v814_v8, %v4828_v2  ;;  %981 = vmax.xlane.f32.xlu0 %v5052_v46  ;;  %v4143_v34 = vpop.eup %4142  ;;  %v1234_v39 = vmax.f32 %v811_v56, 0.0  ;;  %v1914_v48 = vpack.c.bf16 %v4141_v23, %v4137_v58 }
 0x191   : > { %6480 = vst [vmem:[#allocation27_spill] sm:$0xff] %v5047_v61  ;;  %v5059_v30 = vsel %vm424_vm1, %v5047_v61, -1e+30  ;;  %v1913_v49 = vpack.c.bf16 %v4143_v34, %v4139_v57  ;;  %v4072_v34 = vld [vmem:[#allocation6 + $0x14] ss:$36 sps:$4 sm:$0xff]  }
 0x192   : > { %6481 = vst [vmem:[#allocation28_spill] sm:$0xff] %v5059_v30  ;;  %v1235_v41 = vmax.f32 %v815_v21, 0.0  ;;  %983 = vmax.xlane.f32.xlu1 %v5059_v30  ;;  %3736 = vmatprep.subr.bf16.mxu0 %v4072_v34 }
 0x193   : > { %3737 = vmatpush3.bf16.msra.mxu0 %v4072_v34 }
 0x194   : > { %v1244_v50 = vpack.c.bf16 %v1235_v41, %v1234_v39  ;;  %v818_v60 = vpop.f32.mrb[28].mxu0  ;;  %v4074_v39 = vld [vmem:[#allocation6 + $0xa4] ss:$36 sps:$4 sm:$0xff]   ;;  %v6489_v41 = vpack.c.bf16 %v4995_v18, %v4981_v5  ;;  %v4079_v5 = vld [vmem:[#allocation6 + $0x20c] ss:$36 sps:$4 sm:$0xff]   ;;  %v5096_v18 = vpop.permute.xlu0 %444 }
 0x195   : > { %v5063_v33 = vadd.f32 %v818_v60, %v4826_v1  ;;  %v820_v8 = vpop.f32.mrb[29].mxu0  ;;  %6491 = vst [vmem:[#allocation34_spill] sm:$0xff] %v5096_v18 }
 0x196   : > { %v821_v40 = vadd.f32 %v820_v8, %v4828_v2  ;;  %v822_v47 = vpop.f32.mrb[30].mxu0  ;;  %3732 = vmatprep.mubr.bf16.mxu1 %v1244_v50 }
 0x197   : > { %6482 = vst [vmem:[#allocation29_spill] sm:$0xff] %v5063_v33  ;;  %v5067_v54 = vadd.f32 %v822_v47, %v4826_v1  ;;  %v824_v59 = vpop.f32.mrb[31].mxu0  ;;  %v5072_v56 = vsel %vm424_vm1, %v5063_v33, -1e+30  ;;  %v6486_v47 = vpack.c.bf16 %v4961_v42, %v4957_v35  ;;  %v4075_v35 = vld [vmem:[#allocation6 + $0xec] ss:$36 sps:$4 sm:$0xff]  }
 0x198   : > { %6484 = vst [vmem:[#allocation31_spill] sm:$0xff] %v5072_v56  ;;  %v825_v58 = vadd.f32 %v824_v59, %v4828_v2  ;;  %985 = vmax.xlane.f32.xlu0 %v5072_v56  ;;  %v1236_v21 = vmax.f32 %v821_v40, 0.0  ;;  %v6487_v59 = vpack.c.bf16 %v4959_v38, %v4952_v31  ;;  %v6488_v2 = vpack.c.bf16 %v5002_v20, %v4991_v11  ;;  %v4073_v40 = vld [vmem:[#allocation6 + $0x5c] ss:$36 sps:$4 sm:$0xff]   ;;  %v4076_v31 = vld [vmem:[#allocation6 + $0x134] ss:$36 sps:$4 sm:$0xff]   ;;  %v5094_v11 = vpop.permute.xlu1 %441 }
 0x199   : > { %6483 = vst [vmem:[#allocation30_spill] sm:$0xff] %v5067_v54  ;;  %v5079_v57 = vsel %vm424_vm1, %v5067_v54, -1e+30  ;;  %3738 = vmatprep.subr.bf16.mxu0 %v4073_v40  ;;  %v4077_v38 = vld [vmem:[#allocation6 + $0x17c] ss:$36 sps:$4 sm:$0xff]   ;;  %6490 = vst [vmem:[#allocation33_spill] sm:$0xff] %v5094_v11 }
 0x19a   : > { %6485 = vst [vmem:[#allocation32_spill] sm:$0xff] %v5079_v57  ;;  %v1237_v23 = vmax.f32 %v825_v58, 0.0  ;;  %987 = vmax.xlane.f32.xlu1 %v5079_v57  ;;  %3739 = vmatpush3.bf16.msra.mxu0 %v4073_v40  ;;  %v4078_v42 = vld [vmem:[#allocation6 + $0x1c4] ss:$36 sps:$4 sm:$0xff]  }
 0x19b   : > { %3740 = vmatprep.subr.bf16.mxu0 %v4074_v39 }
 0x19c   : > { %v1245_v1 = vpack.c.bf16 %v1237_v23, %v1236_v21  ;;  %v5098_v20 = vpop.permute.xlu1 %450 }
 0x19d   : > { %6492 = vst [vmem:[#allocation35_spill] sm:$0xff] %v5098_v20 }
 0x19e   : > { %3733 = vmatmul.mubr.bf16.gmra.mrb[28].mxu1 %v1245_v1  ;;  %3741 = vmatpush3.bf16.msra.mxu0 %v4074_v39 }
 0x19f   : > { %3784 = vmatprep.mubr.bf16.mxu1 %v6486_v47  ;;  %3742 = vmatprep.subr.bf16.mxu0 %v4075_v35 }
 0x1a2   : > { %3743 = vmatpush3.bf16.msra.mxu0 %v4075_v35 }
 0x1a3   : > { %3744 = vmatprep.subr.bf16.mxu0 %v4076_v31 }
 0x1a6   : > { %3785 = vmatmul.mubr.bf16.vlgmr.msra.gmra.mrb[32].mxu1 %v6487_v59  ;;  %3745 = vmatpush3.bf16.msra.mxu0 %v4076_v31 }
 0x1a7   : > { %3788 = vmatprep.mubr.bf16.mxu1 %v6488_v2  ;;  %3746 = vmatprep.subr.bf16.mxu0 %v4077_v38 }
 0x1aa   : > { %3747 = vmatpush3.bf16.msra.mxu0 %v4077_v38 }
 0x1ab   : > { %3748 = vmatprep.subr.bf16.mxu0 %v4078_v42 }
 0x1ae   : > { %3789 = vmatmul.mubr.bf16.gmra.mrb[36].mxu1 %v6489_v41  ;;  %3749 = vmatpush3.bf16.msra.mxu0 %v4078_v42 }
 0x1af   : > { %3792 = vmatprep.mubr.bf16.mxu1 %v1911_v45  ;;  %3750 = vmatprep.subr.bf16.mxu0 %v4079_v5  ;;  %v5102_v45 = vpop.permute.xlu1 %453 }
 0x1b0   : > { %6494 = vst [vmem:[#allocation37_spill] sm:$0xff] %v5102_v45 }
 0x1b2   : > { %3751 = vmatpush3.bf16.msra.mxu0 %v4079_v5 }
 0x1b6   : > { %3793 = vmatmul.mubr.bf16.gmra.mrb[40].mxu1 %v1912_v15  ;;  %v5100_v15 = vpop.permute.xlu0 %447 }
 0x1b7   : > { %3796 = vmatprep.mubr.bf16.mxu1 %v1913_v49  ;;  %6493 = vst [vmem:[#allocation36_spill] sm:$0xff] %v5100_v15 }
 0x1ba   : > { %v5104_v49 = vpop.permute.xlu0 %456 }
 0x1bb   : > { %6495 = vst [vmem:[#allocation38_spill] sm:$0xff] %v5104_v49 }
 0x1be   : > { %3797 = vmatmul.mubr.bf16.gmra.mrb[44].mxu1 %v1914_v48  ;;  %v5106_v48 = vpop.permute.xlu1 %459  ;;  %v5108_v50 = vpop.permute.xlu0 %462 }
 0x1bf   : > { %6496 = vst [vmem:[#allocation39_spill] sm:$0xff] %v5106_v48  ;;  %6497 = vst [vmem:[#allocation40_spill] sm:$0xff] %v5108_v50 }
 0x1c2   : > { %v5110_v60 = vpop.permute.xlu1 %465  ;;  %v5112_v8 = vpop.permute.xlu0 %468 }
 0x1c3   : > { %6498 = vst [vmem:[#allocation41_spill] sm:$0xff] %v5110_v60  ;;  %6499 = vst [vmem:[#allocation42_spill] sm:$0xff] %v5112_v8 }
 0x1c6   : > { %v5114_v58 = vpop.permute.xlu1 %471 }
 0x1c7   : > { %6500 = vst [vmem:[#allocation43_spill] sm:$0xff] %v5114_v58 }
 0x1ed   : > { %v5116_v21 = vpop.xlane.xlu0 %1133  ;;  %v5118_v23 = vpop.xlane.xlu1 %957 }
 0x1ee   : > { %6501 = vst [vmem:[#allocation44_spill] sm:$0xff] %v5116_v21  ;;  %6502 = vst [vmem:[#allocation45_spill] sm:$0xff] %v5118_v23  ;;  %v989_v1 = vsub.f32 %v4849_v12, %v5118_v23  ;;  %v4080_v21 = vld [vmem:[%s5183_s22] sm:$0xff]  }
 0x1f0   : > { %v1005_v47 = vmul.f32 1.442695, %v989_v1 }
 0x1f1   : > { %v5122_v59 = vpop.xlane.xlu0 %959  ;;  %v5124_v2 = vpop.xlane.xlu1 %1135 }
 0x1f2   : > { %6503 = vst [vmem:[#allocation46_spill] sm:$0xff] %v5122_v59  ;;  %6504 = vst [vmem:[#allocation47_spill] sm:$0xff] %v5124_v2  ;;  %4144 = vpow2.f32 %v1005_v47  ;;  %v990_v34 = vsub.f32 %v4860_v17, %v5122_v59 }
 0x1f4   : > { %v1007_v40 = vmul.f32 1.442695, %v990_v34 }
 0x1f5   : > { %v5128_v39 = vpop.xlane.xlu0 %961  ;;  %v5130_v41 = vpop.xlane.xlu1 %1137 }
 0x1f6   : > { %6505 = vst [vmem:[#allocation48_spill] sm:$0xff] %v5128_v39  ;;  %6506 = vst [vmem:[#allocation49_spill] sm:$0xff] %v5130_v41  ;;  %4146 = vpow2.f32 %v1007_v40  ;;  %v991_v35 = vsub.f32 %v4880_v28, %v5128_v39  ;;  %v5231_v41 = vld [vmem:[#allocation7 + $0x20] ss:$0 sm:$0xff] }
 0x1f8   : > { %v1009_v31 = vmul.f32 1.442695, %v991_v35 }
 0x1f9   : > { %v5134_v12 = vpop.xlane.xlu1 %963 }
 0x1fa   : > { %6507 = vst [vmem:[#allocation50_spill] sm:$0xff] %v5134_v12  ;;  %4148 = vpow2.f32 %v1009_v31  ;;  %v992_v38 = vsub.f32 %v4895_v36, %v5134_v12 }
 0x1fc   : > { %v4145_v42 = vpop.eup %4144  ;;  %v1011_v5 = vmul.f32 1.442695, %v992_v38 }
 0x1fd   : > { %v5138_v1 = vpop.xlane.xlu0 %965  ;;  %1037 = vadd.xlane.f32.xlu0 %v4145_v42  ;;  %v5140_v17 = vpop.xlane.xlu1 %1139 }
 0x1fe   : > { %6508 = vst [vmem:[#allocation51_spill] sm:$0xff] %v5138_v1  ;;  %6509 = vst [vmem:[#allocation52_spill] sm:$0xff] %v5140_v17  ;;  %4150 = vpow2.f32 %v1011_v5  ;;  %v993_v47 = vsub.f32 %v4913_v53, %v5138_v1 }
 0x200   : > { %v4147_v34 = vpop.eup %4146  ;;  %v1013_v28 = vmul.f32 1.442695, %v993_v47 }
 0x201   : > { %1039 = vadd.xlane.f32.xlu1 %v4147_v34  ;;  %v5144_v40 = vpop.xlane.xlu1 %1141 }
 0x202   : > { %6510 = vst [vmem:[#allocation53_spill] sm:$0xff] %v5144_v40  ;;  %4152 = vpow2.f32 %v1013_v28 }
 0x204   : > { %v4149_v35 = vpop.eup %4148 }
 0x205   : > { %v5146_v31 = vpop.xlane.xlu0 %969  ;;  %1041 = vadd.xlane.f32.xlu1 %v4149_v35  ;;  %v5148_v36 = vpop.xlane.xlu1 %967 }
 0x206   : > { %6511 = vst [vmem:[#allocation54_spill] sm:$0xff] %v5146_v31  ;;  %6512 = vst [vmem:[#allocation55_spill] sm:$0xff] %v5148_v36  ;;  %v995_v38 = vsub.f32 %v4945_v27, %v5146_v31  ;;  %v994_v42 = vsub.f32 %v4950_v29, %v5148_v36 }
 0x208   : > { %v4151_v5 = vpop.eup %4150  ;;  %v1017_v53 = vmul.f32 1.442695, %v995_v38  ;;  %v1015_v58 = vmul.f32 1.442695, %v994_v42 }
 0x209   : > { %1043 = vadd.xlane.f32.xlu0 %v4151_v5  ;;  %v5154_v47 = vpop.xlane.xlu1 %971 }
 0x20a   : > { %6513 = vst [vmem:[#allocation56_spill] sm:$0xff] %v5154_v47  ;;  %4154 = vpow2.f32 %v1017_v53  ;;  %v996_v34 = vsub.f32 %v4966_v43, %v5154_v47 }
 0x20b   : > { %4156 = vpow2.f32 %v1015_v58 }
 0x20c   : > { %v4153_v28 = vpop.eup %4152  ;;  %v1019_v35 = vmul.f32 1.442695, %v996_v34 }
 0x20d   : > { %v5158_v8 = vpop.xlane.xlu0 %973  ;;  %1045 = vadd.xlane.f32.xlu1 %v4153_v28 }
 0x20e   : > { %6514 = vst [vmem:[#allocation57_spill] sm:$0xff] %v5158_v8  ;;  %4158 = vpow2.f32 %v1019_v35  ;;  %v997_v27 = vsub.f32 %v4989_v10, %v5158_v8 }
 0x20f   : > { %v5162_v29 = vpop.xlane.xlu1 %975 }
 0x210   : > { %6515 = vst [vmem:[#allocation58_spill] sm:$0xff] %v5162_v29  ;;  %v1021_v38 = vmul.f32 1.442695, %v997_v27  ;;  %v998_v42 = vsub.f32 %v5000_v19, %v5162_v29 }
 0x212   : > { %4160 = vpow2.f32 %v1021_v38  ;;  %v1023_v5 = vmul.f32 1.442695, %v998_v42 }
 0x214   : > { %v4155_v53 = vpop.eup %4154  ;;  %4162 = vpow2.f32 %v1023_v5 }
 0x215   : > { %v4157_v43 = vpop.eup %4156  ;;  %v5166_v58 = vpop.xlane.xlu0 %977  ;;  %1049 = vadd.xlane.f32.xlu1 %v4155_v53 }
 0x216   : > { %6516 = vst [vmem:[#allocation59_spill] sm:$0xff] %v5166_v58  ;;  %v999_v34 = vsub.f32 %v5025_v14, %v5166_v58  ;;  %1047 = vadd.xlane.f32.xlu0 %v4157_v43 }
 0x217   : > { %v5170_v28 = vpop.xlane.xlu1 %979 }
 0x218   : > { %6517 = vst [vmem:[#allocation60_spill] sm:$0xff] %v5170_v28  ;;  %v4159_v10 = vpop.eup %4158  ;;  %v1025_v35 = vmul.f32 1.442695, %v999_v34  ;;  %v1000_v27 = vsub.f32 %v5036_v25, %v5170_v28 }
 0x21a   : > { %4164 = vpow2.f32 %v1025_v35  ;;  %v1027_v19 = vmul.f32 1.442695, %v1000_v27  ;;  %1051 = vadd.xlane.f32.xlu0 %v4159_v10  ;;  %v1262_v35 = vld [vmem:[#allocation7 + $0x18] ss:$0 sm:$0xff] }
 0x21c   : > { %v4161_v38 = vpop.eup %4160  ;;  %4166 = vpow2.f32 %v1027_v19 }
 0x21d   : > { %v5174_v42 = vpop.xlane.xlu0 %981  ;;  %1053 = vadd.xlane.f32.xlu1 %v4161_v38 }
 0x21e   : > { %6518 = vst [vmem:[#allocation61_spill] sm:$0xff] %v5174_v42  ;;  %v4163_v5 = vpop.eup %4162  ;;  %v1001_v14 = vsub.f32 %v5052_v46, %v5174_v42 }
 0x21f   : > { %1055 = vadd.xlane.f32.xlu0 %v4163_v5 }
 0x220   : > { %v1029_v53 = vmul.f32 1.442695, %v1001_v14 }
 0x222   : > { %4168 = vpow2.f32 %v1029_v53 }
 0x224   : > { %v4165_v43 = vpop.eup %4164 }
 0x225   : > { %1057 = vadd.xlane.f32.xlu0 %v4165_v43 }
 0x226   : > { %v4167_v34 = vpop.eup %4166 }
 0x229   : > { %1059 = vadd.xlane.f32.xlu0 %v4167_v34 }
 0x22c   : > { %v4169_v25 = vpop.eup %4168 }
 0x22d   : > { %1061 = vadd.xlane.f32.xlu0 %v4169_v25 }
 0x241   : > { %v3722_v10 = vpop.f32.mrb[16].mxu1 }
 0x242   : > { %v1345_v27 = vpop.f32.mrb[17].mxu1  ;;  %v5191_v53 = vadd.f32 %v3722_v10, %v1262_v35 }
 0x243   : > { %v3723_v19 = vpop.f32.mrb[18].mxu1  ;;  %v5187_v5 = vadd.f32 %v1345_v27, %v1262_v35 }
 0x244   : > { %v5185_v46 = vadd.f32 %v3723_v19, %v1262_v35  ;;  %v1348_v38 = vpop.f32.mrb[19].mxu1 }
 0x245   : > { %v5189_v14 = vadd.f32 %v1348_v38, %v1262_v35 }
 0x246   : > { %v1409_v34 = vpack.c.bf16 %v5185_v46, %v5191_v53 }
 0x247   : > { %v1408_v43 = vpack.c.bf16 %v5189_v14, %v5187_v5 }
 0x249   : > { %3752 = vmatprep.mubr.bf16.mxu0 %v1408_v43 }
 0x24a   : > { %3753 = vmatmul.mubr.bf16.vlgmr.msra.gmra.mrb[32].mxu0 %v1409_v34 }
 0x251   : > { %v3726_v25 = vpop.f32.mrb[20].mxu1 }
 0x252   : > { %v1361_v42 = vpop.f32.mrb[21].mxu1  ;;  %v5203_v10 = vadd.f32 %v3726_v25, %v1262_v35 }
 0x253   : > { %v3727_v28 = vpop.f32.mrb[22].mxu1  ;;  %v5199_v27 = vadd.f32 %v1361_v42, %v1262_v35 }
 0x254   : > { %v5197_v19 = vadd.f32 %v3727_v28, %v1262_v35  ;;  %v1364_v58 = vpop.f32.mrb[23].mxu1 }
 0x255   : > { %v5201_v38 = vadd.f32 %v1364_v58, %v1262_v35 }
 0x256   : > { %v1411_v29 = vpack.c.bf16 %v5197_v19, %v5203_v10 }
 0x257   : > { %v1410_v8 = vpack.c.bf16 %v5201_v38, %v5199_v27 }
 0x259   : > { %3756 = vmatprep.mubr.bf16.mxu0 %v1410_v8 }
 0x25a   : > { %3757 = vmatmul.mubr.bf16.gmra.mrb[36].mxu0 %v1411_v29 }
 0x261   : > { %v3730_v43 = vpop.f32.mrb[24].mxu1 }
 0x262   : > { %v1377_v34 = vpop.f32.mrb[25].mxu1  ;;  %v5215_v25 = vadd.f32 %v3730_v43, %v1262_v35 }
 0x263   : > { %v3731_v47 = vpop.f32.mrb[26].mxu1  ;;  %v5211_v42 = vadd.f32 %v1377_v34, %v1262_v35 }
 0x264   : > { %v5209_v28 = vadd.f32 %v3731_v47, %v1262_v35  ;;  %v1380_v31 = vpop.f32.mrb[27].mxu1 }
 0x265   : > { %v5213_v58 = vadd.f32 %v1380_v31, %v1262_v35 }
 0x266   : > { %v1413_v8 = vpack.c.bf16 %v5209_v28, %v5215_v25 }
 0x267   : > { %v1412_v40 = vpack.c.bf16 %v5213_v58, %v5211_v42 }
 0x269   : > { %3760 = vmatprep.mubr.bf16.mxu0 %v1412_v40 }
 0x26a   : > { %3761 = vmatmul.mubr.bf16.gmra.mrb[40].mxu0 %v1413_v8 }
 0x271   : > { %v3734_v29 = vpop.f32.mrb[28].mxu1 }
 0x272   : > { %v1393_v36 = vpop.f32.mrb[29].mxu1  ;;  %v5227_v43 = vadd.f32 %v3734_v29, %v1262_v35 }
 0x273   : > { %v3735_v47 = vpop.f32.mrb[30].mxu1  ;;  %v5223_v17 = vadd.f32 %v1393_v36, %v1262_v35 }
 0x274   : > { %v5221_v60 = vadd.f32 %v3735_v47, %v1262_v35  ;;  %v1396_v34 = vpop.f32.mrb[31].mxu1 }
 0x275   : > { %v5225_v31 = vadd.f32 %v1396_v34, %v1262_v35 }
 0x276   : > { %v1415_v40 = vpack.c.bf16 %v5221_v60, %v5227_v43 }
 0x277   : > { %v1414_v1 = vpack.c.bf16 %v5225_v31, %v5223_v17 }
 0x279   : > { %3764 = vmatprep.mubr.bf16.mxu0 %v1414_v1  ;;  %v3786_v8 = vpop.f32.mrb[32].mxu1 }
 0x27a   : > { %v2023_v47 = vadd.f32 %v3786_v8, %v5231_v41  ;;  %3765 = vmatmul.mubr.bf16.gmra.mrb[44].mxu0 %v1415_v40  ;;  %v2014_v36 = vpop.f32.mrb[33].mxu1 }
 0x27b   : > { %v2015_v34 = vadd.f32 %v2014_v36, %v5231_v41  ;;  %v3787_v12 = vpop.f32.mrb[34].mxu1  ;;  %3816 = vmatprep.mubr.bf16.mxu0 %v4080_v21 }
 0x27c   : > { %v3487_v35 = vmul.f32 -1.442695, %v2023_v47  ;;  %v2026_v29 = vadd.f32 %v3787_v12, %v5231_v41  ;;  %v2017_v2 = vpop.f32.mrb[35].mxu1 }
 0x27d   : > { %v3485_v39 = vmul.f32 -1.442695, %v2015_v34  ;;  %v2018_v23 = vadd.f32 %v2017_v2, %v5231_v41 }
 0x27e   : > { %4170 = vpow2.f32 %v3487_v35  ;;  %v3488_v50 = vmul.f32 -1.442695, %v2026_v29 }
 0x27f   : > { %4172 = vpow2.f32 %v3485_v39  ;;  %v3486_v1 = vmul.f32 -1.442695, %v2018_v23 }
 0x280   : > { %4174 = vpow2.f32 %v3488_v50 }
 0x281   : > { %4176 = vpow2.f32 %v3486_v1  ;;  %v3790_v8 = vpop.f32.mrb[36].mxu1 }
 0x282   : > { %v2039_v40 = vadd.f32 %v3790_v8, %v5231_v41  ;;  %v2030_v59 = vpop.f32.mrb[37].mxu1 }
 0x283   : > { %v2031_v36 = vadd.f32 %v2030_v59, %v5231_v41  ;;  %v3791_v21 = vpop.f32.mrb[38].mxu1 }
 0x284   : > { %v3491_v47 = vmul.f32 -1.442695, %v2039_v40  ;;  %v2042_v12 = vadd.f32 %v3791_v21, %v5231_v41  ;;  %v2033_v48 = vpop.f32.mrb[39].mxu1 }
 0x285   : > { %v3489_v34 = vmul.f32 -1.442695, %v2031_v36  ;;  %v2034_v2 = vadd.f32 %v2033_v48, %v5231_v41 }
 0x286   : > { %4178 = vpow2.f32 %v3491_v47  ;;  %v3492_v35 = vmul.f32 -1.442695, %v2042_v12 }
 0x287   : > { %4180 = vpow2.f32 %v3489_v34  ;;  %v3490_v23 = vmul.f32 -1.442695, %v2034_v2 }
 0x288   : > { %v4171_v50 = vpop.eup %4170  ;;  %4182 = vpow2.f32 %v3492_v35 }
 0x289   : > { %v4173_v39 = vpop.eup %4172  ;;  %v2127_v29 = vadd.f32 1.0, %v4171_v50  ;;  %4184 = vpow2.f32 %v3490_v23  ;;  %v3794_v1 = vpop.f32.mrb[40].mxu1 }
 0x28a   : > { %v4175_v8 = vpop.eup %4174  ;;  %v2125_v59 = vadd.f32 1.0, %v4173_v39  ;;  %v2055_v40 = vadd.f32 %v3794_v1, %v5231_v41  ;;  %v2046_v49 = vpop.f32.mrb[41].mxu1 }
 0x28b   : > { %v4177_v21 = vpop.eup %4176  ;;  %4186 = vrcp.f32 %v2127_v29  ;;  %v2128_v36 = vadd.f32 1.0, %v4175_v8  ;;  %v2047_v48 = vadd.f32 %v2046_v49, %v5231_v41  ;;  %v3795_v47 = vpop.f32.mrb[42].mxu1 }
 0x28c   : > { %4188 = vrcp.f32 %v2125_v59  ;;  %v2126_v12 = vadd.f32 1.0, %v4177_v21  ;;  %v3495_v34 = vmul.f32 -1.442695, %v2055_v40  ;;  %v2058_v2 = vadd.f32 %v3795_v47, %v5231_v41  ;;  %v2049_v35 = vpop.f32.mrb[43].mxu1 }
 0x28d   : > { %4190 = vrcp.f32 %v2128_v36  ;;  %v3493_v23 = vmul.f32 -1.442695, %v2047_v48  ;;  %v2050_v39 = vadd.f32 %v2049_v35, %v5231_v41 }
 0x28e   : > { %4192 = vrcp.f32 %v2126_v12  ;;  %v3496_v50 = vmul.f32 -1.442695, %v2058_v2 }
 0x28f   : > { %4194 = vpow2.f32 %v3495_v34  ;;  %v3494_v48 = vmul.f32 -1.442695, %v2050_v39 }
 0x290   : > { %v4179_v1 = vpop.eup %4178  ;;  %4196 = vpow2.f32 %v3493_v23 }
 0x291   : > { %v4181_v45 = vpop.eup %4180  ;;  %v2131_v29 = vadd.f32 1.0, %v4179_v1  ;;  %v3798_v8 = vpop.f32.mrb[44].mxu1  ;;  %4198 = vpow2.f32 %v3496_v50 }
 0x292   : > { %v4183_v49 = vpop.eup %4182  ;;  %v2129_v20 = vadd.f32 1.0, %v4181_v45  ;;  %v2071_v59 = vadd.f32 %v3798_v8, %v5231_v41  ;;  %v2062_v40 = vpop.f32.mrb[45].mxu1 }
 0x293   : > { %v4185_v21 = vpop.eup %4184  ;;  %4200 = vrcp.f32 %v2131_v29  ;;  %v2132_v36 = vadd.f32 1.0, %v4183_v49  ;;  %v2063_v47 = vadd.f32 %v2062_v40, %v5231_v41  ;;  %v3799_v12 = vpop.f32.mrb[46].mxu1 }
 0x294   : > { %4202 = vrcp.f32 %v2129_v20  ;;  %v2130_v34 = vadd.f32 1.0, %v4185_v21  ;;  %v2065_v2 = vpop.f32.mrb[47].mxu1  ;;  %v3499_v23 = vmul.f32 -1.442695, %v2071_v59  ;;  %v2074_v50 = vadd.f32 %v3799_v12, %v5231_v41 }
 0x295   : > { %v4187_v35 = vpop.eup %4186  ;;  %4204 = vrcp.f32 %v2132_v36  ;;  %v3497_v45 = vmul.f32 -1.442695, %v2063_v47  ;;  %v2066_v29 = vadd.f32 %v2065_v2, %v5231_v41 }
 0x296   : > { %v4189_v1 = vpop.eup %4188  ;;  %4206 = vrcp.f32 %v2130_v34  ;;  %v2175_v39 = vmul.f32 %v4187_v35, %v5191_v53  ;;  %v3500_v36 = vmul.f32 -1.442695, %v2074_v50 }
 0x297   : > { %v4191_v8 = vpop.eup %4190  ;;  %4208 = vpow2.f32 %v3494_v48  ;;  %v2173_v40 = vmul.f32 %v4189_v1, %v5187_v5  ;;  %v3498_v18 = vmul.f32 -1.442695, %v2066_v29 }
 0x298   : > { %v4193_v15 = vpop.eup %4192  ;;  %v2176_v49 = vmul.f32 %v4191_v8, %v5185_v46  ;;  %4210 = vpow2.f32 %v3499_v23 }
 0x299   : > { %v4195_v20 = vpop.eup %4194  ;;  %v2174_v59 = vmul.f32 %v4193_v15, %v5189_v14  ;;  %4212 = vpow2.f32 %v3497_v45 }
 0x29a   : > { %v2135_v21 = vadd.f32 1.0, %v4195_v20  ;;  %v2190_v47 = vpack.c.bf16 %v2176_v49, %v2175_v39  ;;  %v4197_v12 = vpop.eup %4196 }
 0x29b   : > { %v2189_v34 = vpack.c.bf16 %v2174_v59, %v2173_v40  ;;  %v4199_v48 = vpop.eup %4198  ;;  %v2133_v35 = vadd.f32 1.0, %v4197_v12 }
 0x29c   : > { %4214 = vrcp.f32 %v2135_v21  ;;  %v2136_v41 = vadd.f32 1.0, %v4199_v48 }
 0x29d   : > { %v4201_v57 = vpop.eup %4200  ;;  %3800 = vmatprep.subr.bf16.mxu0 %v2189_v34  ;;  %4216 = vpow2.f32 %v3500_v36 }
 0x29e   : > { %v4203_v2 = vpop.eup %4202  ;;  %3801 = vmatpush3.bf16.msra.mxu0 %v2189_v34  ;;  %4218 = vrcp.f32 %v2136_v41  ;;  %v2179_v1 = vmul.f32 %v4201_v57, %v5203_v10 }
 0x29f   : > { %v4205_v23 = vpop.eup %4204  ;;  %3802 = vmatprep.subr.bf16.mxu0 %v2190_v47  ;;  %4220 = vpow2.f32 %v3498_v18  ;;  %v2177_v8 = vmul.f32 %v4203_v2, %v5199_v27 }
 0x2a0   : > { %v4207_v15 = vpop.eup %4206  ;;  %v2180_v45 = vmul.f32 %v4205_v23, %v5197_v19  ;;  %4222 = vrcp.f32 %v2133_v35 }
 0x2a1   : > { %v4209_v50 = vpop.eup %4208  ;;  %v2178_v29 = vmul.f32 %v4207_v15, %v5201_v38 }
 0x2a2   : > { %v2134_v39 = vadd.f32 1.0, %v4209_v50  ;;  %3803 = vmatpush3.bf16.msra.mxu0 %v2190_v47  ;;  %v2192_v49 = vpack.c.bf16 %v2180_v45, %v2179_v1  ;;  %v4211_v20 = vpop.eup %4210 }
 0x2a3   : > { %v2191_v40 = vpack.c.bf16 %v2178_v29, %v2177_v8  ;;  %v4213_v59 = vpop.eup %4212  ;;  %v2139_v21 = vadd.f32 1.0, %v4211_v20 }
 0x2a4   : > { %4224 = vrcp.f32 %v2134_v39  ;;  %v2137_v18 = vadd.f32 1.0, %v4213_v59 }
 0x2a5   : > { %3804 = vmatprep.subr.bf16.mxu0 %v2191_v40  ;;  %4226 = vrcp.f32 %v2139_v21 }
 0x2a6   : > { %3805 = vmatpush3.bf16.msra.mxu0 %v2191_v40  ;;  %v4215_v57 = vpop.eup %4214  ;;  %4228 = vrcp.f32 %v2137_v18 }
 0x2a7   : > { %3806 = vmatprep.subr.bf16.mxu0 %v2192_v49  ;;  %v4217_v36 = vpop.eup %4216  ;;  %v2183_v47 = vmul.f32 %v4215_v57, %v5215_v25 }
 0x2a8   : > { %v4219_v12 = vpop.eup %4218  ;;  %v2140_v34 = vadd.f32 1.0, %v4217_v36  ;;  %v4081_v36 = vld [vmem:[%s5183_s22 + $0x8] sm:$0xff]  }
 0x2a9   : > { %v4221_v48 = vpop.eup %4220  ;;  %v2184_v41 = vmul.f32 %v4219_v12, %v5209_v28  ;;  %v4082_v12 = vld [vmem:[%s5183_s22 + $0x10] sm:$0xff]  }
 0x2aa   : > { %3807 = vmatpush3.bf16.msra.mxu0 %v2192_v49  ;;  %4230 = vrcp.f32 %v2140_v34  ;;  %v2138_v2 = vadd.f32 1.0, %v4221_v48  ;;  %v4223_v35 = vpop.eup %4222  ;;  %v4083_v34 = vld [vmem:[%s5183_s22 + $0x18] sm:$0xff]   ;;  %v4084_v48 = vld [vmem:[%s5183_s22 + $0x20] sm:$0xff]  }
 0x2ab   : > { %v2194_v23 = vpack.c.bf16 %v2184_v41, %v2183_v47  ;;  %v2181_v1 = vmul.f32 %v4223_v35, %v5211_v42  ;;  %v4085_v47 = vld [vmem:[%s5183_s22 + $0x28] sm:$0xff]   ;;  %v4086_v41 = vld [vmem:[%s5183_s22 + $0x30] sm:$0xff]   ;;  %v4089_v35 = vld [vmem:[#allocation6 + $0x60] ss:$36 sps:$4 sm:$0xff]  }
 0x2ac   : > { %4232 = vrcp.f32 %v2138_v2  ;;  %v4088_v2 = vld [vmem:[#allocation6 + $0x18] ss:$36 sps:$4 sm:$0xff]  }
 0x2ad   : > { %3832 = vmatprep.subr.bf16.mxu1 %v4088_v2 }
 0x2ae   : > { %v4225_v15 = vpop.eup %4224  ;;  %3833 = vmatpush3.bf16.msra.mxu1 %v4088_v2 }
 0x2af   : > { %v2182_v45 = vmul.f32 %v4225_v15, %v5213_v58  ;;  %v4227_v8 = vpop.eup %4226  ;;  %3834 = vmatprep.subr.bf16.mxu1 %v4089_v35  ;;  %v4090_v15 = vld [vmem:[#allocation6 + $0xa8] ss:$36 sps:$4 sm:$0xff]  }
 0x2b0   : > { %v4229_v29 = vpop.eup %4228  ;;  %v2187_v49 = vmul.f32 %v4227_v8, %v5227_v43  ;;  %v4094_v8 = vld [vmem:[#allocation6 + $0x1c8] ss:$36 sps:$4 sm:$0xff]  }
 0x2b1   : > { %v2193_v50 = vpack.c.bf16 %v2182_v45, %v2181_v1  ;;  %v2185_v59 = vmul.f32 %v4229_v29, %v5223_v17  ;;  %v4091_v1 = vld [vmem:[#allocation6 + $0xf0] ss:$36 sps:$4 sm:$0xff]   ;;  %v4092_v45 = vld [vmem:[#allocation6 + $0x138] ss:$36 sps:$4 sm:$0xff]   ;;  %v5275_v29 = vld [vmem:[#allocation7 + $0x28] ss:$0 sm:$0xff] }
 0x2b2   : > { %3835 = vmatpush3.bf16.msra.mxu1 %v4089_v35 }
 0x2b3   : > { %3808 = vmatprep.subr.bf16.mxu0 %v2193_v50  ;;  %3836 = vmatprep.subr.bf16.mxu1 %v4090_v15 }
 0x2b4   : > { %3809 = vmatpush3.bf16.msra.mxu0 %v2193_v50  ;;  %v4231_v39 = vpop.eup %4230  ;;  %v4093_v50 = vld [vmem:[#allocation6 + $0x180] ss:$36 sps:$4 sm:$0xff]  }
 0x2b5   : > { %3810 = vmatprep.subr.bf16.mxu0 %v2194_v23  ;;  %v2188_v20 = vmul.f32 %v4231_v39, %v5221_v60 }
 0x2b6   : > { %v4233_v40 = vpop.eup %4232  ;;  %3837 = vmatpush3.bf16.msra.mxu1 %v4090_v15 }
 0x2b7   : > { %v2186_v21 = vmul.f32 %v4233_v40, %v5225_v31  ;;  %v2196_v18 = vpack.c.bf16 %v2188_v20, %v2187_v49  ;;  %3838 = vmatprep.subr.bf16.mxu1 %v4091_v1  ;;  %v5277_v49 = vstv %s3427_s16  ;;  %v4095_v20 = vld [vmem:[#allocation6 + $0x210] ss:$36 sps:$4 sm:$0xff]   ;;  %v5279_v40 = vstv %s419_s9 }
 0x2b8   : > { %3811 = vmatpush3.bf16.msra.mxu0 %v2194_v23  ;;  %v4087_v23 = vld [vmem:[%s5183_s22 + $0x38] sm:$0xff]   ;;  %s4477_s22 = scalar_lea.vmem %s4476_s20, 4096 }
 0x2b9   : > { %v2195_v57 = vpack.c.bf16 %v2186_v21, %v2185_v59  ;;  %p4479_p13 = scmp.lt.s32.totalorder %s4477_s22, %s4471_s15 }
 0x2ba   : > { %3839 = vmatpush3.bf16.msra.mxu1 %v4091_v1 }
 0x2bb   : > { %3812 = vmatprep.subr.bf16.mxu0 %v2195_v57  ;;  %3840 = vmatprep.subr.bf16.mxu1 %v4092_v45  ;;  %p4480_p6 = por %p4479_p13, %p4478_p11 }
 0x2bc   : > { %3813 = vmatpush3.bf16.msra.mxu0 %v2195_v57 }
 0x2bd   : > { %3814 = vmatprep.subr.bf16.mxu0 %v2196_v18  ;;  %p4481_p9 = pnand %p4480_p6, %p4474_p8 }
 0x2be   : > { %3841 = vmatpush3.bf16.msra.mxu1 %v4092_v45  ;;  %v926_v45 = vmul.f32 %v5279_v40, %v4840_v9 }
 0x2bf   : > { %3842 = vmatprep.subr.bf16.mxu1 %v4093_v50 }
 0x2c0   : > { %3815 = vmatpush3.bf16.msra.mxu0 %v2196_v18  ;;  %v927_v18 = vmul.f32 %v5279_v40, %v4871_v22  ;;  %v925_v22 = vmul.f32 %v5279_v40, %v4834_v4 }
 0x2c2   : > { %3843 = vmatpush3.bf16.msra.mxu1 %v4093_v50 }
 0x2c3   : > { %3817 = vmatmul.mubr.bf16.vlgmr.msra.gmra.mrb[48].mxu0 %v4081_v36  ;;  %3844 = vmatprep.subr.bf16.mxu1 %v4094_v8 }
 0x2c4   : > { %3820 = vmatprep.mubr.bf16.mxu0 %v4082_v12 }
 0x2c6   : > { %3845 = vmatpush3.bf16.msra.mxu1 %v4094_v8 }
 0x2c7   : > { %3846 = vmatprep.subr.bf16.mxu1 %v4095_v20 }
 0x2ca   : > { %3847 = vmatpush3.bf16.msra.mxu1 %v4095_v20 }
 0x2cb   : > { %3821 = vmatmul.mubr.bf16.gmra.mrb[52].mxu0 %v4083_v34 }
 0x2cc   : > { %3824 = vmatprep.mubr.bf16.mxu0 %v4084_v48 }
 0x2d3   : > { %3825 = vmatmul.mubr.bf16.gmra.mrb[56].mxu0 %v4085_v47 }
 0x2d4   : > { %3828 = vmatprep.mubr.bf16.mxu0 %v4086_v41 }
 0x2db   : > { %3829 = vmatmul.mubr.bf16.gmra.mrb[60].mxu0 %v4087_v23  ;;  %v928_v23 = vmul.f32 %v5279_v40, %v4875_v26 }
 0x31d   : > { %v3754_v39 = vpop.f32.mrb[32].mxu0 }
 0x31e   : > { %v1524_v59 = vadd.f32 %v3754_v39, %v5275_v29  ;;  %v1515_v21 = vpop.f32.mrb[33].mxu0 }
 0x31f   : > { %v1516_v57 = vadd.f32 %v1515_v21, %v5275_v29  ;;  %v3755_v36 = vpop.f32.mrb[34].mxu0 }
 0x320   : > { %v1581_v12 = vmul.f32 %v5277_v49, %v1524_v59  ;;  %v1527_v34 = vadd.f32 %v3755_v36, %v5275_v29  ;;  %v1518_v48 = vpop.f32.mrb[35].mxu0  ;;  %v5289_v47 = vsel %vm424_vm1, %v1524_v59, -1e+30  ;;  %v1789_v41 = vsel %vm475_vm3, %v1524_v59, 0.0 }
 0x321   : > { %v1579_v2 = vmul.f32 %v5277_v49, %v1516_v57  ;;  %v1519_v35 = vadd.f32 %v1518_v48, %v5275_v29  ;;  %1631 = vmax.xlane.f32.xlu1 %v5289_v47  ;;  %1807 = vadd.xlane.f32.xlu0 %v1789_v41  ;;  %v5317_v26 = vsel %vm424_vm1, %v1516_v57, -1e+30  ;;  %v1787_v59 = vsel %vm473_vm0, %v1516_v57, 0.0 }
 0x322   : > { %v5301_v15 = vadd.f32 %v1581_v12, %v927_v18  ;;  %v1582_v1 = vmul.f32 %v5277_v49, %v1527_v34  ;;  %v5331_v21 = vsel %vm424_vm1, %v1527_v34, -1e+30  ;;  %v931_v48 = vmul.f32 %v5279_v40, %v4934_v13 }
 0x323   : > { %v5306_v50 = vadd.f32 %v1579_v2, %v925_v22  ;;  %v1580_v4 = vmul.f32 %v5277_v49, %v1519_v35  ;;  %v5311_v8 = vsel %vm424_vm1, %v1519_v35, -1e+30  ;;  %v1788_v9 = vsel %vm474_vm2, %v1519_v35, 0.0 }
 0x324   : > { %v5313_v39 = vadd.f32 %v1582_v1, %v928_v23  ;;  %v1790_v1 = vsel %vm476_vm4, %v1527_v34, 0.0  ;;  %v930_v34 = vmul.f32 %v5279_v40, %v4925_v62 }
 0x325   : > { %v5319_v20 = vadd.f32 %v1580_v4, %v926_v45  ;;  %1629 = vmax.xlane.f32.xlu1 %v5311_v8  ;;  %1627 = vmax.xlane.f32.xlu0 %v5317_v26  ;;  %v929_v45 = vmul.f32 %v5279_v40, %v4905_v44 }
 0x329   : > { %1805 = vadd.xlane.f32.xlu1 %v1788_v9  ;;  %1803 = vadd.xlane.f32.xlu0 %v1787_v59  ;;  %v932_v59 = vmul.f32 %v5279_v40, %v4940_v24 }
 0x32d   : > { %v3758_v18 = vpop.f32.mrb[36].mxu0  ;;  %1633 = vmax.xlane.f32.xlu0 %v5331_v21 }
 0x32e   : > { %v5335_v36 = vadd.f32 %v3758_v18, %v5275_v29  ;;  %v1531_v12 = vpop.f32.mrb[37].mxu0 }
 0x32f   : > { %v1532_v41 = vadd.f32 %v1531_v12, %v5275_v29  ;;  %v3759_v22 = vpop.f32.mrb[38].mxu0 }
 0x330   : > { %6519 = vst [vmem:[#allocation62_spill] sm:$0xff] %v5335_v36  ;;  %v1585_v57 = vmul.f32 %v5277_v49, %v5335_v36  ;;  %v5343_v2 = vadd.f32 %v3759_v22, %v5275_v29  ;;  %v1534_v35 = vpop.f32.mrb[39].mxu0  ;;  %v5348_v23 = vsel %vm424_vm1, %v5335_v36, -1e+30 }
 0x331   : > { %v1583_v4 = vmul.f32 %v5277_v49, %v1532_v41  ;;  %v5357_v9 = vadd.f32 %v1534_v35, %v5275_v29  ;;  %1639 = vmax.xlane.f32.xlu1 %v5348_v23  ;;  %1809 = vadd.xlane.f32.xlu0 %v1790_v1  ;;  %v5376_v1 = vsel %vm424_vm1, %v1532_v41, -1e+30 }
 0x332   : > { %6520 = vst [vmem:[#allocation63_spill] sm:$0xff] %v5343_v2  ;;  %v5362_v18 = vadd.f32 %v1585_v57, %v931_v48  ;;  %v1586_v12 = vmul.f32 %v5277_v49, %v5343_v2  ;;  %v1791_v48 = vsel %vm477_vm5, %v1532_v41, 0.0 }
 0x333   : > { %6521 = vst [vmem:[#allocation64_spill] sm:$0xff] %v5357_v9  ;;  %v5368_v44 = vadd.f32 %v1583_v4, %v929_v45  ;;  %v1584_v22 = vmul.f32 %v5277_v49, %v5357_v9  ;;  %v5387_v45 = vsel %vm424_vm1, %v5343_v2, -1e+30  ;;  %v5393_v4 = vsel %vm424_vm1, %v5357_v9, -1e+30 }
 0x334   : > { %v5372_v35 = vadd.f32 %v1586_v12, %v932_v59  ;;  %v934_v9 = vmul.f32 %v5279_v40, %v4984_v7 }
 0x335   : > { %v5381_v57 = vadd.f32 %v1584_v22, %v930_v34  ;;  %1635 = vmax.xlane.f32.xlu1 %v5376_v1  ;;  %1811 = vadd.xlane.f32.xlu0 %v1791_v48  ;;  %v935_v48 = vmul.f32 %v5279_v40, %v5012_v51 }
 0x339   : > { %1641 = vmax.xlane.f32.xlu0 %v5387_v45 }
 0x33d   : > { %v3762_v59 = vpop.f32.mrb[40].mxu0  ;;  %1637 = vmax.xlane.f32.xlu0 %v5393_v4 }
 0x33e   : > { %v5397_v41 = vadd.f32 %v3762_v59, %v5275_v29  ;;  %v1547_v12 = vpop.f32.mrb[41].mxu0 }
 0x33f   : > { %v5400_v34 = vadd.f32 %v1547_v12, %v5275_v29  ;;  %v3763_v22 = vpop.f32.mrb[42].mxu0  ;;  %v933_v12 = vmul.f32 %v5279_v40, %v4976_v55 }
 0x340   : > { %6522 = vst [vmem:[#allocation65_spill] sm:$0xff] %v5397_v41  ;;  %v1589_v24 = vmul.f32 %v5277_v49, %v5397_v41  ;;  %v5407_v13 = vadd.f32 %v3763_v22, %v5275_v29  ;;  %v1550_v62 = vpop.f32.mrb[43].mxu0  ;;  %v5412_v59 = vsel %vm424_vm1, %v5397_v41, -1e+30  ;;  %v936_v22 = vmul.f32 %v5279_v40, %v5020_v3 }
 0x341   : > { %6523 = vst [vmem:[#allocation66_spill] sm:$0xff] %v5400_v34  ;;  %v1587_v2 = vmul.f32 %v5277_v49, %v5400_v34  ;;  %v5419_v51 = vadd.f32 %v1550_v62, %v5275_v29  ;;  %1647 = vmax.xlane.f32.xlu1 %v5412_v59 }
 0x342   : > { %6524 = vst [vmem:[#allocation67_spill] sm:$0xff] %v5407_v13  ;;  %v5424_v36 = vadd.f32 %v1589_v24, %v935_v48  ;;  %v1590_v41 = vmul.f32 %v5277_v49, %v5407_v13  ;;  %v5431_v55 = vsel %vm424_vm1, %v5407_v13, -1e+30  ;;  %v5445_v48 = vsel %vm424_vm1, %v5400_v34, -1e+30 }
 0x343   : > { %6525 = vst [vmem:[#allocation68_spill] sm:$0xff] %v5419_v51  ;;  %v5435_v62 = vadd.f32 %v1587_v2, %v933_v12  ;;  %v1588_v11 = vmul.f32 %v5277_v49, %v5419_v51  ;;  %1649 = vmax.xlane.f32.xlu0 %v5431_v55  ;;  %v5453_v2 = vsel %vm424_vm1, %v5419_v51, -1e+30 }
 0x344   : > { %v5440_v24 = vadd.f32 %v1590_v41, %v936_v22 }
 0x345   : > { %v5447_v3 = vadd.f32 %v1588_v11, %v934_v9  ;;  %1643 = vmax.xlane.f32.xlu1 %v5445_v48  ;;  %v939_v11 = vmul.f32 %v5279_v40, %v5063_v33 }
 0x347   : > { %6526 = vst [vmem:[#allocation69_spill] sm:$0xff] %v5447_v3  ;;  %1645 = vmax.xlane.f32.xlu0 %v5453_v2  ;;  %v938_v3 = vmul.f32 %v5279_v40, %v5047_v61 }
 0x34d   : > { %v3766_v12 = vpop.f32.mrb[44].mxu0 }
 0x34e   : > { %v5457_v41 = vadd.f32 %v3766_v12, %v5275_v29  ;;  %v1563_v22 = vpop.f32.mrb[45].mxu0 }
 0x34f   : > { %v5460_v13 = vadd.f32 %v1563_v22, %v5275_v29  ;;  %v3767_v7 = vpop.f32.mrb[46].mxu0  ;;  %v937_v22 = vmul.f32 %v5279_v40, %v5043_v52 }
 0x350   : > { %6527 = vst [vmem:[#allocation70_spill] sm:$0xff] %v5457_v41  ;;  %v1593_v9 = vmul.f32 %v5277_v49, %v5457_v41  ;;  %v5467_v51 = vadd.f32 %v3767_v7, %v5275_v29  ;;  %v1566_v34 = vpop.f32.mrb[47].mxu0  ;;  %v5472_v12 = vsel %vm424_vm1, %v5457_v41, -1e+30  ;;  %v940_v7 = vmul.f32 %v5279_v40, %v5067_v54 }
 0x351   : > { %6528 = vst [vmem:[#allocation71_spill] sm:$0xff] %v5460_v13  ;;  %6530 = vst [vmem:[#allocation73_spill] sm:$0xff] %v5472_v12  ;;  %v1591_v56 = vmul.f32 %v5277_v49, %v5460_v13  ;;  %v5479_v33 = vadd.f32 %v1566_v34, %v5275_v29  ;;  %1655 = vmax.xlane.f32.xlu1 %v5472_v12 }
 0x352   : > { %6529 = vst [vmem:[#allocation72_spill] sm:$0xff] %v5467_v51  ;;  %v5484_v30 = vadd.f32 %v1593_v9, %v939_v11  ;;  %v1594_v41 = vmul.f32 %v5277_v49, %v5467_v51  ;;  %v5491_v52 = vsel %vm424_vm1, %v5467_v51, -1e+30  ;;  %v5505_v9 = vsel %vm424_vm1, %v5460_v13, -1e+30 }
 0x353   : > { %6531 = vst [vmem:[#allocation74_spill] sm:$0xff] %v5479_v33  ;;  %6532 = vst [vmem:[#allocation75_spill] sm:$0xff] %v5491_v52  ;;  %v5495_v29 = vadd.f32 %v1591_v56, %v937_v22  ;;  %v1592_v34 = vmul.f32 %v5277_v49, %v5479_v33  ;;  %1657 = vmax.xlane.f32.xlu0 %v5491_v52  ;;  %v5513_v56 = vsel %vm424_vm1, %v5479_v33, -1e+30  ;;  %v5516_v49 = vpop.xlane.xlu0 %985  ;;  %v5522_v22 = vpop.xlane.xlu1 %983 }
 0x354   : > { %v5500_v11 = vadd.f32 %v1594_v41, %v940_v7  ;;  %6533 = vst [vmem:[#allocation76_spill] sm:$0xff] %v5505_v9  ;;  %6535 = vst [vmem:[#allocation78_spill] sm:$0xff] %v5513_v56 }
 0x355   : > { %v5507_v54 = vadd.f32 %v1592_v34, %v938_v3  ;;  %1651 = vmax.xlane.f32.xlu1 %v5505_v9  ;;  %6536 = vst [vmem:[#allocation79_spill] sm:$0xff] %v5516_v49  ;;  %6539 = vst [vmem:[#allocation82_spill] sm:$0xff] %v5522_v22 }
 0x357   : > { %6534 = vst [vmem:[#allocation77_spill] sm:$0xff] %v5507_v54  ;;  %1653 = vmax.xlane.f32.xlu0 %v5513_v56  ;;  %v5518_v40 = vpop.xlane.xlu0 %1037  ;;  %v5526_v3 = vpop.xlane.xlu1 %987 }
 0x358   : > { %6537 = vst [vmem:[#allocation80_spill] sm:$0xff] %v5518_v40  ;;  %6541 = vst [vmem:[#allocation84_spill] sm:$0xff] %v5526_v3 }
 0x35b   : > { %v5520_v41 = vpop.xlane.xlu0 %1043  ;;  %v5530_v61 = vpop.xlane.xlu1 %1039 }
 0x35c   : > { %6538 = vst [vmem:[#allocation81_spill] sm:$0xff] %v5520_v41  ;;  %6543 = vst [vmem:[#allocation86_spill] sm:$0xff] %v5530_v61 }
 0x35f   : > { %v5524_v7 = vpop.xlane.xlu0 %1047  ;;  %v5538_v3 = vpop.xlane.xlu1 %1041 }
 0x360   : > { %6540 = vst [vmem:[#allocation83_spill] sm:$0xff] %v5524_v7 }
 0x363   : > { %v5528_v34 = vpop.xlane.xlu0 %1051 }
 0x364   : > { %6542 = vst [vmem:[#allocation85_spill] sm:$0xff] %v5528_v34 }
 0x367   : > { %v5532_v52 = vpop.xlane.xlu0 %1055 }
 0x368   : > { %6544 = vst [vmem:[#allocation87_spill] sm:$0xff] %v5532_v52  ;;  %v5542_v52 = vpop.xlane.xlu1 %1045 }
 0x36b   : > { %v5540_v54 = vpop.xlane.xlu0 %1057 }
 0x396   : > { %v3818_v51 = vpop.f32.mrb[48].mxu0 }
 0x397   : > { %v2279_v13 = vpop.f32.mrb[49].mxu0  ;;  %v2344_v12 = vadd.f32 %v3818_v51, %v5191_v53  ;;  %v5548_v53 = vpop.xlane.xlu0 %1059 }
 0x398   : > { %v3819_v33 = vpop.f32.mrb[50].mxu0  ;;  %v2342_v56 = vadd.f32 %v2279_v13, %v5187_v5 }
 0x399   : > { %v2345_v40 = vadd.f32 %v3819_v33, %v5185_v46  ;;  %v2282_v41 = vpop.f32.mrb[51].mxu0 }
 0x39a   : > { %v2343_v7 = vadd.f32 %v2282_v41, %v5189_v14 }
 0x39b   : > { %v2359_v9 = vpack.c.bf16 %v2345_v40, %v2344_v12 }
 0x39c   : > { %v2358_v34 = vpack.c.bf16 %v2343_v7, %v2342_v56  ;;  %v5550_v56 = vpop.xlane.xlu1 %1049 }
 0x39e   : > { %v3822_v61 = vpop.f32.mrb[52].mxu0  ;;  %3848 = vmatprep.mubr.bf16.mxu1 %v2358_v34 }
 0x39f   : > { %v2295_v49 = vpop.f32.mrb[53].mxu0  ;;  %3849 = vmatmul.mubr.bf16.vlgmr.msra.gmra.mrb[48].mxu1 %v2359_v9  ;;  %v2348_v33 = vadd.f32 %v3822_v61, %v5203_v10  ;;  %v5554_v10 = vpop.xlane.xlu0 %1061 }
 0x3a0   : > { %v3823_v51 = vpop.f32.mrb[54].mxu0  ;;  %v2346_v5 = vadd.f32 %v2295_v49, %v5199_v27  ;;  %v5552_v7 = vpop.xlane.xlu1 %1053  ;;  %6545 = vst [vmem:[#allocation88_spill] sm:$0xff] %v5554_v10 }
 0x3a1   : > { %v2349_v46 = vadd.f32 %v3823_v51, %v5197_v19  ;;  %v2298_v13 = vpop.f32.mrb[55].mxu0 }
 0x3a2   : > { %v2347_v14 = vadd.f32 %v2298_v13, %v5201_v38 }
 0x3a3   : > { %v2361_v12 = vpack.c.bf16 %v2349_v46, %v2348_v33 }
 0x3a4   : > { %v2360_v40 = vpack.c.bf16 %v2347_v14, %v2346_v5 }
 0x3a6   : > { %v3826_v41 = vpop.f32.mrb[56].mxu0  ;;  %3852 = vmatprep.mubr.bf16.mxu1 %v2360_v40 }
 0x3a7   : > { %v2311_v9 = vpop.f32.mrb[57].mxu0  ;;  %3853 = vmatmul.mubr.bf16.gmra.mrb[52].mxu1 %v2361_v12  ;;  %v2352_v19 = vadd.f32 %v3826_v41, %v5215_v25 }
 0x3a8   : > { %v3827_v61 = vpop.f32.mrb[58].mxu0  ;;  %v2350_v49 = vadd.f32 %v2311_v9, %v5211_v42 }
 0x3a9   : > { %v2353_v27 = vadd.f32 %v3827_v61, %v5209_v28  ;;  %v2314_v38 = vpop.f32.mrb[59].mxu0 }
 0x3aa   : > { %v2351_v34 = vadd.f32 %v2314_v38, %v5213_v58 }
 0x3ab   : > { %v2363_v51 = vpack.c.bf16 %v2353_v27, %v2352_v19 }
 0x3ac   : > { %v2362_v33 = vpack.c.bf16 %v2351_v34, %v2350_v49 }
 0x3ae   : > { %v5560_v46 = vpop.xlane.xlu0 %1807  ;;  %v5562_v13 = vpop.xlane.xlu1 %1631  ;;  %3856 = vmatprep.mubr.bf16.mxu1 %v2362_v33 }
 0x3af   : > { %v3830_v5 = vpop.f32.mrb[60].mxu0  ;;  %v1661_v14 = vsub.f32 %v5289_v47, %v5562_v13  ;;  %3857 = vmatmul.mubr.bf16.gmra.mrb[56].mxu1 %v2363_v51 }
 0x3b0   : > { %v2327_v12 = vpop.f32.mrb[61].mxu0  ;;  %v2356_v40 = vadd.f32 %v3830_v5, %v5227_v43 }
 0x3b1   : > { %v3831_v25 = vpop.f32.mrb[62].mxu0  ;;  %v1679_v28 = vmul.f32 1.442695, %v1661_v14  ;;  %v2354_v9 = vadd.f32 %v2327_v12, %v5223_v17 }
 0x3b2   : > { %v2357_v42 = vadd.f32 %v3831_v25, %v5221_v60  ;;  %v2330_v58 = vpop.f32.mrb[63].mxu0  ;;  %v5568_v41 = vpop.xlane.xlu0 %1627 }
 0x3b3   : > { %v2355_v61 = vadd.f32 %v2330_v58, %v5225_v31  ;;  %4234 = vpow2.f32 %v1679_v28  ;;  %v1659_v19 = vsub.f32 %v5317_v26, %v5568_v41  ;;  %v5574_v47 = vpop.xlane.xlu1 %1629 }
 0x3b4   : > { %v2365_v27 = vpack.c.bf16 %v2357_v42, %v2356_v40  ;;  %v1660_v38 = vsub.f32 %v5311_v8, %v5574_v47 }
 0x3b5   : > { %v2364_v43 = vpack.c.bf16 %v2355_v61, %v2354_v9  ;;  %v1675_v49 = vmul.f32 1.442695, %v1659_v19 }
 0x3b6   : > { %v5578_v60 = vpop.xlane.xlu0 %1803  ;;  %v1677_v34 = vmul.f32 1.442695, %v1660_v38 }
 0x3b7   : > { %3860 = vmatprep.mubr.bf16.mxu1 %v2364_v43  ;;  %4236 = vpow2.f32 %v1675_v49  ;;  %v5580_v17 = vpop.xlane.xlu1 %1805 }
 0x3b8   : > { %3861 = vmatmul.mubr.bf16.gmra.mrb[60].mxu1 %v2365_v27  ;;  %4238 = vpow2.f32 %v1677_v34 }
 0x3ba   : > { %v5582_v31 = vpop.xlane.xlu0 %1633 }
 0x3bb   : > { %v1662_v26 = vsub.f32 %v5331_v21, %v5582_v31 }
 0x3bd   : > { %v4235_v51 = vpop.eup %4234  ;;  %v1681_v33 = vmul.f32 1.442695, %v1662_v26 }
 0x3be   : > { %v5586_v5 = vpop.xlane.xlu0 %1809  ;;  %1711 = vadd.xlane.f32.xlu0 %v4235_v51  ;;  %v5588_v8 = vpop.xlane.xlu1 %1639 }
 0x3bf   : > { %4240 = vpow2.f32 %v1681_v33  ;;  %v1665_v14 = vsub.f32 %v5348_v23, %v5588_v8 }
 0x3c1   : > { %v4237_v12 = vpop.eup %4236  ;;  %v1687_v25 = vmul.f32 1.442695, %v1665_v14 }
 0x3c2   : > { %v5592_v28 = vpop.xlane.xlu0 %1811  ;;  %1707 = vadd.xlane.f32.xlu0 %v4237_v12  ;;  %v5594_v40 = vpop.xlane.xlu1 %1635 }
 0x3c3   : > { %4242 = vpow2.f32 %v1687_v25  ;;  %v1663_v21 = vsub.f32 %v5376_v1, %v5594_v40  ;;  %v4239_v42 = vpop.eup %4238 }
 0x3c5   : > { %v1683_v58 = vmul.f32 1.442695, %v1663_v21 }
 0x3c6   : > { %v5598_v9 = vpop.xlane.xlu0 %1641  ;;  %1709 = vadd.xlane.f32.xlu0 %v4239_v42 }
 0x3c7   : > { %4244 = vpow2.f32 %v1683_v58  ;;  %v1666_v23 = vsub.f32 %v5387_v45, %v5598_v9 }
 0x3c9   : > { %v4241_v61 = vpop.eup %4240  ;;  %v1689_v19 = vmul.f32 1.442695, %v1666_v23 }
 0x3ca   : > { %1713 = vadd.xlane.f32.xlu1 %v4241_v61  ;;  %v5602_v27 = vpop.xlane.xlu0 %1637  ;;  %v4096_v61 = vld [vmem:[#allocation6 + $0x1c] ss:$36 sps:$4 sm:$0xff]  }
 0x3cb   : > { %4246 = vpow2.f32 %v1689_v19  ;;  %v1664_v38 = vsub.f32 %v5393_v4, %v5602_v27  ;;  %3864 = vmatprep.subr.bf16.mxu0 %v4096_v61 }
 0x3cc   : > { %3865 = vmatpush3.bf16.msra.mxu0 %v4096_v61 }
 0x3cd   : > { %v4243_v43 = vpop.eup %4242  ;;  %v1685_v1 = vmul.f32 1.442695, %v1664_v38 }
 0x3ce   : > { %1719 = vadd.xlane.f32.xlu0 %v4243_v43  ;;  %v5606_v49 = vpop.xlane.xlu1 %1647 }
 0x3cf   : > { %4248 = vpow2.f32 %v1685_v1  ;;  %v1669_v34 = vsub.f32 %v5412_v59, %v5606_v49  ;;  %v4099_v1 = vld [vmem:[#allocation6 + $0xf4] ss:$36 sps:$4 sm:$0xff]  }
 0x3d0   : > { %v5610_v26 = vpop.xlane.xlu0 %1649 }
 0x3d1   : > { %v4245_v45 = vpop.eup %4244  ;;  %v1695_v51 = vmul.f32 1.442695, %v1669_v34  ;;  %v1670_v33 = vsub.f32 %v5431_v55, %v5610_v26  ;;  %v4100_v34 = vld [vmem:[#allocation6 + $0x13c] ss:$36 sps:$4 sm:$0xff]  }
 0x3d2   : > { %1715 = vadd.xlane.f32.xlu0 %v4245_v45  ;;  %v5614_v14 = vpop.xlane.xlu1 %1643  ;;  %v4101_v45 = vld [vmem:[#allocation6 + $0x184] ss:$36 sps:$4 sm:$0xff]  }
 0x3d3   : > { %4250 = vpow2.f32 %v1695_v51  ;;  %v1697_v4 = vmul.f32 1.442695, %v1670_v33  ;;  %v1667_v12 = vsub.f32 %v5445_v48, %v5614_v14  ;;  %v4097_v48 = vld [vmem:[#allocation6 + $0x64] ss:$36 sps:$4 sm:$0xff]   ;;  %v4102_v51 = vld [vmem:[#allocation6 + $0x1cc] ss:$36 sps:$4 sm:$0xff]  }
 0x3d4   : > { %v5618_v25 = vpop.xlane.xlu0 %1645  ;;  %3866 = vmatprep.subr.bf16.mxu0 %v4097_v48  ;;  %v4103_v33 = vld [vmem:[#allocation6 + $0x214] ss:$36 sps:$4 sm:$0xff]  }
 0x3d5   : > { %v4247_v21 = vpop.eup %4246  ;;  %v1691_v42 = vmul.f32 1.442695, %v1667_v12  ;;  %v1668_v59 = vsub.f32 %v5453_v2, %v5618_v25  ;;  %4252 = vpow2.f32 %v1697_v4  ;;  %3867 = vmatpush3.bf16.msra.mxu0 %v4097_v48  ;;  %v4098_v2 = vld [vmem:[#allocation6 + $0xac] ss:$36 sps:$4 sm:$0xff]   ;;  %v4104_v4 = vld [vmem:[#allocation6 + $0x20] ss:$36 sps:$4 sm:$0xff]  }
 0x3d6   : > { %1721 = vadd.xlane.f32.xlu1 %v4247_v21  ;;  %3868 = vmatprep.subr.bf16.mxu0 %v4098_v2  ;;  %v4105_v12 = vld [vmem:[#allocation6 + $0x68] ss:$36 sps:$4 sm:$0xff]   ;;  %v4106_v21 = vld [vmem:[#allocation6 + $0xb0] ss:$36 sps:$4 sm:$0xff]  }
 0x3d7   : > { %4254 = vpow2.f32 %v1691_v42  ;;  %v1693_v58 = vmul.f32 1.442695, %v1668_v59  ;;  %3896 = vmatprep.subr.bf16.mxu1 %v4104_v4  ;;  %v4107_v42 = vld [vmem:[#allocation6 + $0xf8] ss:$36 sps:$4 sm:$0xff]   ;;  %v4108_v59 = vld [vmem:[#allocation6 + $0x140] ss:$36 sps:$4 sm:$0xff]  }
 0x3d8   : > { %3897 = vmatpush3.bf16.msra.mxu1 %v4104_v4 }
 0x3d9   : > { %v4249_v55 = vpop.eup %4248  ;;  %4256 = vpow2.f32 %v1693_v58  ;;  %3869 = vmatpush3.bf16.msra.mxu0 %v4098_v2  ;;  %3898 = vmatprep.subr.bf16.mxu1 %v4105_v12  ;;  %v4109_v58 = vld [vmem:[#allocation6 + $0x188] ss:$36 sps:$4 sm:$0xff]  }
 0x3da   : > { %1717 = vadd.xlane.f32.xlu1 %v4249_v55  ;;  %3870 = vmatprep.subr.bf16.mxu0 %v4099_v1 }
 0x3dc   : > { %3899 = vmatpush3.bf16.msra.mxu1 %v4105_v12 }
 0x3dd   : > { %v4251_v23 = vpop.eup %4250  ;;  %3871 = vmatpush3.bf16.msra.mxu0 %v4099_v1  ;;  %3900 = vmatprep.subr.bf16.mxu1 %v4106_v21 }
 0x3de   : > { %1727 = vadd.xlane.f32.xlu1 %v4251_v23  ;;  %3872 = vmatprep.subr.bf16.mxu0 %v4100_v34 }
 0x3df   : > { %v4253_v19 = vpop.eup %4252 }
 0x3e0   : > { %3901 = vmatpush3.bf16.msra.mxu1 %v4106_v21  ;;  %v5622_v55 = vpop.xlane.xlu0 %1657 }
 0x3e1   : > { %v4255_v38 = vpop.eup %4254  ;;  %3873 = vmatpush3.bf16.msra.mxu0 %v4100_v34  ;;  %3902 = vmatprep.subr.bf16.mxu1 %v4107_v42  ;;  %6546 = vst [vmem:[#allocation89_spill] sm:$0xff] %v5622_v55 }
 0x3e2   : > { %1729 = vadd.xlane.f32.xlu1 %v4253_v19  ;;  %1723 = vadd.xlane.f32.xlu0 %v4255_v38  ;;  %v5626_v19 = vpop.xlane.xlu1 %1655 }
 0x3e3   : > { %v4257_v43 = vpop.eup %4256  ;;  %3874 = vmatprep.subr.bf16.mxu0 %v4101_v45  ;;  %6547 = vst [vmem:[#allocation90_spill] sm:$0xff] %v5626_v19 }
 0x3e4   : > { %3903 = vmatpush3.bf16.msra.mxu1 %v4107_v42  ;;  %v5624_v23 = vpop.xlane.xlu0 %1653 }
 0x3e5   : > { %3875 = vmatpush3.bf16.msra.mxu0 %v4101_v45  ;;  %3904 = vmatprep.subr.bf16.mxu1 %v4108_v59 }
 0x3e6   : > { %1725 = vadd.xlane.f32.xlu1 %v4257_v43  ;;  %3876 = vmatprep.subr.bf16.mxu0 %v4102_v51  ;;  %v5628_v48 = vpop.xlane.xlu1 %1651 }
 0x3e8   : > { %3905 = vmatpush3.bf16.msra.mxu1 %v4108_v59 }
 0x3e9   : > { %3877 = vmatpush3.bf16.msra.mxu0 %v4102_v51  ;;  %3906 = vmatprep.subr.bf16.mxu1 %v4109_v58 }
 0x3ea   : > { %3878 = vmatprep.subr.bf16.mxu0 %v4103_v33 }
 0x3ec   : > { %3907 = vmatpush3.bf16.msra.mxu1 %v4109_v58 }
 0x3ed   : > { %3879 = vmatpush3.bf16.msra.mxu0 %v4103_v33 }
 0x44b   : > { %v1712_v61 = vpop.xlane.xlu0 %1711 }
 0x44c   : > { %4258 = vlog2.f32 %v1712_v61 }
 0x44f   : > { %v1708_v38 = vpop.xlane.xlu0 %1707 }
 0x450   : > { %4260 = vlog2.f32 %v1708_v38 }
 0x453   : > { %v1710_v43 = vpop.xlane.xlu0 %1709 }
 0x454   : > { %4262 = vlog2.f32 %v1710_v43 }
 0x456   : > { %v4259_v1 = vpop.eup %4258 }
 0x457   : > { %v1714_v2 = vpop.xlane.xlu1 %1713  ;;  %v1744_v45 = vmul.f32 0.6931472, %v4259_v1 }
 0x458   : > { %4264 = vlog2.f32 %v1714_v2 }
 0x459   : > { %v1773_v21 = vadd.f32 %v1744_v45, %v5562_v13 }
 0x45a   : > { %v4261_v34 = vpop.eup %4260 }
 0x45b   : > { %v1740_v51 = vmul.f32 0.6931472, %v4261_v34  ;;  %v5630_v33 = vpop.xlane.xlu0 %1719  ;;  %v1837_v43 = vsub.f32 %v1773_v21, %v5560_v46 }
 0x45d   : > { %v1771_v4 = vadd.f32 %v1740_v51, %v5568_v41  ;;  %v1854_v51 = vsel %vm1181_vm6, %v1837_v43, 0.0 }
 0x45e   : > { %v4263_v12 = vpop.eup %4262 }
 0x45f   : > { %v1742_v42 = vmul.f32 0.6931472, %v4263_v12  ;;  %v1716_v59 = vpop.xlane.xlu0 %1715  ;;  %v1835_v58 = vsub.f32 %v1771_v4, %v5578_v60 }
 0x460   : > { %4266 = vlog2.f32 %v1716_v59  ;;  %v2382_v59 = vld [vmem:[#allocation7 + $0x30] ss:$0 sm:$0xff] }
 0x461   : > { %v1772_v61 = vadd.f32 %v1742_v42, %v5574_v47  ;;  %v1851_v34 = vsel %vm1181_vm6, %v1835_v58, 0.0 }
 0x462   : > { %v4265_v38 = vpop.eup %4264 }
 0x463   : > { %v1836_v2 = vsub.f32 %v1772_v61, %v5580_v17  ;;  %v1746_v1 = vmul.f32 0.6931472, %v4265_v38 }
 0x465   : > { %v1852_v41 = vsel %vm1181_vm6, %v1836_v2, 0.0  ;;  %v1774_v13 = vadd.f32 %v1746_v1, %v5582_v31 }
 0x466   : > { %v1853_v45 = vadd.f32 %v1852_v41, %v1851_v34 }
 0x467   : > { %v1838_v60 = vsub.f32 %v1774_v13, %v5586_v5 }
 0x468   : > { %v1855_v4 = vadd.f32 %v1854_v51, %v1853_v45 }
 0x469   : > { %v1856_v47 = vsel %vm1181_vm6, %v1838_v60, 0.0 }
 0x46a   : > { %v4267_v12 = vpop.eup %4266  ;;  %v1857_v46 = vadd.f32 %v1856_v47, %v1855_v4 }
 0x46b   : > { %v1748_v21 = vmul.f32 0.6931472, %v4267_v12 }
 0x46d   : > { %v1775_v17 = vadd.f32 %v1748_v21, %v5594_v40 }
 0x46f   : > { %v1839_v42 = vsub.f32 %v1775_v17, %v5592_v28 }
 0x471   : > { %v1858_v58 = vsel %vm1181_vm6, %v1839_v42, 0.0 }
 0x472   : > { %v5647_v61 = vadd.f32 %v1858_v58, %v1857_v46  ;;  %v3850_v31 = vpop.f32.mrb[48].mxu1 }
 0x473   : > { %v2474_v38 = vadd.f32 %v3850_v31, %v2382_v59  ;;  %v2465_v43 = vpop.f32.mrb[49].mxu1 }
 0x474   : > { %v2466_v2 = vadd.f32 %v2465_v43, %v2382_v59  ;;  %v3851_v5 = vpop.f32.mrb[50].mxu1 }
 0x475   : > { %v2477_v1 = vadd.f32 %v3851_v5, %v2382_v59  ;;  %v2468_v34 = vpop.f32.mrb[51].mxu1  ;;  %v2530_v13 = vmax.f32 %v2474_v38, 0.0 }
 0x476   : > { %v2469_v41 = vadd.f32 %v2468_v34, %v2382_v59  ;;  %v2528_v51 = vmax.f32 %v2466_v2, 0.0 }
 0x477   : > { %v2531_v45 = vmax.f32 %v2477_v1, 0.0 }
 0x478   : > { %v2529_v60 = vmax.f32 %v2469_v41, 0.0 }
 0x479   : > { %v2545_v40 = vpack.c.bf16 %v2531_v45, %v2530_v13 }
 0x47a   : > { %v2544_v4 = vpack.c.bf16 %v2529_v60, %v2528_v51  ;;  %v3854_v28 = vpop.f32.mrb[52].mxu1 }
 0x47b   : > { %v2490_v47 = vadd.f32 %v3854_v28, %v2382_v59  ;;  %v2481_v12 = vpop.f32.mrb[53].mxu1 }
 0x47c   : > { %v2482_v21 = vadd.f32 %v2481_v12, %v2382_v59  ;;  %v3855_v46 = vpop.f32.mrb[54].mxu1  ;;  %3880 = vmatprep.mubr.bf16.mxu0 %v2544_v4 }
 0x47d   : > { %v2493_v17 = vadd.f32 %v3855_v46, %v2382_v59  ;;  %v2484_v42 = vpop.f32.mrb[55].mxu1  ;;  %3881 = vmatmul.mubr.bf16.vlgmr.msra.gmra.mrb[64].mxu0 %v2545_v40  ;;  %v2534_v31 = vmax.f32 %v2490_v47, 0.0 }
 0x47e   : > { %v2485_v58 = vadd.f32 %v2484_v42, %v2382_v59  ;;  %v2532_v5 = vmax.f32 %v2482_v21, 0.0 }
 0x47f   : > { %v2535_v43 = vmax.f32 %v2493_v17, 0.0 }
 0x480   : > { %v2533_v34 = vmax.f32 %v2485_v58, 0.0 }
 0x481   : > { %v2547_v38 = vpack.c.bf16 %v2535_v43, %v2534_v31 }
 0x482   : > { %v2546_v1 = vpack.c.bf16 %v2533_v34, %v2532_v5  ;;  %v3858_v2 = vpop.f32.mrb[56].mxu1 }
 0x483   : > { %v2506_v41 = vadd.f32 %v3858_v2, %v2382_v59  ;;  %v2497_v13 = vpop.f32.mrb[57].mxu1 }
 0x484   : > { %v2498_v45 = vadd.f32 %v2497_v13, %v2382_v59  ;;  %v3859_v51 = vpop.f32.mrb[58].mxu1  ;;  %3884 = vmatprep.mubr.bf16.mxu0 %v2546_v1 }
 0x485   : > { %v2509_v60 = vadd.f32 %v3859_v51, %v2382_v59  ;;  %v2500_v28 = vpop.f32.mrb[59].mxu1  ;;  %3885 = vmatmul.mubr.bf16.gmra.mrb[68].mxu0 %v2547_v38  ;;  %v2538_v12 = vmax.f32 %v2506_v41, 0.0 }
 0x486   : > { %v2501_v4 = vadd.f32 %v2500_v28, %v2382_v59  ;;  %v2536_v40 = vmax.f32 %v2498_v45, 0.0  ;;  %v4110_v45 = vld [vmem:[#allocation6 + $0x1d0] ss:$36 sps:$4 sm:$0xff]  }
 0x487   : > { %v2539_v46 = vmax.f32 %v2509_v60, 0.0  ;;  %3908 = vmatprep.subr.bf16.mxu1 %v4110_v45 }
 0x488   : > { %v2537_v42 = vmax.f32 %v2501_v4, 0.0  ;;  %3909 = vmatpush3.bf16.msra.mxu1 %v4110_v45  ;;  %v4111_v4 = vld [vmem:[#allocation6 + $0x218] ss:$36 sps:$4 sm:$0xff]  }
 0x489   : > { %v2549_v47 = vpack.c.bf16 %v2539_v46, %v2538_v12  ;;  %3910 = vmatprep.subr.bf16.mxu1 %v4111_v4  ;;  %v2568_v46 = vld [vmem:[#allocation7 + $0x38] ss:$0 sm:$0xff] }
 0x48a   : > { %v2548_v17 = vpack.c.bf16 %v2537_v42, %v2536_v40 }
 0x48b   : > { %v3862_v21 = vpop.f32.mrb[60].mxu1 }
 0x48c   : > { %v2522_v58 = vadd.f32 %v3862_v21, %v2382_v59  ;;  %v2513_v31 = vpop.f32.mrb[61].mxu1  ;;  %3888 = vmatprep.mubr.bf16.mxu0 %v2548_v17  ;;  %3911 = vmatpush3.bf16.msra.mxu1 %v4111_v4 }
 0x48d   : > { %v2514_v43 = vadd.f32 %v2513_v31, %v2382_v59  ;;  %v3863_v5 = vpop.f32.mrb[62].mxu1  ;;  %3889 = vmatmul.mubr.bf16.gmra.mrb[72].mxu0 %v2549_v47 }
 0x48e   : > { %v2525_v34 = vadd.f32 %v3863_v5, %v2382_v59  ;;  %v2516_v2 = vpop.f32.mrb[63].mxu1  ;;  %v2542_v13 = vmax.f32 %v2522_v58, 0.0 }
 0x48f   : > { %v2517_v1 = vadd.f32 %v2516_v2, %v2382_v59  ;;  %v2540_v38 = vmax.f32 %v2514_v43, 0.0 }
 0x490   : > { %v2543_v51 = vmax.f32 %v2525_v34, 0.0 }
 0x491   : > { %v2541_v28 = vmax.f32 %v2517_v1, 0.0 }
 0x492   : > { %v2551_v41 = vpack.c.bf16 %v2543_v51, %v2542_v13 }
 0x493   : > { %v2550_v60 = vpack.c.bf16 %v2541_v28, %v2540_v38 }
 0x495   : > { %3892 = vmatprep.mubr.bf16.mxu0 %v2550_v60 }
 0x496   : > { %3893 = vmatmul.mubr.bf16.gmra.mrb[76].mxu0 %v2551_v41 }
 0x550   : > { %v3882_v12 = vpop.f32.mrb[64].mxu0 }
 0x551   : > { %v2651_v40 = vpop.f32.mrb[65].mxu0  ;;  %v2660_v47 = vadd.f32 %v3882_v12, %v2568_v46 }
 0x552   : > { %v3883_v42 = vpop.f32.mrb[66].mxu0  ;;  %v2652_v21 = vadd.f32 %v2651_v40, %v2568_v46 }
 0x553   : > { %v2663_v59 = vadd.f32 %v3883_v42, %v2568_v46  ;;  %v2654_v17 = vpop.f32.mrb[67].mxu0 }
 0x554   : > { %v2655_v58 = vadd.f32 %v2654_v17, %v2568_v46 }
 0x555   : > { %v2715_v31 = vpack.c.bf16 %v2663_v59, %v2660_v47 }
 0x556   : > { %v2714_v43 = vpack.c.bf16 %v2655_v58, %v2652_v21 }
 0x558   : > { %v3886_v5 = vpop.f32.mrb[68].mxu0  ;;  %3912 = vmatprep.mubr.bf16.mxu1 %v2714_v43 }
 0x559   : > { %v2667_v34 = vpop.f32.mrb[69].mxu0  ;;  %3913 = vmatmul.mubr.bf16.vlgmr.msra.gmra.mrb[64].mxu1 %v2715_v31  ;;  %v2676_v1 = vadd.f32 %v3886_v5, %v2568_v46 }
 0x55a   : > { %v3887_v2 = vpop.f32.mrb[70].mxu0  ;;  %v2668_v38 = vadd.f32 %v2667_v34, %v2568_v46 }
 0x55b   : > { %v2679_v13 = vadd.f32 %v3887_v2, %v2568_v46  ;;  %v2670_v51 = vpop.f32.mrb[71].mxu0 }
 0x55c   : > { %v2671_v28 = vadd.f32 %v2670_v51, %v2568_v46 }
 0x55d   : > { %v2717_v41 = vpack.c.bf16 %v2679_v13, %v2676_v1 }
 0x55e   : > { %v2716_v60 = vpack.c.bf16 %v2671_v28, %v2668_v38 }
 0x560   : > { %v3890_v45 = vpop.f32.mrb[72].mxu0  ;;  %3916 = vmatprep.mubr.bf16.mxu1 %v2716_v60 }
 0x561   : > { %v2683_v4 = vpop.f32.mrb[73].mxu0  ;;  %3917 = vmatmul.mubr.bf16.gmra.mrb[68].mxu1 %v2717_v41  ;;  %v2692_v40 = vadd.f32 %v3890_v45, %v2568_v46  ;;  %v5652_v41 = vld [vmem:[#allocation7 + $0x40] ss:$0 sm:$0xff]  ;;  %v5654_v45 = vstv %s3428_s18 }
 0x562   : > { %v3891_v12 = vpop.f32.mrb[74].mxu0  ;;  %v2684_v59 = vadd.f32 %v2683_v4, %v2568_v46 }
 0x563   : > { %v2695_v42 = vadd.f32 %v3891_v12, %v2568_v46  ;;  %v2686_v47 = vpop.f32.mrb[75].mxu0 }
 0x564   : > { %v2687_v17 = vadd.f32 %v2686_v47, %v2568_v46 }
 0x565   : > { %v2719_v21 = vpack.c.bf16 %v2695_v42, %v2692_v40 }
 0x566   : > { %v2718_v58 = vpack.c.bf16 %v2687_v17, %v2684_v59 }
 0x568   : > { %3920 = vmatprep.mubr.bf16.mxu1 %v2718_v58 }
 0x569   : > { %v3894_v31 = vpop.f32.mrb[76].mxu0  ;;  %3921 = vmatmul.mubr.bf16.gmra.mrb[72].mxu1 %v2719_v21 }
 0x56a   : > { %v2699_v43 = vpop.f32.mrb[77].mxu0  ;;  %v2708_v34 = vadd.f32 %v3894_v31, %v2568_v46 }
 0x56b   : > { %v3895_v5 = vpop.f32.mrb[78].mxu0  ;;  %v2700_v13 = vadd.f32 %v2699_v43, %v2568_v46 }
 0x56c   : > { %v2711_v2 = vadd.f32 %v3895_v5, %v2568_v46  ;;  %v2702_v1 = vpop.f32.mrb[79].mxu0 }
 0x56d   : > { %v2703_v51 = vadd.f32 %v2702_v1, %v2568_v46 }
 0x56e   : > { %v2721_v38 = vpack.c.bf16 %v2711_v2, %v2708_v34 }
 0x56f   : > { %v2720_v28 = vpack.c.bf16 %v2703_v51, %v2700_v13 }
 0x571   : > { %3924 = vmatprep.mubr.bf16.mxu1 %v2720_v28 }
 0x572   : > { %3925 = vmatmul.mubr.bf16.gmra.mrb[76].mxu1 %v2721_v38 }
 0x62c   : > { %v3914_v60 = vpop.f32.mrb[64].mxu1 }
 0x62d   : > { %v2830_v4 = vadd.f32 %v3914_v60, %v5652_v41  ;;  %v2821_v12 = vpop.f32.mrb[65].mxu1 }
 0x62e   : > { %v2822_v40 = vadd.f32 %v2821_v12, %v5652_v41  ;;  %v3915_v46 = vpop.f32.mrb[66].mxu1 }
 0x62f   : > { %v2887_v42 = vmul.f32 %v5654_v45, %v2830_v4  ;;  %v2833_v47 = vadd.f32 %v3915_v46, %v5652_v41  ;;  %v2824_v59 = vpop.f32.mrb[67].mxu1  ;;  %v3095_v17 = vsel %vm475_vm3, %v2830_v4, 0.0  ;;  %v5666_v21 = vsel %vm424_vm1, %v2830_v4, -1e+30 }
 0x630   : > { %v2885_v58 = vmul.f32 %v5654_v45, %v2822_v40  ;;  %v2825_v31 = vadd.f32 %v2824_v59, %v5652_v41  ;;  %3113 = vadd.xlane.f32.xlu1 %v3095_v17  ;;  %2937 = vmax.xlane.f32.xlu0 %v5666_v21  ;;  %v3093_v46 = vsel %vm473_vm0, %v2822_v40, 0.0 }
 0x631   : > { %v2903_v43 = vadd.f32 %v2887_v42, %v5301_v15  ;;  %v2888_v5 = vmul.f32 %v5654_v45, %v2833_v47  ;;  %v5681_v1 = vsel %vm424_vm1, %v2833_v47, -1e+30  ;;  %v5685_v15 = vsel %vm424_vm1, %v2822_v40, -1e+30 }
 0x632   : > { %v2901_v34 = vadd.f32 %v2885_v58, %v5306_v50  ;;  %v2886_v16 = vmul.f32 %v5654_v45, %v2825_v31  ;;  %v3096_v12 = vsel %vm476_vm4, %v2833_v47, 0.0  ;;  %v5722_v47 = vsel %vm424_vm1, %v2825_v31, -1e+30 }
 0x633   : > { %3199 = vst [vmem:[%s5675_s10 + $0x10] sm:$0xff] %v2903_v43  ;;  %v2904_v2 = vadd.f32 %v2888_v5, %v5313_v39 }
 0x634   : > { %3197 = vst [vmem:[%s5675_s10] sm:$0xff] %v2901_v34  ;;  %v2902_v50 = vadd.f32 %v2886_v16, %v5319_v20  ;;  %v3918_v13 = vpop.f32.mrb[68].mxu1  ;;  %2939 = vmax.xlane.f32.xlu1 %v5681_v1  ;;  %2933 = vmax.xlane.f32.xlu0 %v5685_v15 }
 0x635   : > { %3200 = vst [vmem:[%s5675_s10 + $0x18] sm:$0xff] %v2904_v2  ;;  %v5693_v51 = vadd.f32 %v3918_v13, %v5652_v41  ;;  %v2837_v39 = vpop.f32.mrb[69].mxu1  ;;  %v3094_v13 = vsel %vm474_vm2, %v2825_v31, 0.0 }
 0x636   : > { %3198 = vst [vmem:[%s5675_s10 + $0x8] sm:$0xff] %v2902_v50  ;;  %v2838_v38 = vadd.f32 %v2837_v39, %v5652_v41  ;;  %v3919_v28 = vpop.f32.mrb[70].mxu1 }
 0x637   : > { %v2891_v60 = vmul.f32 %v5654_v45, %v5693_v51  ;;  %v5700_v20 = vadd.f32 %v3919_v28, %v5652_v41  ;;  %v2840_v4 = vpop.f32.mrb[71].mxu1 }
 0x638   : > { %v2889_v42 = vmul.f32 %v5654_v45, %v2838_v38  ;;  %v5710_v59 = vadd.f32 %v2840_v4, %v5652_v41  ;;  %3115 = vadd.xlane.f32.xlu1 %v3096_v12  ;;  %3109 = vadd.xlane.f32.xlu0 %v3093_v46  ;;  %v5751_v39 = vsel %vm424_vm1, %v2838_v38, -1e+30 }
 0x639   : > { %v2907_v17 = vadd.f32 %v2891_v60, %v5362_v18  ;;  %v2892_v58 = vmul.f32 %v5654_v45, %v5700_v20  ;;  %v5727_v18 = vsel %vm424_vm1, %v5693_v51, -1e+30 }
 0x63a   : > { %v2905_v32 = vadd.f32 %v2889_v42, %v5368_v44  ;;  %v2890_v63 = vmul.f32 %v5654_v45, %v5710_v59  ;;  %v3097_v42 = vsel %vm477_vm5, %v2838_v38, 0.0 }
 0x63b   : > { %3203 = vst [vmem:[%s5675_s10 + $0x30] sm:$0xff] %v2907_v17  ;;  %v2908_v40 = vadd.f32 %v2892_v58, %v5372_v35  ;;  %v6548_v17 = vld [vmem:[#allocation69_spill] sm:$0xff] }
 0x63c   : > { %3201 = vst [vmem:[%s5675_s10 + $0x20] sm:$0xff] %v2905_v32  ;;  %v2906_v43 = vadd.f32 %v2890_v63, %v5381_v57  ;;  %v3922_v5 = vpop.f32.mrb[72].mxu1  ;;  %2935 = vmax.xlane.f32.xlu1 %v5722_v47  ;;  %2945 = vmax.xlane.f32.xlu0 %v5727_v18 }
 0x63d   : > { %3204 = vst [vmem:[%s5675_s10 + $0x38] sm:$0xff] %v2908_v40  ;;  %v5735_v44 = vadd.f32 %v3922_v5, %v5652_v41  ;;  %v2853_v35 = vpop.f32.mrb[73].mxu1 }
 0x63e   : > { %3202 = vst [vmem:[%s5675_s10 + $0x28] sm:$0xff] %v2906_v43  ;;  %v5739_v34 = vadd.f32 %v2853_v35, %v5652_v41  ;;  %v3923_v16 = vpop.f32.mrb[74].mxu1 }
 0x63f   : > { %v2895_v2 = vmul.f32 %v5654_v45, %v5735_v44  ;;  %v5744_v57 = vadd.f32 %v3923_v16, %v5652_v41  ;;  %v2856_v50 = vpop.f32.mrb[75].mxu1  ;;  %v5796_v16 = vsel %vm424_vm1, %v5700_v20, -1e+30 }
 0x640   : > { %v2893_v28 = vmul.f32 %v5654_v45, %v5739_v34  ;;  %v5756_v60 = vadd.f32 %v2856_v50, %v5652_v41  ;;  %3111 = vadd.xlane.f32.xlu1 %v3094_v13  ;;  %2941 = vmax.xlane.f32.xlu0 %v5751_v39 }
 0x641   : > { %v2911_v4 = vadd.f32 %v2895_v2, %v5424_v36  ;;  %v2896_v6 = vmul.f32 %v5654_v45, %v5744_v57  ;;  %v5773_v36 = vsel %vm424_vm1, %v5735_v44, -1e+30  ;;  %v5801_v2 = vsel %vm424_vm1, %v5739_v34, -1e+30 }
 0x642   : > { %v2909_v31 = vadd.f32 %v2893_v28, %v5435_v62  ;;  %v2894_v12 = vmul.f32 %v5654_v45, %v5756_v60  ;;  %v6549_v62 = vld [vmem:[#allocation28_spill] sm:$0xff] }
 0x643   : > { %3207 = vst [vmem:[%s5675_s10 + $0x50] sm:$0xff] %v2911_v4  ;;  %v2912_v46 = vadd.f32 %v2896_v6, %v5440_v24  ;;  %v1002_v63 = vsub.f32 %v6549_v62, %v5522_v22  ;;  %v5841_v62 = vsel %vm424_vm1, %v5744_v57, -1e+30 }
 0x644   : > { %3205 = vst [vmem:[%s5675_s10 + $0x40] sm:$0xff] %v2909_v31  ;;  %v2910_v58 = vadd.f32 %v2894_v12, %v6548_v17  ;;  %3117 = vadd.xlane.f32.xlu1 %v3097_v42  ;;  %2953 = vmax.xlane.f32.xlu0 %v5773_v36  ;;  %v6550_v42 = vld [vmem:[#allocation79_spill] sm:$0xff] }
 0x645   : > { %v3926_v32 = vpop.f32.mrb[76].mxu1  ;;  %3208 = vst [vmem:[%s5675_s10 + $0x58] sm:$0xff] %v2912_v46  ;;  %v1031_v28 = vmul.f32 1.442695, %v1002_v63  ;;  %v5821_v46 = vsel %vm424_vm1, %v5710_v59, -1e+30 }
 0x646   : > { %v5782_v24 = vadd.f32 %v3926_v32, %v5652_v41  ;;  %v2869_v37 = vpop.f32.mrb[77].mxu1  ;;  %3206 = vst [vmem:[%s5675_s10 + $0x48] sm:$0xff] %v2910_v58  ;;  %v6551_v17 = vld [vmem:[#allocation31_spill] sm:$0xff] }
 0x647   : > { %v5786_v38 = vadd.f32 %v2869_v37, %v5652_v41  ;;  %v3927_v40 = vpop.f32.mrb[78].mxu1  ;;  %v1003_v58 = vsub.f32 %v6551_v17, %v6550_v42  ;;  %4268 = vpow2.f32 %v1031_v28 }
 0x648   : > { %v2899_v43 = vmul.f32 %v5654_v45, %v5782_v24  ;;  %v5791_v5 = vadd.f32 %v3927_v40, %v5652_v41  ;;  %v2872_v35 = vpop.f32.mrb[79].mxu1  ;;  %2947 = vmax.xlane.f32.xlu1 %v5796_v16  ;;  %2949 = vmax.xlane.f32.xlu0 %v5801_v2 }
 0x649   : > { %v2897_v50 = vmul.f32 %v5654_v45, %v5786_v38  ;;  %v5806_v13 = vadd.f32 %v2872_v35, %v5652_v41  ;;  %v5846_v63 = vsel %vm424_vm1, %v5786_v38, -1e+30  ;;  %v1033_v37 = vmul.f32 1.442695, %v1003_v58  ;;  %v6558_v58 = vld [vmem:[#allocation78_spill] sm:$0xff] }
 0x64a   : > { %v2915_v4 = vadd.f32 %v2899_v43, %v5484_v30  ;;  %v2900_v6 = vmul.f32 %v5654_v45, %v5791_v5  ;;  %v5826_v30 = vsel %vm424_vm1, %v5782_v24, -1e+30  ;;  %v6554_v43 = vld [vmem:[#allocation33_spill] sm:$0xff]  ;;  %v5855_v35 = vsel %vm424_vm1, %v5756_v60, -1e+30 }
 0x64b   : > { %v2913_v31 = vadd.f32 %v2897_v50, %v5495_v29  ;;  %v2898_v12 = vmul.f32 %v5654_v45, %v5806_v13  ;;  %v6552_v29 = vld [vmem:[#allocation77_spill] sm:$0xff]  ;;  %vm478_vm7 = vcmp.eq.s32.totalorder %v4824_v0, %v6554_v43  ;;  %v6555_v50 = vld [vmem:[#allocation64_spill] sm:$0xff]  ;;  %4270 = vpow2.f32 %v1033_v37  ;;  %v6568_v43 = vld [vmem:[#allocation23_spill] sm:$0xff] }
 0x64c   : > { %3211 = vst [vmem:[%s5675_s10 + $0x70] sm:$0xff] %v2915_v4  ;;  %v2916_v41 = vadd.f32 %v2900_v6, %v5500_v11  ;;  %2943 = vmax.xlane.f32.xlu1 %v5821_v46  ;;  %2961 = vmax.xlane.f32.xlu0 %v5826_v30  ;;  %v6553_v11 = vld [vmem:[#allocation76_spill] sm:$0xff]  ;;  %v1792_v28 = vsel %vm478_vm7, %v6555_v50, 0.0 }
 0x64d   : > { %3209 = vst [vmem:[%s5675_s10 + $0x60] sm:$0xff] %v2913_v31  ;;  %v2914_v32 = vadd.f32 %v2898_v12, %v6552_v29  ;;  %v1671_v45 = vsub.f32 %v6553_v11, %v5628_v48  ;;  %v6556_v4 = vld [vmem:[#allocation84_spill] sm:$0xff]  ;;  %v1672_v29 = vsub.f32 %v6558_v58, %v5624_v23  ;;  %v5877_v11 = vsel %vm424_vm1, %v5806_v13, -1e+30  ;;  %v6563_v58 = vld [vmem:[#allocation19_spill] sm:$0xff] }
 0x64e   : > { %3212 = vst [vmem:[%s5675_s10 + $0x78] sm:$0xff] %v2916_v41  ;;  %v6557_v6 = vld [vmem:[#allocation32_spill] sm:$0xff]  ;;  %v5867_v41 = vsel %vm424_vm1, %v5791_v5, -1e+30 }
 0x64f   : > { %3210 = vst [vmem:[%s5675_s10 + $0x68] sm:$0xff] %v2914_v32  ;;  %v1699_v40 = vmul.f32 1.442695, %v1671_v45  ;;  %v1004_v31 = vsub.f32 %v6557_v6, %v6556_v4  ;;  %v6559_v32 = vld [vmem:[#allocation34_spill] sm:$0xff]  ;;  %v6561_v6 = vld [vmem:[#allocation36_spill] sm:$0xff] }
 0x650   : > { %2955 = vmax.xlane.f32.xlu1 %v5841_v62  ;;  %2957 = vmax.xlane.f32.xlu0 %v5846_v63  ;;  %vm479_vm8 = vcmp.eq.s32.totalorder %v4824_v0, %v6559_v32  ;;  %v6560_v45 = vld [vmem:[#allocation62_spill] sm:$0xff]  ;;  %vm480_vm9 = vcmp.eq.s32.totalorder %v4824_v0, %v6561_v6  ;;  %v5946_v6 = vpop.xlane.xlu1 %1721 }
 0x651   : > { %4272 = vpow2.f32 %v1699_v40  ;;  %v4269_v12 = vpop.eup %4268  ;;  %v1035_v17 = vmul.f32 1.442695, %v1004_v31  ;;  %v1793_v37 = vsel %vm479_vm8, %v6560_v45, 0.0  ;;  %v1701_v40 = vmul.f32 1.442695, %v1672_v29  ;;  %v6562_v31 = vld [vmem:[#allocation63_spill] sm:$0xff] }
 0x652   : > { %v1122_v45 = vsel %vm478_vm7, %v6563_v58, 0.0  ;;  %v6566_v4 = vld [vmem:[#allocation66_spill] sm:$0xff]  ;;  %v6567_v58 = vld [vmem:[#allocation37_spill] sm:$0xff] }
 0x653   : > { %4274 = vpow2.f32 %v1035_v17  ;;  %v6564_v17 = vld [vmem:[#allocation73_spill] sm:$0xff]  ;;  %vm482_vm11 = vcmp.eq.s32.totalorder %v4824_v0, %v6567_v58 }
 0x654   : > { %2951 = vmax.xlane.f32.xlu1 %v5855_v35  ;;  %1813 = vadd.xlane.f32.xlu0 %v1792_v28  ;;  %4276 = vpow2.f32 %v1701_v40  ;;  %v1673_v29 = vsub.f32 %v6564_v17, %v5626_v19  ;;  %v3098_v40 = vsel %vm478_vm7, %v5710_v59, 0.0  ;;  %v1126_v59 = vsel %vm482_vm11, %v6568_v43, 0.0 }
 0x655   : > { %v4271_v50 = vpop.eup %4270 }
 0x658   : > { %2963 = vmax.xlane.f32.xlu1 %v5867_v41  ;;  %1063 = vadd.xlane.f32.xlu0 %v4269_v12  ;;  %v1794_v12 = vsel %vm480_vm9, %v6562_v31, 0.0 }
 0x65b   : > { %v4273_v28 = vpop.eup %4272 }
 0x65c   : > { %2959 = vmax.xlane.f32.xlu1 %v5877_v11  ;;  %1815 = vadd.xlane.f32.xlu0 %v1793_v37 }
 0x65d   : > { %v4275_v37 = vpop.eup %4274 }
 0x65e   : > { %v4277_v31 = vpop.eup %4276 }
 0x660   : > { %1065 = vadd.xlane.f32.xlu0 %v4271_v50  ;;  %1731 = vadd.xlane.f32.xlu1 %v4273_v28  ;;  %v1703_v50 = vmul.f32 1.442695, %v1673_v29  ;;  %v6565_v28 = vld [vmem:[#allocation35_spill] sm:$0xff] }
 0x661   : > { %vm481_vm10 = vcmp.eq.s32.totalorder %v4824_v0, %v6565_v28 }
 0x662   : > { %4278 = vpow2.f32 %v1703_v50 }
 0x664   : > { %1817 = vadd.xlane.f32.xlu0 %v1794_v12  ;;  %1143 = vadd.xlane.f32.xlu1 %v1122_v45  ;;  %v1795_v12 = vsel %vm481_vm10, %v6566_v4, 0.0  ;;  %v6569_v45 = vld [vmem:[#allocation20_spill] sm:$0xff]  ;;  %v6570_v4 = vld [vmem:[#allocation75_spill] sm:$0xff] }
 0x665   : > { %v1123_v17 = vsel %vm479_vm8, %v6569_v45, 0.0  ;;  %v1674_v29 = vsub.f32 %v6570_v4, %v5622_v55  ;;  %v3101_v45 = vsel %vm481_vm10, %v5739_v34, 0.0  ;;  %v1718_v4 = vpop.xlane.xlu1 %1717 }
 0x667   : > { %v1705_v50 = vmul.f32 1.442695, %v1674_v29 }
 0x668   : > { %1067 = vadd.xlane.f32.xlu0 %v4275_v37  ;;  %3119 = vadd.xlane.f32.xlu1 %v3098_v40  ;;  %v3102_v37 = vsel %vm482_vm11, %v5756_v60, 0.0  ;;  %v3099_v40 = vsel %vm479_vm8, %v5693_v51, 0.0  ;;  %v3100_v60 = vsel %vm480_vm9, %v5700_v20, 0.0  ;;  %v6572_v51 = vld [vmem:[#allocation22_spill] sm:$0xff] }
 0x669   : > { %4280 = vpow2.f32 %v1705_v50  ;;  %v5948_v29 = vpop.xlane.xlu1 %1727 }
 0x66c   : > { %1819 = vadd.xlane.f32.xlu0 %v1795_v12  ;;  %1733 = vadd.xlane.f32.xlu1 %v4277_v31  ;;  %v4279_v31 = vpop.eup %4278  ;;  %v6571_v12 = vld [vmem:[#allocation21_spill] sm:$0xff] }
 0x66d   : > { %v1124_v43 = vsel %vm480_vm9, %v6571_v12, 0.0 }
 0x670   : > { %1151 = vadd.xlane.f32.xlu0 %v1126_v59  ;;  %1145 = vadd.xlane.f32.xlu1 %v1123_v17  ;;  %v1125_v59 = vsel %vm481_vm10, %v6572_v51, 0.0  ;;  %v6573_v17 = vld [vmem:[#allocation68_spill] sm:$0xff] }
 0x671   : > { %v1796_v20 = vsel %vm482_vm11, %v6573_v17, 0.0 }
 0x673   : > { %v4281_v32 = vpop.eup %4280 }
 0x674   : > { %3127 = vadd.xlane.f32.xlu0 %v3102_v37  ;;  %3121 = vadd.xlane.f32.xlu1 %v3099_v40  ;;  %v5950_v37 = vpop.xlane.xlu1 %1729  ;;  %v5952_v40 = vpop.xlane.xlu0 %1723 }
 0x678   : > { %1735 = vadd.xlane.f32.xlu1 %v4279_v31  ;;  %v5954_v50 = vpop.xlane.xlu1 %1725 }
 0x67c   : > { %1147 = vadd.xlane.f32.xlu1 %v1124_v43 }
 0x680   : > { %3123 = vadd.xlane.f32.xlu1 %v3100_v60 }
 0x684   : > { %1737 = vadd.xlane.f32.xlu1 %v4281_v32 }
 0x688   : > { %1149 = vadd.xlane.f32.xlu1 %v1125_v59 }
 0x68c   : > { %3125 = vadd.xlane.f32.xlu1 %v3101_v45 }
 0x690   : > { %1821 = vadd.xlane.f32.xlu1 %v1796_v20 }
 0x6bd   : > { %v5956_v28 = vpop.xlane.xlu0 %2937  ;;  %v5958_v34 = vpop.xlane.xlu1 %3113 }
 0x6be   : > { %v2967_v58 = vsub.f32 %v5666_v21, %v5956_v28 }
 0x6c0   : > { %v2985_v31 = vmul.f32 1.442695, %v2967_v58 }
 0x6c1   : > { %v5962_v12 = vpop.xlane.xlu0 %2933  ;;  %v5964_v43 = vpop.xlane.xlu1 %2939 }
 0x6c2   : > { %4282 = vpow2.f32 %v2985_v31  ;;  %v2965_v60 = vsub.f32 %v5685_v15, %v5962_v12  ;;  %v2968_v32 = vsub.f32 %v5681_v1, %v5964_v43 }
 0x6c4   : > { %v2981_v51 = vmul.f32 1.442695, %v2965_v60  ;;  %v2987_v59 = vmul.f32 1.442695, %v2968_v32 }
 0x6c5   : > { %v5970_v45 = vpop.xlane.xlu0 %3109  ;;  %v5972_v17 = vpop.xlane.xlu1 %3115 }
 0x6c6   : > { %6574 = vst [vmem:[#allocation69_spill] sm:$0xff] %v5972_v17  ;;  %4284 = vpow2.f32 %v2981_v51  ;;  %v6600_v17 = vld [vmem:[#allocation50_spill] sm:$0xff] }
 0x6c7   : > { %4286 = vpow2.f32 %v2987_v59 }
 0x6c8   : > { %4288 = vlog2.f32 %v1718_v4 }
 0x6c9   : > { %v5974_v21 = vpop.xlane.xlu0 %2945  ;;  %v5976_v20 = vpop.xlane.xlu1 %2935 }
 0x6ca   : > { %6575 = vst [vmem:[#allocation28_spill] sm:$0xff] %v5974_v21  ;;  %v2971_v58 = vsub.f32 %v5727_v18, %v5974_v21  ;;  %v2966_v15 = vsub.f32 %v5722_v47, %v5976_v20 }
 0x6cc   : > { %v4283_v31 = vpop.eup %4282  ;;  %v2993_v1 = vmul.f32 1.442695, %v2971_v58  ;;  %v2983_v60 = vmul.f32 1.442695, %v2966_v15 }
 0x6cd   : > { %v5982_v32 = vpop.xlane.xlu0 %2941  ;;  %3017 = vadd.xlane.f32.xlu1 %v4283_v31  ;;  %v5984_v19 = vpop.xlane.xlu1 %3111 }
 0x6ce   : > { %6576 = vst [vmem:[#allocation31_spill] sm:$0xff] %v5982_v32  ;;  %4290 = vpow2.f32 %v2993_v1  ;;  %v2969_v51 = vsub.f32 %v5751_v39, %v5982_v32 }
 0x6cf   : > { %4292 = vpow2.f32 %v2983_v60  ;;  %v6581_v60 = vld [vmem:[#allocation80_spill] sm:$0xff] }
 0x6d0   : > { %v4285_v59 = vpop.eup %4284  ;;  %v2989_v55 = vmul.f32 1.442695, %v2969_v51 }
 0x6d1   : > { %v4287_v18 = vpop.eup %4286  ;;  %v5988_v22 = vpop.xlane.xlu0 %2953  ;;  %3013 = vadd.xlane.f32.xlu1 %v4285_v59 }
 0x6d2   : > { %6577 = vst [vmem:[#allocation77_spill] sm:$0xff] %v5988_v22  ;;  %v5990_v47 = vpop.xlane.xlu1 %3117  ;;  %4294 = vpow2.f32 %v2989_v55  ;;  %3019 = vadd.xlane.f32.xlu0 %v4287_v18  ;;  %v4289_v31 = vpop.eup %4288  ;;  %v6582_v18 = vld [vmem:[#allocation86_spill] sm:$0xff] }
 0x6d3   : > { %6578 = vst [vmem:[#allocation76_spill] sm:$0xff] %v5990_v47  ;;  %4296 = vlog2.f32 %v5630_v33  ;;  %v2975_v33 = vsub.f32 %v5773_v36, %v5988_v22  ;;  %v6594_v47 = vld [vmem:[#allocation67_spill] sm:$0xff] }
 0x6d4   : > { %4298 = vlog2.f32 %v6581_v60 }
 0x6d5   : > { %v5992_v4 = vpop.xlane.xlu0 %2949  ;;  %4300 = vlog2.f32 %v6582_v18 }
 0x6d6   : > { %6579 = vst [vmem:[#allocation33_spill] sm:$0xff] %v5992_v4  ;;  %v5994_v58 = vpop.xlane.xlu1 %2947  ;;  %v2973_v15 = vsub.f32 %v5801_v2, %v5992_v4 }
 0x6d7   : > { %6580 = vst [vmem:[#allocation64_spill] sm:$0xff] %v5994_v58  ;;  %v2972_v39 = vsub.f32 %v5796_v16, %v5994_v58 }
 0x6d8   : > { %v4291_v1 = vpop.eup %4290  ;;  %v2997_v51 = vmul.f32 1.442695, %v2973_v15  ;;  %v6584_v15 = vld [vmem:[#allocation38_spill] sm:$0xff] }
 0x6d9   : > { %v2995_v59 = vmul.f32 1.442695, %v2972_v39  ;;  %v4293_v55 = vpop.eup %4292  ;;  %v6003_v42 = vpop.xlane.xlu0 %2961  ;;  %3025 = vadd.xlane.f32.xlu1 %v4291_v1  ;;  %vm483_vm12 = vcmp.eq.s32.totalorder %v4824_v0, %v6584_v15  ;;  %v1750_v39 = vmul.f32 0.6931472, %v4289_v31  ;;  %v6585_v1 = vld [vmem:[#allocation81_spill] sm:$0xff]  ;;  %v6588_v31 = vld [vmem:[#allocation24_spill] sm:$0xff] }
 0x6da   : > { %v6005_v21 = vpop.xlane.xlu1 %2943  ;;  %4302 = vpow2.f32 %v2997_v51  ;;  %3015 = vadd.xlane.f32.xlu0 %v4293_v55  ;;  %v6586_v51 = vld [vmem:[#allocation65_spill] sm:$0xff]  ;;  %v1127_v55 = vsel %vm483_vm12, %v6588_v31, 0.0 }
 0x6db   : > { %6583 = vst [vmem:[#allocation32_spill] sm:$0xff] %v6005_v21  ;;  %v2970_v16 = vsub.f32 %v5821_v46, %v6005_v21  ;;  %4304 = vpow2.f32 %v2995_v59  ;;  %v1797_v46 = vsel %vm483_vm12, %v6586_v51, 0.0  ;;  %v3001_v59 = vmul.f32 1.442695, %v2975_v33 }
 0x6dc   : > { %v4295_v2 = vpop.eup %4294  ;;  %4306 = vlog2.f32 %v5538_v3  ;;  %v1776_v3 = vadd.f32 %v1750_v39, %v5602_v27 }
 0x6dd   : > { %v2991_v60 = vmul.f32 1.442695, %v2970_v16  ;;  %4308 = vlog2.f32 %v6585_v1  ;;  %v6015_v18 = vpop.xlane.xlu0 %2957  ;;  %3021 = vadd.xlane.f32.xlu1 %v4295_v2  ;;  %v4297_v16 = vpop.eup %4296 }
 0x6de   : > { %v6021_v36 = vpop.xlane.xlu1 %2955  ;;  %4310 = vlog2.f32 %v5946_v6  ;;  %1823 = vadd.xlane.f32.xlu0 %v1797_v46  ;;  %v4299_v51 = vpop.eup %4298  ;;  %v6590_v46 = vld [vmem:[#allocation83_spill] sm:$0xff] }
 0x6df   : > { %6587 = vst [vmem:[#allocation78_spill] sm:$0xff] %v6021_v36  ;;  %4312 = vpow2.f32 %v2991_v60  ;;  %v4301_v6 = vpop.eup %4300  ;;  %v1752_v60 = vmul.f32 0.6931472, %v4297_v16 }
 0x6e0   : > { %4314 = vlog2.f32 %v5542_v52 }
 0x6e1   : > { %v1814_v2 = vpop.xlane.xlu0 %1813  ;;  %1153 = vadd.xlane.f32.xlu1 %v1127_v55  ;;  %4316 = vpow2.f32 %v3001_v59  ;;  %v1777_v16 = vadd.f32 %v1752_v60, %v5588_v8  ;;  %v6593_v8 = vld [vmem:[#allocation46_spill] sm:$0xff] }
 0x6e2   : > { %v6030_v1 = vpop.xlane.xlu1 %2951  ;;  %v1840_v22 = vsub.f32 %v1776_v3, %v1814_v2  ;;  %4318 = vlog2.f32 %v6590_v46  ;;  %v1072_v3 = vmul.f32 0.6931472, %v4301_v6  ;;  %v1070_v2 = vmul.f32 0.6931472, %v4299_v51 }
 0x6e3   : > { %6589 = vst [vmem:[#allocation34_spill] sm:$0xff] %v6030_v1  ;;  %4320 = vlog2.f32 %v5952_v40  ;;  %v2974_v32 = vsub.f32 %v5855_v35, %v6030_v1 }
 0x6e4   : > { %v4303_v33 = vpop.eup %4302  ;;  %v1860_v27 = vsel %vm1181_vm6, %v1840_v22, 0.0  ;;  %v3103_v22 = vsel %vm483_vm12, %v5735_v44, 0.0  ;;  %4322 = vlog2.f32 %v5550_v56  ;;  %v1102_v60 = vadd.f32 %v1072_v3, %v6593_v8 }
 0x6e5   : > { %v4305_v39 = vpop.eup %4304  ;;  %v1861_v31 = vadd.f32 %v1860_v27, %v5647_v61  ;;  %v6035_v4 = vpop.xlane.xlu0 %1063  ;;  %3029 = vadd.xlane.f32.xlu1 %v4303_v33  ;;  %v2976_v44 = vsub.f32 %v5841_v62, %v6021_v36  ;;  %v6599_v36 = vld [vmem:[#allocation47_spill] sm:$0xff] }
 0x6e6   : > { %6591 = vst [vmem:[#allocation62_spill] sm:$0xff] %v6035_v4  ;;  %v6037_v52 = vpop.xlane.xlu1 %2963  ;;  %v4307_v55 = vpop.eup %4306  ;;  %3027 = vadd.xlane.f32.xlu0 %v4305_v39  ;;  %v6592_v39 = vld [vmem:[#allocation39_spill] sm:$0xff]  ;;  %v1166_v21 = vsub.f32 %v1102_v60, %v6599_v36  ;;  %v6604_v60 = vld [vmem:[#allocation49_spill] sm:$0xff] }
 0x6e7   : > { %v4309_v58 = vpop.eup %4308  ;;  %v1074_v46 = vmul.f32 0.6931472, %v4307_v55  ;;  %vm484_vm13 = vcmp.eq.s32.totalorder %v4824_v0, %v6592_v39 }
 0x6e8   : > { %v4311_v59 = vpop.eup %4310  ;;  %v1076_v15 = vmul.f32 0.6931472, %v4309_v58  ;;  %v1798_v56 = vsel %vm484_vm13, %v6594_v47, 0.0  ;;  %v6598_v58 = vld [vmem:[#allocation48_spill] sm:$0xff]  ;;  %v3003_v47 = vmul.f32 1.442695, %v2976_v44 }
 0x6e9   : > { %v4313_v61 = vpop.eup %4312  ;;  %v1816_v27 = vpop.xlane.xlu0 %1815  ;;  %3129 = vadd.xlane.f32.xlu1 %v3103_v22  ;;  %v1754_v51 = vmul.f32 0.6931472, %v4311_v59  ;;  %v1103_v59 = vadd.f32 %v1074_v46, %v6598_v58  ;;  %v6602_v46 = vld [vmem:[#allocation44_spill] sm:$0xff]  ;;  %v6605_v44 = vld [vmem:[#allocation51_spill] sm:$0xff]  ;;  %v1183_v58 = vsel %vm1181_vm6, %v1166_v21, 0.0 }
 0x6ea   : > { %v6045_v33 = vpop.xlane.xlu1 %2959  ;;  %v1841_v6 = vsub.f32 %v1777_v16, %v1816_v27  ;;  %3023 = vadd.xlane.f32.xlu0 %v4313_v61  ;;  %v4315_v40 = vpop.eup %4314  ;;  %v6595_v16 = vld [vmem:[#allocation40_spill] sm:$0xff]  ;;  %v6596_v61 = vld [vmem:[#allocation45_spill] sm:$0xff]  ;;  %v1104_v10 = vadd.f32 %v1076_v15, %v6600_v17  ;;  %4324 = vpow2.f32 %v3003_v47  ;;  %v6608_v47 = vld [vmem:[#allocation55_spill] sm:$0xff] }
 0x6eb   : > { %v4317_v55 = vpop.eup %4316  ;;  %vm485_vm14 = vcmp.eq.s32.totalorder %v4824_v0, %v6595_v16  ;;  %v1101_v27 = vadd.f32 %v1070_v2, %v6596_v61  ;;  %v6601_v2 = vld [vmem:[#allocation26_spill] sm:$0xff]  ;;  %v6603_v61 = vld [vmem:[#allocation25_spill] sm:$0xff]  ;;  %v1167_v17 = vsub.f32 %v1103_v59, %v6604_v60 }
 0x6ec   : > { %v1862_v22 = vsel %vm1181_vm6, %v1841_v6, 0.0  ;;  %v1078_v6 = vmul.f32 0.6931472, %v4315_v40  ;;  %v4319_v8 = vpop.eup %4318  ;;  %v1128_v36 = vsel %vm484_vm13, %v6603_v61, 0.0  ;;  %v3105_v59 = vsel %vm485_vm14, %v5786_v38, 0.0 }
 0x6ed   : > { %v1863_v4 = vadd.f32 %v1862_v22, %v1861_v31  ;;  %v6061_v3 = vpop.xlane.xlu0 %1065  ;;  %1825 = vadd.xlane.f32.xlu1 %v1798_v56  ;;  %v1778_v31 = vadd.f32 %v1754_v51, %v5598_v9  ;;  %v1129_v22 = vsel %vm485_vm14, %v6601_v2, 0.0  ;;  %v4321_v56 = vpop.eup %4320  ;;  %v1165_v40 = vsub.f32 %v1101_v27, %v6602_v46  ;;  %v6606_v46 = vld [vmem:[#allocation52_spill] sm:$0xff] }
 0x6ee   : > { %6597 = vst [vmem:[#allocation36_spill] sm:$0xff] %v6061_v3  ;;  %v6063_v62 = vpop.xlane.xlu1 %1731  ;;  %3033 = vadd.xlane.f32.xlu0 %v4317_v55  ;;  %v1105_v9 = vadd.f32 %v1078_v6, %v6605_v44  ;;  %v1080_v51 = vmul.f32 0.6931472, %v4319_v8  ;;  %v2979_v27 = vsub.f32 %v5826_v30, %v6003_v42  ;;  %v2999_v2 = vmul.f32 1.442695, %v2974_v32  ;;  %v6607_v6 = vld [vmem:[#allocation41_spill] sm:$0xff] }
 0x6ef   : > { %v1168_v1 = vsub.f32 %v1104_v10, %v6606_v46  ;;  %v1756_v3 = vmul.f32 0.6931472, %v4321_v56  ;;  %vm486_vm15 = vcmp.eq.s32.totalorder %v4824_v0, %v6607_v6  ;;  %v1182_v21 = vsel %vm1181_vm6, %v1165_v40, 0.0  ;;  %v6609_v56 = vld [vmem:[#allocation53_spill] sm:$0xff] }
 0x6f0   : > { %v3104_v10 = vsel %vm484_vm13, %v5744_v57, 0.0  ;;  %v1169_v38 = vsub.f32 %v1105_v9, %v6609_v56  ;;  %v3009_v40 = vmul.f32 1.442695, %v2979_v27  ;;  %4326 = vpow2.f32 %v2999_v2  ;;  %v6612_v27 = vld [vmem:[#allocation71_spill] sm:$0xff] }
 0x6f1   : > { %v1818_v55 = vpop.xlane.xlu0 %1817  ;;  %1157 = vadd.xlane.f32.xlu1 %v1129_v22  ;;  %v4323_v22 = vpop.eup %4322  ;;  %v1187_v44 = vsel %vm1181_vm6, %v1168_v1, 0.0  ;;  %v1779_v57 = vadd.f32 %v1756_v3, %v5614_v14  ;;  %v2980_v2 = vsub.f32 %v5867_v41, %v6037_v52 }
 0x6f2   : > { %v1144_v35 = vpop.xlane.xlu1 %1143  ;;  %v1842_v15 = vsub.f32 %v1778_v31, %v1818_v55  ;;  %1155 = vadd.xlane.f32.xlu0 %v1128_v36  ;;  %v1106_v31 = vadd.f32 %v1080_v51, %v6608_v47  ;;  %v1184_v55 = vadd.f32 %v1183_v58, %v1182_v21  ;;  %v1185_v36 = vsel %vm1181_vm6, %v1167_v17, 0.0  ;;  %v6611_v51 = vld [vmem:[#allocation42_spill] sm:$0xff] }
 0x6f3   : > { %v1082_v60 = vmul.f32 0.6931472, %v4323_v22  ;;  %vm487_vm0 = vcmp.eq.s32.totalorder %v4824_v0, %v6611_v51  ;;  %v1189_v14 = vsel %vm1181_vm6, %v1169_v38, 0.0  ;;  %4328 = vpow2.f32 %v3009_v40  ;;  %v6614_v21 = vld [vmem:[#allocation54_spill] sm:$0xff] }
 0x6f4   : > { %v1864_v61 = vsel %vm1181_vm6, %v1842_v15, 0.0  ;;  %v1170_v39 = vsub.f32 %v1106_v31, %v1144_v35  ;;  %v6610_v15 = vld [vmem:[#allocation74_spill] sm:$0xff]  ;;  %v1186_v17 = vadd.f32 %v1185_v36, %v1184_v55  ;;  %v4325_v47 = vpop.eup %4324  ;;  %v6615_v31 = vld [vmem:[#allocation85_spill] sm:$0xff]  ;;  %v3011_v36 = vmul.f32 1.442695, %v2980_v2 }
 0x6f5   : > { %v1865_v8 = vadd.f32 %v1864_v61, %v1863_v4  ;;  %v6094_v30 = vpop.xlane.xlu0 %1067  ;;  %3133 = vadd.xlane.f32.xlu1 %v3105_v59  ;;  %v2977_v4 = vsub.f32 %v5846_v63, %v6015_v18  ;;  %v1800_v9 = vsel %vm486_vm15, %v6610_v15, 0.0  ;;  %v1799_v63 = vsel %vm485_vm14, %v6612_v27, 0.0  ;;  %v6613_v59 = vld [vmem:[#allocation29_spill] sm:$0xff]  ;;  %v6616_v15 = vld [vmem:[#allocation87_spill] sm:$0xff] }
 0x6f6   : > { %v6100_v32 = vpop.xlane.xlu1 %3119  ;;  %3131 = vadd.xlane.f32.xlu0 %v3104_v10  ;;  %v1188_v22 = vadd.f32 %v1187_v44, %v1186_v17  ;;  %v1191_v46 = vsel %vm1181_vm6, %v1170_v39, 0.0  ;;  %v1131_v16 = vsel %vm487_vm0, %v6613_v59, 0.0  ;;  %v1107_v10 = vadd.f32 %v1082_v60, %v6614_v21  ;;  %v6618_v17 = vld [vmem:[#allocation72_spill] sm:$0xff] }
 0x6f7   : > { %v3005_v35 = vmul.f32 1.442695, %v2977_v4  ;;  %4330 = vlog2.f32 %v6615_v31  ;;  %v2978_v40 = vsub.f32 %v5877_v11, %v6045_v33  ;;  %v3107_v60 = vsel %vm487_vm0, %v5782_v24, 0.0 }
 0x6f8   : > { %v1190_v56 = vadd.f32 %v1189_v14, %v1188_v22 }
 0x6f9   : > { %v1820_v58 = vpop.xlane.xlu0 %1819  ;;  %1829 = vadd.xlane.f32.xlu1 %v1800_v9  ;;  %4332 = vpow2.f32 %v3005_v35  ;;  %v6617_v9 = vld [vmem:[#allocation43_spill] sm:$0xff]  ;;  %v3007_v11 = vmul.f32 1.442695, %v2978_v40  ;;  %v6621_v40 = vld [vmem:[#allocation57_spill] sm:$0xff] }
 0x6fa   : > { %v6119_v1 = vpop.xlane.xlu1 %1733  ;;  %v1843_v3 = vsub.f32 %v1779_v57, %v1820_v58  ;;  %1827 = vadd.xlane.f32.xlu0 %v1799_v63  ;;  %v1192_v4 = vadd.f32 %v1191_v46, %v1190_v56  ;;  %v4327_v39 = vpop.eup %4326  ;;  %4334 = vlog2.f32 %v5552_v7  ;;  %vm488_vm1 = vcmp.eq.s32.totalorder %v4824_v0, %v6617_v9 }
 0x6fb   : > { %4336 = vlog2.f32 %v6616_v15  ;;  %v1802_v24 = vsel %vm488_vm1, %v6618_v17, 0.0 }
 0x6fc   : > { %v1866_v61 = vsel %vm1181_vm6, %v1843_v3, 0.0  ;;  %4338 = vpow2.f32 %v3011_v36 }
 0x6fd   : > { %v6132_v38 = vadd.f32 %v1866_v61, %v1865_v8  ;;  %1161 = vadd.xlane.f32.xlu1 %v1131_v16  ;;  %v4329_v58 = vpop.eup %4328  ;;  %4340 = vpow2.f32 %v3007_v11  ;;  %v6619_v61 = vld [vmem:[#allocation56_spill] sm:$0xff]  ;;  %v1152_v56 = vpop.xlane.xlu0 %1151 }
 0x6fe   : > { %v1146_v41 = vpop.xlane.xlu1 %1145  ;;  %3035 = vadd.xlane.f32.xlu0 %v4325_v47  ;;  %4342 = vlog2.f32 %v5954_v50 }
 0x6ff   : > { %v1171_v55 = vsub.f32 %v1107_v10, %v1146_v41  ;;  %v6620_v41 = vld [vmem:[#allocation58_spill] sm:$0xff]  ;;  %4344 = vlog2.f32 %v5948_v29 }
 0x700   : > { %4346 = vlog2.f32 %v5950_v37 }
 0x701   : > { %v1193_v44 = vsel %vm1181_vm6, %v1171_v55, 0.0  ;;  %3137 = vadd.xlane.f32.xlu1 %v3107_v60  ;;  %v4331_v27 = vpop.eup %4330 }
 0x702   : > { %v1194_v8 = vadd.f32 %v1193_v44, %v1192_v4  ;;  %v6142_v57 = vpop.xlane.xlu1 %3121  ;;  %3031 = vadd.xlane.f32.xlu0 %v4327_v39  ;;  %v1084_v3 = vmul.f32 0.6931472, %v4331_v27  ;;  %v6622_v44 = vld [vmem:[#allocation27_spill] sm:$0xff]  ;;  %v3106_v27 = vsel %vm486_vm15, %v5806_v13, 0.0  ;;  %v3108_v13 = vsel %vm488_vm1, %v5791_v5, 0.0 }
 0x703   : > { %v4333_v63 = vpop.eup %4332  ;;  %v1130_v60 = vsel %vm486_vm15, %v6622_v44, 0.0 }
 0x704   : > { %v4335_v35 = vpop.eup %4334  ;;  %v1108_v59 = vadd.f32 %v1084_v3, %v6619_v61  ;;  %v6623_v3 = vld [vmem:[#allocation70_spill] sm:$0xff] }
 0x705   : > { %1833 = vadd.xlane.f32.xlu1 %v1802_v24  ;;  %v4337_v2 = vpop.eup %4336  ;;  %v1086_v10 = vmul.f32 0.6931472, %v4335_v35  ;;  %v1801_v35 = vsel %vm487_vm0, %v6623_v3, 0.0 }
 0x706   : > { %v6151_v7 = vpop.xlane.xlu1 %1735  ;;  %3041 = vadd.xlane.f32.xlu0 %v4329_v58  ;;  %v4339_v22 = vpop.eup %4338  ;;  %v1088_v16 = vmul.f32 0.6931472, %v4337_v2 }
 0x707   : > { %v4341_v47 = vpop.eup %4340  ;;  %v1109_v4 = vadd.f32 %v1086_v10, %v6621_v40 }
 0x708   : > { %v1110_v55 = vadd.f32 %v1088_v16, %v6620_v41  ;;  %v4343_v61 = vpop.eup %4342 }
 0x709   : > { %v1758_v16 = vmul.f32 0.6931472, %v4343_v61  ;;  %v4345_v10 = vpop.eup %4344 }
 0x70a   : > { %v1148_v14 = vpop.xlane.xlu1 %1147  ;;  %3037 = vadd.xlane.f32.xlu0 %v4333_v63  ;;  %v1174_v15 = vsub.f32 %v1110_v55, %v1152_v56  ;;  %v1760_v0 = vmul.f32 0.6931472, %v4345_v10 }
 0x70b   : > { %v1172_v21 = vsub.f32 %v1108_v59, %v1148_v14  ;;  %v6189_v59 = vpop.xlane.xlu0 %3127  ;;  %v1780_v56 = vadd.f32 %v1758_v16, %v5618_v25 }
 0x70c   : > { %v1199_v63 = vsel %vm1181_vm6, %v1174_v15, 0.0  ;;  %v1781_v29 = vadd.f32 %v1760_v0, %v5606_v49 }
 0x70d   : > { %v1195_v36 = vsel %vm1181_vm6, %v1172_v21, 0.0 }
 0x70e   : > { %v6153_v46 = vpop.xlane.xlu1 %3123  ;;  %3043 = vadd.xlane.f32.xlu0 %v4339_v22  ;;  %v1196_v17 = vadd.f32 %v1195_v36, %v1194_v8  ;;  %v6624_v8 = vld [vmem:[#allocation30_spill] sm:$0xff] }
 0x70f   : > { %v1132_v2 = vsel %vm488_vm1, %v6624_v8, 0.0 }
 0x712   : > { %v6156_v31 = vpop.xlane.xlu1 %1737  ;;  %3039 = vadd.xlane.f32.xlu0 %v4341_v47 }
 0x716   : > { %v1150_v39 = vpop.xlane.xlu1 %1149  ;;  %1159 = vadd.xlane.f32.xlu0 %v1130_v60 }
 0x717   : > { %v1173_v11 = vsub.f32 %v1109_v4, %v1150_v39  ;;  %v4347_v39 = vpop.eup %4346 }
 0x719   : > { %v1197_v24 = vsel %vm1181_vm6, %v1173_v11, 0.0  ;;  %v1762_v11 = vmul.f32 0.6931472, %v4347_v39 }
 0x71a   : > { %v1198_v58 = vadd.f32 %v1197_v24, %v1196_v17  ;;  %3135 = vadd.xlane.f32.xlu0 %v3106_v27  ;;  %v6185_v6 = vpop.xlane.xlu1 %3125 }
 0x71b   : > { %v1782_v24 = vadd.f32 %v1762_v11, %v5610_v26 }
 0x71c   : > { %v6171_v14 = vadd.f32 %v1199_v63, %v1198_v58 }
 0x71e   : > { %1831 = vadd.xlane.f32.xlu0 %v1801_v35  ;;  %v1822_v22 = vpop.xlane.xlu1 %1821 }
 0x71f   : > { %v1844_v5 = vsub.f32 %v1780_v56, %v1822_v22 }
 0x721   : > { %v1868_v50 = vsel %vm1181_vm6, %v1844_v5, 0.0 }
 0x722   : > { %1163 = vadd.xlane.f32.xlu0 %v1132_v2  ;;  %v1869_v4 = vadd.f32 %v1868_v50, %v6132_v38 }
 0x726   : > { %3139 = vadd.xlane.f32.xlu0 %v3108_v13 }
 0x75a   : > { %v3018_v51 = vpop.xlane.xlu1 %3017 }
 0x75e   : > { %v3014_v21 = vpop.xlane.xlu1 %3013 }
 0x75f   : > { %v3020_v47 = vpop.xlane.xlu0 %3019 }
 0x766   : > { %v3026_v9 = vpop.xlane.xlu1 %3025 }
 0x767   : > { %v3016_v41 = vpop.xlane.xlu0 %3015 }
 0x768   : > { %4348 = vlog2.f32 %v3016_v41 }
 0x769   : > { %4350 = vlog2.f32 %v3014_v21 }
 0x76a   : > { %v3022_v55 = vpop.xlane.xlu1 %3021  ;;  %4352 = vlog2.f32 %v3018_v51 }
 0x76b   : > { %v1824_v36 = vpop.xlane.xlu0 %1823  ;;  %4354 = vlog2.f32 %v6063_v62 }
 0x76c   : > { %v1845_v40 = vsub.f32 %v1781_v29, %v1824_v36  ;;  %4356 = vlog2.f32 %v6119_v1 }
 0x76d   : > { %4358 = vlog2.f32 %v3020_v47 }
 0x76e   : > { %v1870_v44 = vsel %vm1181_vm6, %v1845_v40, 0.0  ;;  %v6197_v60 = vpop.xlane.xlu1 %1153  ;;  %4360 = vlog2.f32 %v3022_v55 }
 0x76f   : > { %v1871_v25 = vadd.f32 %v1870_v44, %v1869_v4 }
 0x772   : > { %v3030_v15 = vpop.xlane.xlu1 %3029  ;;  %v4349_v38 = vpop.eup %4348 }
 0x773   : > { %v3028_v37 = vpop.xlane.xlu0 %3027  ;;  %v4351_v58 = vpop.eup %4350  ;;  %v3048_v63 = vmul.f32 0.6931472, %v4349_v38  ;;  %v6625_v38 = vld [vmem:[#allocation88_spill] sm:$0xff] }
 0x774   : > { %v4353_v8 = vpop.eup %4352  ;;  %v3046_v2 = vmul.f32 0.6931472, %v4351_v58  ;;  %v6626_v58 = vld [vmem:[#allocation69_spill] sm:$0xff] }
 0x775   : > { %v4355_v13 = vpop.eup %4354  ;;  %v3078_v61 = vadd.f32 %v3048_v63, %v5976_v20  ;;  %v3050_v26 = vmul.f32 0.6931472, %v4353_v8 }
 0x776   : > { %v6201_v49 = vpop.xlane.xlu1 %3129  ;;  %v4357_v51 = vpop.eup %4356  ;;  %v3077_v21 = vadd.f32 %v3046_v2, %v5962_v12  ;;  %v1764_v47 = vmul.f32 0.6931472, %v4355_v13 }
 0x777   : > { %v3024_v17 = vpop.xlane.xlu0 %3023  ;;  %v4359_v10 = vpop.eup %4358  ;;  %v1766_v56 = vmul.f32 0.6931472, %v4357_v51  ;;  %v3142_v5 = vsub.f32 %v3078_v61, %v5984_v19  ;;  %v3079_v50 = vadd.f32 %v3050_v26, %v5956_v28 }
 0x778   : > { %4362 = vlog2.f32 %v3024_v17  ;;  %v4361_v29 = vpop.eup %4360  ;;  %v3052_v20 = vmul.f32 0.6931472, %v4359_v10  ;;  %v3141_v55 = vsub.f32 %v3077_v21, %v5970_v45  ;;  %v1783_v12 = vadd.f32 %v1764_v47, %v5628_v48  ;;  %v6630_v21 = vld [vmem:[#allocation36_spill] sm:$0xff] }
 0x779   : > { %4364 = vlog2.f32 %v3026_v9  ;;  %v1784_v9 = vadd.f32 %v1766_v56, %v5624_v23  ;;  %v3158_v19 = vsel %vm1181_vm6, %v3142_v5, 0.0  ;;  %v3143_v28 = vsub.f32 %v3079_v50, %v5958_v34  ;;  %v6631_v47 = vld [vmem:[#allocation76_spill] sm:$0xff] }
 0x77a   : > { %v1826_v27 = vpop.xlane.xlu1 %1825  ;;  %4366 = vlog2.f32 %v5540_v54  ;;  %v3080_v54 = vadd.f32 %v3052_v20, %v5964_v43  ;;  %v3157_v45 = vsel %vm1181_vm6, %v3141_v55, 0.0  ;;  %v3054_v39 = vmul.f32 0.6931472, %v4361_v29  ;;  %v6627_v43 = vld [vmem:[#allocation31_spill] sm:$0xff]  ;;  %v6632_v20 = vld [vmem:[#allocation28_spill] sm:$0xff] }
 0x77b   : > { %v3034_v3 = vpop.xlane.xlu0 %3033  ;;  %v1846_v35 = vsub.f32 %v1782_v24, %v1826_v27  ;;  %4368 = vlog2.f32 %v3028_v37  ;;  %v3159_v11 = vadd.f32 %v3158_v19, %v3157_v45  ;;  %v3160_v24 = vsel %vm1181_vm6, %v3143_v28, 0.0 }
 0x77c   : > { %4370 = vlog2.f32 %v5548_v53  ;;  %v3144_v27 = vsub.f32 %v3080_v54, %v6626_v58  ;;  %v3081_v63 = vadd.f32 %v3054_v39, %v6627_v43  ;;  %v6634_v54 = vld [vmem:[#allocation64_spill] sm:$0xff]  ;;  %v6636_v43 = vld [vmem:[#allocation33_spill] sm:$0xff] }
 0x77d   : > { %v1872_v62 = vsel %vm1181_vm6, %v1846_v35, 0.0  ;;  %4372 = vlog2.f32 %v3030_v15  ;;  %v6628_v35 = vld [vmem:[#allocation32_spill] sm:$0xff]  ;;  %v6629_v15 = vld [vmem:[#allocation62_spill] sm:$0xff] }
 0x77e   : > { %v1873_v1 = vadd.f32 %v1872_v62, %v1871_v25  ;;  %v6205_v22 = vpop.xlane.xlu1 %1157  ;;  %4374 = vlog2.f32 %v6625_v38  ;;  %v3161_v62 = vadd.f32 %v3160_v24, %v3159_v11  ;;  %v3162_v10 = vsel %vm1181_vm6, %v3144_v27, 0.0 }
 0x77f   : > { %v6208_v16 = vpop.xlane.xlu0 %1155  ;;  %4376 = vlog2.f32 %v6629_v15  ;;  %v3145_v56 = vsub.f32 %v3081_v63, %v6631_v47 }
 0x780   : > { %4378 = vlog2.f32 %v3034_v3  ;;  %v3163_v50 = vadd.f32 %v3162_v10, %v3161_v62 }
 0x782   : > { %v6211_v0 = vpop.xlane.xlu1 %3133  ;;  %v4363_v36 = vpop.eup %4362 }
 0x783   : > { %v6214_v41 = vpop.xlane.xlu0 %3131  ;;  %v3056_v37 = vmul.f32 0.6931472, %v4363_v36  ;;  %v4365_v53 = vpop.eup %4364 }
 0x784   : > { %v4367_v13 = vpop.eup %4366 }
 0x785   : > { %v3082_v8 = vadd.f32 %v3056_v37, %v6628_v35  ;;  %v4369_v61 = vpop.eup %4368  ;;  %v1090_v29 = vmul.f32 0.6931472, %v4367_v13  ;;  %v6637_v13 = vld [vmem:[#allocation34_spill] sm:$0xff] }
 0x786   : > { %v1830_v40 = vpop.xlane.xlu1 %1829  ;;  %v4371_v26 = vpop.eup %4370  ;;  %v3060_v36 = vmul.f32 0.6931472, %v4369_v61 }
 0x787   : > { %v1828_v4 = vpop.xlane.xlu0 %1827  ;;  %v1848_v25 = vsub.f32 %v1784_v9, %v1830_v40  ;;  %v3146_v5 = vsub.f32 %v3082_v8, %v6100_v32  ;;  %v4373_v9 = vpop.eup %4372  ;;  %v1092_v3 = vmul.f32 0.6931472, %v4371_v26  ;;  %v3164_v40 = vsel %vm1181_vm6, %v3145_v56, 0.0 }
 0x788   : > { %v1847_v44 = vsub.f32 %v1783_v12, %v1828_v4  ;;  %v4375_v4 = vpop.eup %4374  ;;  %v3165_v28 = vadd.f32 %v3164_v40, %v3163_v50  ;;  %v3084_v45 = vadd.f32 %v3060_v36, %v6634_v54  ;;  %v3062_v39 = vmul.f32 0.6931472, %v4373_v9  ;;  %v6640_v40 = vld [vmem:[#allocation79_spill] sm:$0xff] }
 0x789   : > { %v1876_v34 = vsel %vm1181_vm6, %v1848_v25, 0.0  ;;  %v3166_v19 = vsel %vm1181_vm6, %v3146_v5, 0.0  ;;  %v4377_v11 = vpop.eup %4376 }
 0x78a   : > { %v1874_v23 = vsel %vm1181_vm6, %v1847_v44, 0.0  ;;  %v6633_v44 = vld [vmem:[#allocation59_spill] sm:$0xff]  ;;  %v4379_v38 = vpop.eup %4378  ;;  %v3148_v27 = vsub.f32 %v3084_v45, %v6153_v46  ;;  %v3085_v63 = vadd.f32 %v3062_v39, %v6636_v43  ;;  %v1162_v62 = vpop.xlane.xlu1 %1161 }
 0x78b   : > { %v1875_v48 = vadd.f32 %v1874_v23, %v1873_v1  ;;  %v3036_v17 = vpop.xlane.xlu0 %3035  ;;  %v3058_v1 = vmul.f32 0.6931472, %v4365_v53  ;;  %v1111_v25 = vadd.f32 %v1090_v29, %v6633_v44 }
 0x78c   : > { %v3170_v47 = vsel %vm1181_vm6, %v3148_v27, 0.0  ;;  %v3149_v56 = vsub.f32 %v3085_v63, %v6185_v6 }
 0x78d   : > { %v6233_v2 = vadd.f32 %v1876_v34, %v1875_v48  ;;  %v3083_v55 = vadd.f32 %v3058_v1, %v6632_v20  ;;  %v1175_v23 = vsub.f32 %v1111_v25, %v6197_v60  ;;  %v3167_v48 = vadd.f32 %v3166_v19, %v3165_v28  ;;  %v6641_v19 = vld [vmem:[#allocation82_spill] sm:$0xff] }
 0x78e   : > { %v3172_v6 = vsel %vm1181_vm6, %v3149_v56, 0.0  ;;  %v3138_v44 = vpop.xlane.xlu1 %3137 }
 0x78f   : > { %v3032_v51 = vpop.xlane.xlu0 %3031  ;;  %v3147_v32 = vsub.f32 %v3083_v55, %v6142_v57  ;;  %v1201_v8 = vsel %vm1181_vm6, %v1175_v23, 0.0  ;;  %v6639_v55 = vld [vmem:[#allocation77_spill] sm:$0xff] }
 0x790   : > { %4380 = vlog2.f32 %v3032_v51  ;;  %v1096_v51 = vmul.f32 0.6931472, %v4377_v11  ;;  %v1202_v10 = vadd.f32 %v1201_v8, %v6171_v14 }
 0x791   : > { %4382 = vlog2.f32 %v6630_v21  ;;  %v3168_v58 = vsel %vm1181_vm6, %v3147_v32, 0.0  ;;  %v6638_v21 = vld [vmem:[#allocation61_spill] sm:$0xff] }
 0x792   : > { %4384 = vlog2.f32 %v3036_v17  ;;  %v6635_v17 = vld [vmem:[#allocation60_spill] sm:$0xff]  ;;  %v3169_v15 = vadd.f32 %v3168_v58, %v3167_v48  ;;  %v6642_v48 = vld [vmem:[#allocation78_spill] sm:$0xff] }
 0x793   : > { %v3042_v12 = vpop.xlane.xlu0 %3041  ;;  %4386 = vlog2.f32 %v6151_v7  ;;  %v1112_v53 = vadd.f32 %v1092_v3, %v6635_v17  ;;  %v1094_v7 = vmul.f32 0.6931472, %v4375_v4  ;;  %v1114_v4 = vadd.f32 %v1096_v51, %v6641_v19 }
 0x794   : > { %v3171_v29 = vadd.f32 %v3170_v47, %v3169_v15 }
 0x795   : > { %v1176_v34 = vsub.f32 %v1112_v53, %v6208_v16  ;;  %v1113_v46 = vadd.f32 %v1094_v7, %v6638_v21 }
 0x796   : > { %v3173_v39 = vadd.f32 %v3172_v6, %v3171_v29  ;;  %v6645_v29 = vld [vmem:[#allocation84_spill] sm:$0xff] }
 0x797   : > { %v3038_v37 = vpop.xlane.xlu0 %3037  ;;  %v1203_v26 = vsel %vm1181_vm6, %v1176_v34, 0.0  ;;  %v1177_v50 = vsub.f32 %v1113_v46, %v6205_v22 }
 0x798   : > { %4388 = vlog2.f32 %v3038_v37 }
 0x799   : > { %4390 = vlog2.f32 %v6156_v31  ;;  %v3066_v31 = vmul.f32 0.6931472, %v4379_v38  ;;  %v1205_v54 = vsel %vm1181_vm6, %v1177_v50, 0.0 }
 0x79a   : > { %v4381_v24 = vpop.eup %4380  ;;  %4392 = vlog2.f32 %v3042_v12  ;;  %v1204_v12 = vadd.f32 %v1203_v26, %v1202_v10 }
 0x79b   : > { %v4383_v57 = vpop.eup %4382  ;;  %v3064_v60 = vmul.f32 0.6931472, %v4381_v24  ;;  %v3044_v35 = vpop.xlane.xlu0 %3043  ;;  %4394 = vlog2.f32 %v6094_v30  ;;  %v3087_v36 = vadd.f32 %v3066_v31, %v6639_v55 }
 0x79c   : > { %v4385_v1 = vpop.eup %4384  ;;  %v1098_v61 = vmul.f32 0.6931472, %v4383_v57  ;;  %v1206_v23 = vadd.f32 %v1205_v54, %v1204_v12 }
 0x79d   : > { %v3086_v16 = vadd.f32 %v3064_v60, %v6637_v13  ;;  %v4387_v20 = vpop.eup %4386  ;;  %v3068_v9 = vmul.f32 0.6931472, %v4385_v1  ;;  %v3151_v11 = vsub.f32 %v3087_v36, %v6201_v49  ;;  %v6644_v1 = vld [vmem:[#allocation90_spill] sm:$0xff] }
 0x79e   : > { %v1115_v14 = vadd.f32 %v1098_v61, %v6640_v40  ;;  %v1768_v38 = vmul.f32 0.6931472, %v4387_v20 }
 0x79f   : > { %v3150_v5 = vsub.f32 %v3086_v16, %v6189_v59  ;;  %v3040_v30 = vpop.xlane.xlu0 %3039  ;;  %v3088_v17 = vadd.f32 %v3068_v9, %v6642_v48  ;;  %v3176_v60 = vsel %vm1181_vm6, %v3151_v11, 0.0 }
 0x7a0   : > { %4396 = vlog2.f32 %v3040_v30  ;;  %v1179_v45 = vsub.f32 %v1115_v14, %v1162_v62  ;;  %v6643_v62 = vld [vmem:[#allocation89_spill] sm:$0xff]  ;;  %v1785_v51 = vadd.f32 %v1768_v38, %v6644_v1 }
 0x7a1   : > { %4398 = vlog2.f32 %v3044_v35  ;;  %v3174_v59 = vsel %vm1181_vm6, %v3150_v5, 0.0  ;;  %v3152_v49 = vsub.f32 %v3088_v17, %v6214_v41  ;;  %v1834_v35 = vpop.xlane.xlu1 %1833 }
 0x7a2   : > { %v4389_v3 = vpop.eup %4388  ;;  %v3175_v34 = vadd.f32 %v3174_v59, %v3173_v39  ;;  %v1209_v63 = vsel %vm1181_vm6, %v1179_v45, 0.0 }
 0x7a3   : > { %v4391_v28 = vpop.eup %4390  ;;  %v3070_v22 = vmul.f32 0.6931472, %v4389_v3  ;;  %v1160_v25 = vpop.xlane.xlu0 %1159  ;;  %v3178_v56 = vsel %vm1181_vm6, %v3152_v49, 0.0 }
 0x7a4   : > { %v4393_v32 = vpop.eup %4392  ;;  %v1178_v37 = vsub.f32 %v1114_v4, %v1160_v25  ;;  %v1770_v24 = vmul.f32 0.6931472, %v4391_v28  ;;  %v3177_v16 = vadd.f32 %v3176_v60, %v3175_v34 }
 0x7a5   : > { %v3089_v53 = vadd.f32 %v3070_v22, %v6015_v18  ;;  %v4395_v57 = vpop.eup %4394  ;;  %v3074_v58 = vmul.f32 0.6931472, %v4393_v32 }
 0x7a6   : > { %v1207_v7 = vsel %vm1181_vm6, %v1178_v37, 0.0  ;;  %v1100_v31 = vmul.f32 0.6931472, %v4395_v57  ;;  %v1786_v13 = vadd.f32 %v1770_v24, %v6643_v62  ;;  %v3179_v30 = vadd.f32 %v3178_v56, %v3177_v16 }
 0x7a7   : > { %v1208_v27 = vadd.f32 %v1207_v7, %v1206_v23  ;;  %v3136_v43 = vpop.xlane.xlu0 %3135  ;;  %v3153_v8 = vsub.f32 %v3089_v53, %v6211_v0  ;;  %v3091_v26 = vadd.f32 %v3074_v58, %v6003_v42 }
 0x7a8   : > { %v1850_v10 = vsub.f32 %v1786_v13, %v1834_v35  ;;  %v1116_v20 = vadd.f32 %v1100_v31, %v6645_v29 }
 0x7a9   : > { %v1210_v15 = vadd.f32 %v1209_v63, %v1208_v27  ;;  %v3180_v0 = vsel %vm1181_vm6, %v3153_v8, 0.0  ;;  %v3155_v55 = vsub.f32 %v3091_v26, %v3138_v44 }
 0x7aa   : > { %v4397_v18 = vpop.eup %4396  ;;  %v1880_v9 = vsel %vm1181_vm6, %v1850_v10, 0.0  ;;  %v3181_v3 = vadd.f32 %v3180_v0, %v3179_v30 }
 0x7ab   : > { %v4399_v61 = vpop.eup %4398  ;;  %v3072_v21 = vmul.f32 0.6931472, %v4397_v18  ;;  %v1832_v46 = vpop.xlane.xlu0 %1831 }
 0x7ac   : > { %v1849_v47 = vsub.f32 %v1785_v51, %v1832_v46  ;;  %v3076_v5 = vmul.f32 0.6931472, %v4399_v61 }
 0x7ad   : > { %v3090_v41 = vadd.f32 %v3072_v21, %v6045_v33 }
 0x7ae   : > { %v1878_v50 = vsel %vm1181_vm6, %v1849_v47, 0.0  ;;  %v3092_v28 = vadd.f32 %v3076_v5, %v6037_v52 }
 0x7af   : > { %v3154_v36 = vsub.f32 %v3090_v41, %v3136_v43  ;;  %v1879_v42 = vadd.f32 %v1878_v50, %v6233_v2  ;;  %v1164_v12 = vpop.xlane.xlu0 %1163  ;;  %v3184_v2 = vsel %vm1181_vm6, %v3155_v55, 0.0 }
 0x7b0   : > { %v1180_v40 = vsub.f32 %v1116_v20, %v1164_v12 }
 0x7b1   : > { %v3182_v33 = vsel %vm1181_vm6, %v3154_v36, 0.0  ;;  %v1881_v14 = vadd.f32 %v1880_v9, %v1879_v42 }
 0x7b2   : > { %v3183_v19 = vadd.f32 %v3182_v33, %v3181_v3  ;;  %v1211_v4 = vsel %vm1181_vm6, %v1180_v40, 0.0 }
 0x7b3   : > { %v1212_v6 = vadd.f32 %v1211_v4, %v1210_v15  ;;  %v3140_v59 = vpop.xlane.xlu0 %3139  ;;  %1882 = vadd.xlane.f32.xlu0 %v1881_v14 }
 0x7b4   : > { %v3156_v44 = vsub.f32 %v3092_v28, %v3140_v59  ;;  %v3185_v22 = vadd.f32 %v3184_v2, %v3183_v19 }
 0x7b5   : > { %1213 = vadd.xlane.f32.xlu1 %v1212_v6 }
 0x7b6   : > { %v3186_v25 = vsel %vm1181_vm6, %v3156_v44, 0.0 }
 0x7b7   : > { %v3187_v32 = vadd.f32 %v3186_v25, %v3185_v22 }
 0x7b9   : > { %3188 = vadd.xlane.f32.xlu1 %v3187_v32 }
 0x7ba   : > { %4484 = shalt.err (!%p4481_p9)
}
 0x7bb   : > { %s4485_s16 = scalar_lea.hbm %s6298_s8, 2048  ;;  %s4489_s0 = scalar_lea.hbm %s6383_s6, 8192 }
 0x7bc   : > { %p4486_p0 = scmp.ne.s32.totalorder %s6298_s8, %s4485_s16  ;;  %p4490_p10 = scmp.lt.u32.totalorder %s6298_s8, %s6383_s6 }
 0x7bd   : > { %p4491_p12 = scmp.lt.u32.totalorder %s4489_s0, %s4485_s16  ;;  %p4493_p3 = scmp.lt.u32.totalorder %s4485_s16, %s6298_s8 }
 0x7be   : > { %p4487_p1 = pnand %p4486_p0, %p6646_p4 }
 0x7bf   : > { %p4492_p2 = por %p4491_p12, %p4490_p10 }
 0x7c0   : > { %p4488_p5 = pneg %p4487_p1 }
 0x7c1   : > { %p4494_p7 = por %p4493_p3, %p4492_p2 }
 0x7c3   : > { %p4495_p8 = pnand %p4494_p7, %p4488_p5 }
 0x7c5   : > { %4498 = shalt.err (!%p4495_p8)
}
 0x7c6   : > { %s4586_s21 = smov 128   ;;  %s4587_s23 = smov 8   ;;  %v6647_v35 = vld [vmem:[#allocation18_spill] sm:$0xff] }
 0x7c7   : > { %3946 = dma.vmem_to_hbm [thread:$0]  (%p6646_p4), %s6300_s19, 2048, %s6298_s8, %s3226_s14, %s4586_s21, %s4586_s21, %s4587_s23   ;;  %vm3217_vm2 = vcmp.eq.s32.totalorder %v6647_v35, 2  ;;  %vm3216_vm3 = vcmp.eq.s32.totalorder %v6647_v35, 1  ;;  %vm3215_vm4 = vcmp.eq.s32.totalorder %v6647_v35, 0 }
 0x7c8   : > { %s3420_s19 = sshll.u32 %s5650_s29, 3  ;;  %s3537_s15 = sshll.u32 %s4650_s28, 7 }
 0x7c9   : > { %s354_s20 = scalar_lea.vmem [#allocation10], %s3420_s19  ;;  %s6334_s18 = scalar_lea.hbm %s6384_s7, %s3537_s15 }
 0x7ca   : > { %s3260_s22 = sshll.u32 %s354_s20, 4  ;;  %s3231_s28 = scalar_lea.sflag [#allocation11], %s5650_s29  ;;  %s6336_s22 = int_to_ptr.vmem [resolvable:$true] %s3260_s22 }
 0x7cb   : > { %s4499_s0 = scalar_lea.vmem %s6336_s22, 128  ;;  %s4588_s10 = smov [#allocation10]  }
 0x7cc   : > { %p4500_p11 = scmp.ne.s32.totalorder %s6336_s22, %s4499_s0  ;;  %s4503_s13 = sshll.u32 %s4588_s10, 4  ;;  %s4504_s13 = int_to_ptr.vmem [resolvable:$false] %s4503_s13 }
 0x7cd   : > { %s4505_s21 = scalar_lea.vmem %s4504_s13, 256  ;;  %p4506_p9 = scmp.lt.s32.totalorder %s6336_s22, %s4504_s13 }
 0x7ce   : > { %p4501_p13 = pnand %p4500_p11, %p6646_p4  ;;  %p4507_p0 = scmp.lt.s32.totalorder %s4505_s21, %s4499_s0 }
 0x7d0   : > { %p4502_p6 = pneg %p4501_p13  ;;  %p4508_p1 = por %p4507_p0, %p4506_p9 }
 0x7d2   : > { %p4509_p5 = pnand %p4508_p1, %p4502_p6 }
 0x840   : > { %v1883_v52 = vpop.xlane.xlu0 %1882 }
 0x841   : > { %v1884_v54 = vrot.slane %v1883_v52, 4 }
 0x842   : > { %v1214_v45 = vpop.xlane.xlu1 %1213 }
 0x843   : > { %v1885_v39 = vadd.f32 %v1884_v54, %v1883_v52  ;;  %v1215_v37 = vrot.slane %v1214_v45, 4 }
 0x845   : > { %v1886_v11 = vrot.slane %v1885_v39, 2  ;;  %v1216_v23 = vadd.f32 %v1215_v37, %v1214_v45 }
 0x846   : > { %v3189_v48 = vpop.xlane.xlu1 %3188 }
 0x847   : > { %v1887_v17 = vadd.f32 %v1886_v11, %v1885_v39  ;;  %v1217_v53 = vrot.slane %v1216_v23, 2  ;;  %v3190_v38 = vrot.slane %v3189_v48, 4 }
 0x849   : > { %v3191_v24 = vadd.f32 %v3190_v38, %v3189_v48  ;;  %v1218_v34 = vadd.f32 %v1217_v53, %v1216_v23  ;;  %v1888_v7 = vrot.slane %v1887_v17, 1 }
 0x84b   : > { %v3192_v57 = vrot.slane %v3191_v24, 2  ;;  %v1219_v58 = vrot.slane %v1218_v34, 1  ;;  %v1889_v63 = vadd.f32 %v1888_v7, %v1887_v17 }
 0x84d   : > { %v3193_v27 = vadd.f32 %v3192_v57, %v3191_v24  ;;  %v1220_v43 = vadd.f32 %v1219_v58, %v1218_v34 }
 0x84f   : > { %3928 = vpush %v1220_v43  ;;  %v3194_v60 = vrot.slane %v3193_v27, 1 }
 0x850   : > { %3930 = vpush %v1889_v63 }
 0x851   : > { %v3195_v49 = vadd.f32 %v3194_v60, %v3193_v27 }
 0x853   : > { %3932 = vpush %v3195_v49 }
 0x880   : > { %s3929_s8 = spop %3928 }
 0x881   : > { %s3931_s14 = spop %3930  ;;  %v3222_v31 = vstv %s3929_s8 }
 0x882   : > { %v3220_v15 = vstv %s3931_s14 }
 0x884   : > { %s3933_s17 = spop %3932 }
 0x885   : > { %v3218_v8 = vstv %s3933_s17 }
 0x886   : > { %v3219_v18 = vsel %vm3217_vm2, %v3218_v8, 0.0 }
 0x887   : > { %v3221_v62 = vsel %vm3216_vm3, %v3220_v15, %v3219_v18 }
 0x888   : > { %v3223_v13 = vsel %vm3215_vm4, %v3222_v31, %v3221_v62 }
 0x889   : > { %3224 = vst [vmem:[%s354_s20] sm:$0xff] %v3223_v13 }
 0x88a   : > { %4512 = shalt.err (!%p4509_p5)
}
 0x88b   : > { %s4513_s29 = scalar_lea.hbm %s6334_s18, 128  ;;  %s4517_s8 = scalar_lea.hbm %s6384_s7, 512 }
 0x88c   : > { %p4514_p10 = scmp.ne.s32.totalorder %s6334_s18, %s4513_s29  ;;  %p4518_p3 = scmp.lt.u32.totalorder %s6334_s18, %s6384_s7 }
 0x88d   : > { %p4519_p7 = scmp.lt.u32.totalorder %s4517_s8, %s4513_s29  ;;  %p4521_p11 = scmp.lt.u32.totalorder %s4513_s29, %s6334_s18 }
 0x88e   : > { %p4515_p12 = pnand %p4514_p10, %p6646_p4 }
 0x88f   : > { %p4520_p8 = por %p4519_p7, %p4518_p3 }
 0x890   : > { %p4516_p2 = pneg %p4515_p12 }
 0x891   : > { %p4522_p13 = por %p4521_p11, %p4520_p8 }
 0x893   : > { %p4523_p6 = pnand %p4522_p13, %p4516_p2 }
 0x895   : > { %4526 = shalt.err (!%p4523_p6)
}
 0x896   : > { %3947 = dma.vmem_to_hbm [thread:$0]  (%p6646_p4), %s6336_s22, 128, %s6334_s18, %s3231_s28  }
 0x897 PF: > { %p3973_p9 = scmp.ge.s32.totalorder %s4577_s27, 2  ;;  %s3272_s17 = sand.u32 1, %s4565_s24  }
 0x898   : > { %p6648_p0 = scmp.ne.s32.totalorder %s6459_s12, 0  ;;  %s3273_s20 = scalar_lea.sflag [#allocation4], %s3272_s17 }
 0x89a   : > { %p3961_p1 = pnand %p3973_p9, %p6648_p0 }
 0x89c   : > { %4556 = dma.done.wait (!%p3961_p1), %s3273_s20, 2048  }
 0x89d   : > { %4558 = vsyncadd (!%p3961_p1), %s3273_s20, 4294965248  ;;  %s3282_s16 = scalar_lea.sflag [#allocation11], %s3272_s17 }
 0x89e   : > { %4560 = dma.done.wait (!%p3961_p1), %s3282_s16, 128  }
 0x89f   : > { %4562 = vsyncadd (!%p3961_p1), %s3282_s16, 4294967168  ;;  %s6649_s11 = sld [smem:[#allocation17_spill]]  ;;  %p24_p4 = scmp.ge.s32.totalorder %s4654_s30, 6  }
 0x8a0   : > { %s6650_s24 = smov %s4569_s25  ;;  %s6651_s25 = smov %s4573_s26 }
 0x8a1   : > { %s6653_s27 = smov %s4654_s30  ;;  %26 = sbr.rel (!%p24_p4) target bundleno = 10 (0xa), region = 116 }
 0x8a5   : > { %s6652_s26 = smov %s6649_s11 }
 0x8a8   :  { %3287 = vsyncpa [#allocation3], 1 }
 0x8a9   :  { %3289 = vsyncpa [#allocation3 + $0x1], 1 }
 0x8aa   :  { %3290 = vsyncpa [#allocation8], 1 }
 0x8ab   :  { %3291 = vsyncpa [#allocation4], 1 }
 0x8ac   :  { %3293 = vsyncpa [#allocation4 + $0x1], 1 }
 0x8ad   :  { %3294 = vsyncpa [#allocation11], 1 }
 0x8ae   :  { %3296 = vsyncpa [#allocation11 + $0x1], 1 }
 0x8af   :  { %3297 = vsyncpa [#allocation5], 1 }
 0x8b0   :  { %3299 = vsyncpa [#allocation5 + $0x1], 1 }

</bundles_post_ra>
